<compile_context>
chip_gen: v7x
topology: tpu7x:2x2x1
jax: 0.10.0
libtpu: 0.0.40
codegen_flags: <defaults>
</compile_context>

<pallas_src>
import math

import jax
import jax.numpy as jnp
from jax.experimental import pallas as pl
from jax.experimental.pallas import tpu as pltpu

OMEGA = 10.0
EPSILON = 2.0
INV_EPSILON = 1.0 / EPSILON
# Pure Python constant (matches np.log in the reference).
C_CONST = OMEGA - OMEGA * math.log(1.0 + OMEGA / EPSILON)

_LANE_CANDIDATES = (8192, 4096, 2048, 1024, 512, 256, 128)
_MIN_PALLAS_ELEMS = 64 * 1024        # below this, fused XLA elementwise wins
_DEFAULT_VMEM_BYTES = 64 << 20       # conservative fallback = v7x physical VMEM


def _wing_loss_math(pred, tgt, out_dtype):
    """Elementwise wing loss, computed in f32 (v5e has no bf16 VPU/EUP)."""
    d = jnp.abs(pred.astype(jnp.float32) - tgt.astype(jnp.float32))
    # Multiply by 1/eps instead of dividing: the divide would contend with the
    # log for the single EUP slot.
    small = OMEGA * jnp.log1p(d * INV_EPSILON)
    large = d - C_CONST
    return jnp.where(d < OMEGA, small, large).astype(out_dtype)


def _wing_loss_kernel(pred_ref, tgt_ref, out_ref):
    # Load in the HBM dtype, compute in f32 in-vreg, store in the original
    # dtype — HBM traffic stays at the input dtype width.
    out_ref[...] = _wing_loss_math(pred_ref[...], tgt_ref[...], out_ref.dtype)


def _vmem_capacity_bytes():
    try:
        return int(pltpu.get_tpu_info().vmem_capacity_bytes)
    except Exception:
        return _DEFAULT_VMEM_BYTES


def _round_up(x, m):
    return ((x + m - 1) // m) * m


def _choose_row_tile(rows, lanes, itemsize):
    """Pick (row_tile, num_grid_blocks) for a (rows, lanes) array."""
    sub = max(8, 32 // itemsize)            # dtype-native sublane multiple
    vmem = _vmem_capacity_bytes()
    # ~vmem/16 per operand tile; 3 operands x 2 pipeline buffers ~= 3/8 of VMEM.
    tile_budget = max(lanes * sub * itemsize, vmem // 16)
    max_rows = max(sub, (tile_budget // (lanes * itemsize)) // sub * sub)

    if rows <= max_rows:
        # Single resident block (grid=1).  No forced split "for parallelism":
        # it is pure per-step overhead on single-TC v5e/v6e, and full-extent
        # blocks need no sublane alignment.
        return rows, 1

    nblocks = pl.cdiv(rows, max_rows)
    if nblocks % 2:
        nblocks += 1                        # balanced across v7x's 2 TensorCores
    row_tile = _round_up(pl.cdiv(rows, nblocks), sub)
    grid_n = pl.cdiv(rows, row_tile)
    if grid_n > 1 and grid_n % 2:
        # Sublane rounding collapsed the split to an odd block count; try one
        # finer even split before accepting it.
        alt = _round_up(pl.cdiv(rows, grid_n + 1), sub)
        if pl.cdiv(rows, alt) % 2 == 0:
            row_tile, grid_n = alt, pl.cdiv(rows, alt)
    return row_tile, grid_n


def _wing_loss_2d(p2, t2, out_dtype, row_tile, grid_n, itemsize):
    rows, lanes = p2.shape
    tile_bytes = row_tile * lanes * itemsize
    vmem_cap = _vmem_capacity_bytes()
    # 3 operands x 2 pipeline buffers x tile, plus headroom; capped well below
    # physical VMEM on every generation (64 MiB v7x / 128 MiB v5e, v6e).
    vmem_limit = min(6 * tile_bytes + (8 << 20), (vmem_cap * 3) // 4)

    return pl.pallas_call(
        _wing_loss_kernel,
        out_shape=jax.ShapeDtypeStruct((rows, lanes), out_dtype),
        grid_spec=pltpu.PrefetchScalarGridSpec(
            num_scalar_prefetch=0,
            grid=(grid_n,),
            in_specs=[
                pl.BlockSpec((row_tile, lanes), lambda i: (i, 0)),
                pl.BlockSpec((row_tile, lanes), lambda i: (i, 0)),
            ],
            out_specs=pl.BlockSpec((row_tile, lanes), lambda i: (i, 0)),
        ),
        compiler_params=pltpu.CompilerParams(
            dimension_semantics=("parallel",),
            vmem_limit_bytes=vmem_limit,
        ),
    )(p2, t2)


def wing_loss(prediction, target):
    assert prediction.shape == target.shape
    orig_shape = prediction.shape
    out_dtype = prediction.dtype
    itemsize = jnp.dtype(out_dtype).itemsize

    n = int(prediction.size)
    # Empty / tiny inputs: pallas_call launch + pipeline prologue dominates;
    # XLA's fused elementwise op is strictly faster.
    if n == 0 or n < _MIN_PALLAS_ELEMS:
        return _wing_loss_math(prediction, target, out_dtype)

    p = prediction.reshape(-1)
    t = target.reshape(-1)

    # Widest lane count that divides n exactly (zero-copy reshape).  Ragged n
    # keeps wide lanes for the prefix; the (< lanes)-element tail is stitched
    # in via fused jnp instead of padding/slicing full-array copies.
    lanes = next((w for w in _LANE_CANDIDATES if n % w == 0), _LANE_CANDIDATES[0])
    rows = n // lanes
    n_main = rows * lanes
    tail = n - n_main

    row_tile, grid_n = _choose_row_tile(rows, lanes, itemsize)

    if tail == 0:
        out2 = _wing_loss_2d(p.reshape(rows, lanes), t.reshape(rows, lanes),
                             out_dtype, row_tile, grid_n, itemsize)
        return out2.reshape(orig_shape)

    # Ragged path: kernel on the divisible prefix, fused jnp on the tiny tail.
    # TODO(synk): a fully zero-copy ragged path would need pl.ANY flat HBM refs
    # + manual DMA with masked stores on the final chunk.
    out_main = _wing_loss_2d(p[:n_main].reshape(rows, lanes),
                             t[:n_main].reshape(rows, lanes),
                             out_dtype, row_tile, grid_n, itemsize)
    out_tail = _wing_loss_math(p[n_main:], t[n_main:], out_dtype)
    return jnp.concatenate([out_main.reshape(-1), out_tail]).reshape(orig_shape)


def wing_loss_ref(prediction, target):
    """Literal translation of the PyTorch forward (f32 math, cast back)."""
    d = jnp.abs(prediction.astype(jnp.float32) - target.astype(jnp.float32))
    loss = jnp.where(d < OMEGA, OMEGA * jnp.log(1.0 + d / EPSILON), d - C_CONST)
    return loss.astype(prediction.dtype)


if __name__ == "__main__":
    key = jax.random.PRNGKey(0)

    def check(shape, dtype, scale, atol, rtol, k):
        k1, k2 = jax.random.split(k)
        pred = (jax.random.normal(k1, shape, dtype=jnp.float32) * scale).astype(dtype)
        tgt = (jax.random.normal(k2, shape, dtype=jnp.float32) * scale).astype(dtype)
        out = jax.block_until_ready(wing_loss(pred, tgt))
        ref = wing_loss_ref(pred, tgt)
        assert out.shape == pred.shape, f"shape mismatch for {shape} {dtype}"
        assert out.dtype == pred.dtype, f"dtype mismatch for {shape} {dtype}"
        assert jnp.allclose(out.astype(jnp.float32), ref.astype(jnp.float32),
                            atol=atol, rtol=rtol), f"value mismatch for {shape} {dtype}"

    keys = jax.random.split(key, 4)
    # Small landmark-style tensor (tiny-input fused-jnp fast path).
    check((2, 4, 16, 16), jnp.float32, 8.0, 1e-5, 1e-5, keys[0])
    # 128*64-divisible tensor: single pallas_call, wide lanes, grid=(1,).
    check((8, 4, 64, 64), jnp.float32, 8.0, 1e-5, 1e-5, keys[1])
    # Ragged tensor: Pallas kernel on the divisible prefix + jnp tail.
    check((513, 129), jnp.float32, 8.0, 1e-5, 1e-5, keys[2])
    # bf16 inputs exercise the in-kernel f32 compute / output dtype cast.
    check((8, 4, 64, 64), jnp.bfloat16, 8.0, 5e-2, 5e-2, keys[3])

    print("KERNEL_OK")
</pallas_src>

<mosaic_0001>
module attributes {stable_mosaic.version = 11 : i64} {
  func.func @_wing_loss_kernel(%arg0: i32, %arg1: memref<16x8192xf32, #tpu.memory_space<vmem>>, %arg2: memref<16x8192xf32, #tpu.memory_space<vmem>>, %arg3: memref<16x8192xf32, #tpu.memory_space<vmem>>) attributes {dimension_semantics = [#tpu.dimension_semantics<parallel>], iteration_bounds = array<i64: 1>, scalar_prefetch = 0 : i64, scratch_operands = 0 : i64, tpu.core_type = #tpu.core_type<tc>, window_params = [{transform_indices = @transform_0, window_bounds = array<i64: 16, 8192>}, {transform_indices = @transform_1, window_bounds = array<i64: 16, 8192>}, {transform_indices = @transform_2, window_bounds = array<i64: 16, 8192>}]} {
    %c0 = arith.constant 0 : index
    %c0_0 = arith.constant 0 : index
    %0 = vector.load %arg1[%c0, %c0_0] : memref<16x8192xf32, #tpu.memory_space<vmem>>, vector<16x8192xf32>
    %c0_1 = arith.constant 0 : index
    %c0_2 = arith.constant 0 : index
    %1 = vector.load %arg2[%c0_1, %c0_2] : memref<16x8192xf32, #tpu.memory_space<vmem>>, vector<16x8192xf32>
    %2 = arith.subf %0, %1 : vector<16x8192xf32>
    %3 = math.absf %2 : vector<16x8192xf32>
    %cst = arith.constant 5.000000e-01 : f32
    %4 = vector.broadcast %cst : f32 to vector<16x8192xf32>
    %5 = arith.mulf %3, %4 : vector<16x8192xf32>
    %6 = math.log1p %5 : vector<16x8192xf32>
    %cst_3 = arith.constant 1.000000e+01 : f32
    %7 = vector.broadcast %cst_3 : f32 to vector<16x8192xf32>
    %8 = arith.mulf %7, %6 : vector<16x8192xf32>
    %cst_4 = arith.constant -7.9175949 : f32
    %9 = vector.broadcast %cst_4 : f32 to vector<16x8192xf32>
    %10 = arith.subf %3, %9 : vector<16x8192xf32>
    %cst_5 = arith.constant 1.000000e+01 : f32
    %11 = vector.broadcast %cst_5 : f32 to vector<16x8192xf32>
    %12 = arith.cmpf olt, %3, %11 : vector<16x8192xf32>
    %13 = arith.select %12, %8, %10 : vector<16x8192xi1>, vector<16x8192xf32>
    %c0_6 = arith.constant 0 : index
    %c0_7 = arith.constant 0 : index
    %14 = vector.load %arg3[%c0_6, %c0_7] : memref<16x8192xf32, #tpu.memory_space<vmem>>, vector<16x8192xf32>
    tpu.vector_store %arg3[%c0_6, %c0_7], %13 {strides = array<i32>} : memref<16x8192xf32, #tpu.memory_space<vmem>>, vector<16x8192xf32>,
    return
  }
  func.func @transform_0(%arg0: i32) -> (i32, i32) {
    %c0_i32 = arith.constant 0 : i32
    %c0_i32_0 = arith.constant 0 : i32
    return %arg0, %c0_i32 : i32, i32
  }
  func.func @transform_1(%arg0: i32) -> (i32, i32) {
    %c0_i32 = arith.constant 0 : i32
    %c0_i32_0 = arith.constant 0 : i32
    return %arg0, %c0_i32 : i32, i32
  }
  func.func @transform_2(%arg0: i32) -> (i32, i32) {
    %c0_i32 = arith.constant 0 : i32
    %c0_i32_0 = arith.constant 0 : i32
    return %arg0, %c0_i32 : i32, i32
  }
}

</mosaic_0001>

<bundles_post_ra>
// kernel: tpu_custom_call.1
= control target key start
LH: loop header
LB: loop body
LE: loop exit
PB: predicated region body
PF: predicated region fallthrough
CT: control target
= control target key end

     0   :  { %7 = vsyncpa [#allocation3], 0  ;;  %s5366_s0 = inlined_call_operand.hbm [shape: f32[16,8192], index: 0, kind: input, shape index: {}]   ;;  %s5367_s1 = inlined_call_operand.hbm [shape: f32[16,8192], index: 1, kind: input, shape index: {}]   ;;  %s5368_s2 = inlined_call_operand.hbm [shape: f32[16,8192], index: 2, kind: output, shape index: {}]  }
   0x1   :  { %8 = vsyncpa [#allocation6], 0 }
   0x2   :  { %9 = vsyncpa [#allocation4], 0  ;;  %s2951_s9 = smov [#allocation2]   ;;  %s2879_s13 = scalar_lea.hbm %s5366_s0, 16384 }
   0x3   :  { %s15_s10 = sshll.u32 %s2951_s9, 4  ;;  %p2880_p0 = scmp.ne.s32.totalorder %s5366_s0, %s2879_s13  ;;  %s16_s10 = int_to_ptr.vmem [resolvable:$true] %s15_s10 }
   0x4   :  { %p2883_p1 = scmp.lt.u32.totalorder %s2879_s13, %s5366_s0 }
   0x6   :  { %p2885_p2 = pnand %p2883_p1, %p2880_p0 }
   0x8   :  { %2888 = shalt.err (!%p2885_p2)
}
   0x9   :  { %s2889_s18 = scalar_lea.vmem %s16_s10, 16384  ;;  %p2894_p4 = scmp.lt.s32.totalorder %s16_s10, %s16_s10 }
   0xa   :  { %p2890_p3 = scmp.ne.s32.totalorder %s16_s10, %s2889_s18  ;;  %p2895_p5 = scmp.lt.s32.totalorder %s2889_s18, %s2889_s18 }
   0xc   :  { %p2896_p6 = por %p2895_p5, %p2894_p4 }
   0xe   :  { %p2897_p7 = pnand %p2896_p6, %p2890_p3 }
  0x10   :  { %2900 = shalt.err (!%p2897_p7)
}
  0x11   :  { %s2952_s19 = smov 8192   ;;  %s2953_s20 = smov 512  }
  0x12   :  { %21 = dma.hbm_to_vmem [thread:$0]  %s5366_s0, 16384, %s16_s10, [#allocation3], %s2952_s19, %s2952_s19, %s2953_s20  }
  0x13   :  { %s2954_s23 = smov [#allocation5]   ;;  %s2901_s27 = scalar_lea.hbm %s5367_s1, 16384 }
  0x14   :  { %s27_s24 = sshll.u32 %s2954_s23, 4  ;;  %p2902_p8 = scmp.ne.s32.totalorder %s5367_s1, %s2901_s27  ;;  %s28_s24 = int_to_ptr.vmem [resolvable:$true] %s27_s24 }
  0x15   :  { %p2905_p9 = scmp.lt.u32.totalorder %s2901_s27, %s5367_s1 }
  0x17   :  { %p2907_p10 = pnand %p2905_p9, %p2902_p8 }
  0x19   :  { %2910 = shalt.err (!%p2907_p10)
}
  0x1a   :  { %s2911_s4 = scalar_lea.vmem %s28_s24, 16384  ;;  %p2916_p12 = scmp.lt.s32.totalorder %s28_s24, %s28_s24 }
  0x1b   :  { %p2912_p11 = scmp.ne.s32.totalorder %s28_s24, %s2911_s4  ;;  %p2917_p13 = scmp.lt.s32.totalorder %s2911_s4, %s2911_s4 }
  0x1d   :  { %p2918_p0 = por %p2917_p13, %p2916_p12 }
  0x1f   :  { %p2919_p1 = pnand %p2918_p0, %p2912_p11 }
  0x21   :  { %2922 = shalt.err (!%p2919_p1)
}
  0x22   :  { %33 = dma.hbm_to_vmem [thread:$0]  %s5367_s1, 16384, %s28_s24, [#allocation6], %s2952_s19, %s2952_s19, %s2953_s20  }
  0x23   :  { %2945 = dma.done.wait [#allocation3], 16384  }
  0x24   :  { %2946 = vsyncadd [#allocation3], 4294950912 }
  0x25   :  { %2947 = dma.done.wait [#allocation6], 16384  }
  0x26   :  { %2948 = vsyncadd [#allocation6], 4294950912  ;;  %v40_v0 = vld [vmem:[#allocation2] sm:$0xff]  ;;  %v41_v2 = vld [vmem:[#allocation2 + $0x8] sm:$0xff]  ;;  %s2955_s1 = smov [#allocation7]  }
  0x27   :  { %v168_v1 = vld [vmem:[#allocation5] sm:$0xff]  ;;  %v169_v4 = vld [vmem:[#allocation5 + $0x8] sm:$0xff]  ;;  %v42_v5 = vld [vmem:[#allocation2 + $0x10] sm:$0xff]  ;;  %s2477_s6 = sshll.u32 %s2955_s1, 4  ;;  %s2478_s6 = int_to_ptr.vmem [resolvable:$true] %s2477_s6 }
  0x28   :  { %v296_v3 = vsub.f32 %v40_v0, %v168_v1  ;;  %v170_v6 = vld [vmem:[#allocation5 + $0x10] sm:$0xff]  ;;  %v297_v7 = vsub.f32 %v41_v2, %v169_v4  ;;  %v43_v9 = vld [vmem:[#allocation2 + $0x18] sm:$0xff]  ;;  %v44_v16 = vld [vmem:[#allocation2 + $0x20] sm:$0xff]  ;;  %s2923_s7 = scalar_lea.vmem %s2478_s6, 16384  ;;  %p2928_p3 = scmp.lt.s32.totalorder %s2478_s6, %s2478_s6 }
  0x29   :  { %v298_v8 = vsub.f32 %v42_v5, %v170_v6  ;;  %v171_v10 = vld [vmem:[#allocation5 + $0x18] sm:$0xff]  ;;  %v172_v19 = vld [vmem:[#allocation5 + $0x20] sm:$0xff]  ;;  %v45_v20 = vld [vmem:[#allocation2 + $0x28] sm:$0xff]  ;;  %p2924_p2 = scmp.ne.s32.totalorder %s2478_s6, %s2923_s7  ;;  %p2929_p4 = scmp.lt.s32.totalorder %s2923_s7, %s2923_s7 }
  0x2a   :  { %v3001_v11 = vand.u32 2147483647, %v296_v3  ;;  %v3003_v12 = vand.u32 2147483647, %v297_v7  ;;  %v299_v14 = vsub.f32 %v43_v9, %v171_v10  ;;  %v173_v21 = vld [vmem:[#allocation5 + $0x28] sm:$0xff]  ;;  %v300_v27 = vsub.f32 %v44_v16, %v172_v19  ;;  %v46_v33 = vld [vmem:[#allocation2 + $0x30] sm:$0xff] }
  0x2b   :  { %v3005_v13 = vand.u32 2147483647, %v298_v8  ;;  %v301_v28 = vsub.f32 %v45_v20, %v173_v21  ;;  %v174_v37 = vld [vmem:[#allocation5 + $0x30] sm:$0xff]  ;;  %v47_v63 = vld [vmem:[#allocation2 + $0x38] sm:$0xff]  ;;  %v48_v21 = vld [vmem:[#allocation2 + $0x40] sm:$0xff]  ;;  %p2930_p5 = por %p2929_p4, %p2928_p3 }
  0x2c   :  { %v552_v15 = vmul.f32 0.5, %v3001_v11  ;;  %v553_v17 = vmul.f32 0.5, %v3003_v12  ;;  %v3010_v25 = vand.u32 2147483647, %v299_v14  ;;  %v3013_v30 = vadd.f32 7.917595, %v3001_v11 }
  0x2d   :  { %v554_v18 = vmul.f32 0.5, %v3005_v13  ;;  %v3016_v31 = vadd.f32 7.917595, %v3003_v12  ;;  %v3019_v39 = vand.u32 2147483647, %v300_v27  ;;  %vm2088_vm0 = vcmp.lt.f32.partialorder %v3001_v11, 10.0  ;;  %p2931_p6 = pnand %p2930_p5, %p2924_p2 }
  0x2e   :  { %v680_v22 = vadd.f32 1.0, %v552_v15  ;;  %v689_v23 = vadd.f32 1.0, %v553_v17  ;;  %v683_v26 = vmul.f32 -0.5, %v552_v15  ;;  %v692_v29 = vmul.f32 -0.5, %v553_v17  ;;  %v175_v4 = vld [vmem:[#allocation5 + $0x38] sm:$0xff]  ;;  %v178_v57 = vld [vmem:[#allocation5 + $0x50] sm:$0xff] }
  0x2f   :  { %v698_v24 = vadd.f32 1.0, %v554_v18  ;;  %v701_v32 = vmul.f32 -0.5, %v554_v18  ;;  %v686_v34 = vand.u32 2147483647, %v552_v15  ;;  %v695_v35 = vand.u32 2147483647, %v553_v17 }
  0x30   :  { %2623 = vlog2.f32 %v680_v22  ;;  %v555_v36 = vmul.f32 0.5, %v3010_v25  ;;  %v684_v38 = vadd.f32 1.0, %v683_v26  ;;  %v3021_v40 = vand.u32 2147483647, %v301_v28  ;;  %v176_v22 = vld [vmem:[#allocation5 + $0x40] sm:$0xff]  ;;  %v49_v28 = vld [vmem:[#allocation2 + $0x48] sm:$0xff] }
  0x31   :  { %2625 = vlog2.f32 %v689_v23  ;;  %v693_v41 = vadd.f32 1.0, %v692_v29  ;;  %v704_v42 = vand.u32 2147483647, %v554_v18  ;;  %vm2089_vm1 = vcmp.lt.f32.partialorder %v3003_v12, 10.0  ;;  %v177_v29 = vld [vmem:[#allocation5 + $0x48] sm:$0xff] }
  0x32   :  { %2627 = vlog2.f32 %v698_v24  ;;  %v707_v43 = vadd.f32 1.0, %v555_v36  ;;  %v710_v44 = vmul.f32 -0.5, %v555_v36  ;;  %v702_v45 = vadd.f32 1.0, %v701_v32 }
  0x33   :  { %v3026_v46 = vmul.f32 0.5, %v3019_v39  ;;  %v3029_v47 = vmul.f32 0.5, %v3021_v40  ;;  %v302_v48 = vsub.f32 %v46_v33, %v174_v37  ;;  %vm3031_vm2 = vcmp.lt.f32.partialorder %v686_v34, 0.0004427343 }
  0x34   :  { %vm3035_vm3 = vcmp.lt.f32.partialorder %v695_v35, 0.0004427343  ;;  %v2492_v51 = vadd.f32 7.917595, %v3005_v13  ;;  %2629 = vlog2.f32 %v707_v43  ;;  %v685_v52 = vmul.f32 %v684_v38, %v552_v15 }
  0x35   :  { %v713_v53 = vand.u32 2147483647, %v555_v36  ;;  %v716_v54 = vadd.f32 1.0, %v3026_v46  ;;  %v725_v55 = vadd.f32 1.0, %v3029_v47  ;;  %v694_v56 = vmul.f32 %v693_v41, %v553_v17 }
  0x36   :  { %vm3042_vm4 = vcmp.lt.f32.partialorder %v704_v42, 0.0004427343  ;;  %vm2090_vm5 = vcmp.lt.f32.partialorder %v3005_v13, 10.0  ;;  %v711_v58 = vadd.f32 1.0, %v710_v44  ;;  %v703_v60 = vmul.f32 %v702_v45, %v554_v18 }
  0x37   :  { %v3048_v61 = vadd.f32 7.917595, %v3010_v25  ;;  %2631 = vlog2.f32 %v716_v54  ;;  %v3050_v62 = vand.u32 2147483647, %v302_v48  ;;  %v719_v2 = vmul.f32 -0.5, %v3026_v46 }
  0x38   :  { %v3054_v3 = vadd.f32 7.917595, %v3019_v39  ;;  %2633 = vlog2.f32 %v725_v55  ;;  %vm3056_vm6 = vcmp.lt.f32.partialorder %v713_v53, 0.0004427343  ;;  %vm2091_vm7 = vcmp.lt.f32.partialorder %v3010_v25, 10.0 }
  0x39   :  { %v728_v8 = vmul.f32 -0.5, %v3029_v47  ;;  %v3063_v9 = vmul.f32 0.5, %v3050_v62  ;;  %v712_v15 = vmul.f32 %v711_v58, %v555_v36  ;;  %v722_v16 = vand.u32 2147483647, %v3026_v46 }
  0x3a   :  { %v2624_v59 = vpop.eup %2623  ;;  %v731_v19 = vand.u32 2147483647, %v3029_v47  ;;  %v720_v26 = vadd.f32 1.0, %v719_v2  ;;  %v303_v27 = vsub.f32 %v47_v63, %v175_v4  ;;  %v304_v41 = vsub.f32 %v48_v21, %v176_v22  ;;  %v180_v22 = vld [vmem:[#allocation5 + $0x60] sm:$0xff] }
  0x3b   :  { %v2626_v0 = vpop.eup %2625  ;;  %v682_v1 = vmul.f32 0.6931472, %v2624_v59  ;;  %v734_v20 = vadd.f32 1.0, %v3063_v9  ;;  %v729_v34 = vadd.f32 1.0, %v728_v8  ;;  %v737_v37 = vmul.f32 -0.5, %v3063_v9 }
  0x3c   :  { %v2628_v5 = vpop.eup %2627  ;;  %v691_v6 = vmul.f32 0.6931472, %v2626_v0  ;;  %v3081_v38 = vand.u32 2147483647, %v303_v27  ;;  %v305_v43 = vsub.f32 %v49_v28, %v177_v29  ;;  %v721_v44 = vmul.f32 %v720_v26, %v3026_v46  ;;  %v51_v0 = vld [vmem:[#allocation2 + $0x58] sm:$0xff]  ;;  %v56_v29 = vld [vmem:[#allocation2 + $0x80] sm:$0xff] }
  0x3d   :  { %v688_v10 = vsel %vm3031_vm2, %v685_v52, %v682_v1  ;;  %v700_v14 = vmul.f32 0.6931472, %v2628_v5  ;;  %2635 = vlog2.f32 %v734_v20  ;;  %vm3087_vm8 = vcmp.lt.f32.partialorder %v722_v16, 0.0004427343  ;;  %v179_v1 = vld [vmem:[#allocation5 + $0x58] sm:$0xff]  ;;  %v52_v20 = vld [vmem:[#allocation2 + $0x60] sm:$0xff] }
  0x3e   :  { %v1832_v17 = vmul.f32 10.0, %v688_v10  ;;  %v697_v18 = vsel %vm3035_vm3, %v694_v56, %v691_v6  ;;  %v2630_v35 = vpop.eup %2629  ;;  %v3092_v12 = vmul.f32 0.5, %v3081_v38  ;;  %v730_v49 = vmul.f32 %v729_v34, %v3029_v47 }
  0x3f   :  { %v1833_v23 = vmul.f32 10.0, %v697_v18  ;;  %v706_v24 = vsel %vm3042_vm4, %v703_v60, %v700_v14  ;;  %v709_v11 = vmul.f32 0.6931472, %v2630_v35  ;;  %vm3099_vm9 = vcmp.lt.f32.partialorder %v731_v19, 0.0004427343 }
  0x40   :  { %v2216_v32 = vsel %vm2088_vm0, %v1832_v17, %v3013_v30  ;;  %v1834_v33 = vmul.f32 10.0, %v706_v24  ;;  %v2495_v30 = vadd.f32 7.917595, %v3021_v40  ;;  %v740_v46 = vand.u32 2147483647, %v3063_v9 }
  0x41   :  { %2344 = vst [vmem:[#allocation7] sm:$0xff] %v2216_v32  ;;  %v2217_v36 = vsel %vm2089_vm1, %v1833_v23, %v3016_v31  ;;  %v3094_v31 = vand.u32 2147483647, %v304_v41  ;;  %v2632_v48 = vpop.eup %2631  ;;  %v715_v13 = vsel %vm3056_vm6, %v712_v15, %v709_v11  ;;  %v738_v55 = vadd.f32 1.0, %v737_v37  ;;  %v181_v11 = vld [vmem:[#allocation5 + $0x68] sm:$0xff] }
  0x42   :  { %2345 = vst [vmem:[#allocation7 + $0x8] sm:$0xff] %v2217_v36  ;;  %v2218_v42 = vsel %vm2090_vm5, %v1834_v33, %v2492_v51  ;;  %v50_v51 = vld [vmem:[#allocation2 + $0x50] sm:$0xff]  ;;  %v2634_v52 = vpop.eup %2633  ;;  %v1835_v53 = vmul.f32 10.0, %v715_v13  ;;  %v718_v54 = vmul.f32 0.6931472, %v2632_v48  ;;  %v743_v56 = vadd.f32 1.0, %v3092_v12 }
  0x43   :  { %2346 = vst [vmem:[#allocation7 + $0x10] sm:$0xff] %v2218_v42  ;;  %vm2092_vm10 = vcmp.lt.f32.partialorder %v3019_v39, 10.0  ;;  %v727_v58 = vmul.f32 0.6931472, %v2634_v52  ;;  %v560_v59 = vmul.f32 0.5, %v3094_v31  ;;  %vm2093_vm11 = vcmp.lt.f32.partialorder %v3021_v40, 10.0 }
  0x44   :  { %v3107_v47 = vand.u32 2147483647, %v305_v43  ;;  %v2219_v60 = vsel %vm2091_vm7, %v1835_v53, %v3048_v61  ;;  %v724_v63 = vsel %vm3087_vm8, %v721_v44, %v718_v54  ;;  %2637 = vlog2.f32 %v743_v56  ;;  %v53_v42 = vld [vmem:[#allocation2 + $0x68] sm:$0xff] }
  0x45   :  { %2347 = vst [vmem:[#allocation7 + $0x18] sm:$0xff] %v2219_v60  ;;  %v1836_v2 = vmul.f32 10.0, %v724_v63  ;;  %v733_v4 = vsel %vm3099_vm9, %v730_v49, %v727_v58  ;;  %v746_v5 = vmul.f32 -0.5, %v3092_v12  ;;  %v752_v6 = vadd.f32 1.0, %v560_v59  ;;  %v54_v58 = vld [vmem:[#allocation2 + $0x70] sm:$0xff] }
  0x46   :  { %v1837_v7 = vmul.f32 10.0, %v733_v4  ;;  %v739_v25 = vmul.f32 %v738_v55, %v3063_v9  ;;  %vm3119_vm12 = vcmp.lt.f32.partialorder %v740_v46, 0.0004427343  ;;  %v306_v8 = vsub.f32 %v50_v51, %v178_v57 }
  0x47   :  { %v2636_v10 = vpop.eup %2635  ;;  %v2220_v14 = vsel %vm2092_vm10, %v1836_v2, %v3054_v3  ;;  %2639 = vlog2.f32 %v752_v6  ;;  %v561_v15 = vmul.f32 0.5, %v3107_v47  ;;  %v307_v16 = vsub.f32 %v51_v0, %v179_v1 }
  0x48   :  { %2348 = vst [vmem:[#allocation7 + $0x20] sm:$0xff] %v2220_v14  ;;  %v2221_v17 = vsel %vm2093_vm11, %v1837_v7, %v2495_v30  ;;  %v736_v18 = vmul.f32 0.6931472, %v2636_v10  ;;  %v749_v9 = vand.u32 2147483647, %v3092_v12  ;;  %v755_v19 = vmul.f32 -0.5, %v560_v59 }
  0x49   :  { %2349 = vst [vmem:[#allocation7 + $0x28] sm:$0xff] %v2221_v17  ;;  %v2496_v21 = vadd.f32 7.917595, %v3050_v62  ;;  %vm2094_vm13 = vcmp.lt.f32.partialorder %v3050_v62, 10.0  ;;  %v747_v39 = vadd.f32 1.0, %v746_v5  ;;  %v761_v3 = vadd.f32 1.0, %v561_v15 }
  0x4a   :  { %v742_v23 = vsel %vm3119_vm12, %v739_v25, %v736_v18  ;;  %v2497_v24 = vadd.f32 7.917595, %v3081_v38  ;;  %v758_v40 = vand.u32 2147483647, %v560_v59  ;;  %v3135_v26 = vand.u32 2147483647, %v306_v8 }
  0x4b   :  { %v1838_v27 = vmul.f32 10.0, %v742_v23  ;;  %vm2095_vm14 = vcmp.lt.f32.partialorder %v3081_v38, 10.0  ;;  %2641 = vlog2.f32 %v761_v3  ;;  %v764_v28 = vmul.f32 -0.5, %v561_v15 }
  0x4c   :  { %vm3138_vm15 = vcmp.lt.f32.partialorder %v749_v9, 0.0004427343  ;;  %v756_v32 = vadd.f32 1.0, %v755_v19  ;;  %v3143_v33 = vmul.f32 0.5, %v3135_v26  ;;  %v3145_v34 = vand.u32 2147483647, %v307_v16 }
  0x4d   :  { %v2222_v35 = vsel %vm2094_vm13, %v1838_v27, %v2496_v21  ;;  %v748_v36 = vmul.f32 %v747_v39, %v3092_v12  ;;  %v2498_v37 = vadd.f32 7.917595, %v3094_v31  ;;  %v308_v41 = vsub.f32 %v52_v20, %v180_v22  ;;  %v55_v9 = vld [vmem:[#allocation2 + $0x78] sm:$0xff] }
  0x4e   :  { %v2638_v30 = vpop.eup %2637  ;;  %2350 = vst [vmem:[#allocation7 + $0x30] sm:$0xff] %v2222_v35  ;;  %vm3151_vm0 = vcmp.lt.f32.partialorder %v758_v40, 0.0004427343  ;;  %v767_v44 = vand.u32 2147483647, %v561_v15  ;;  %v770_v45 = vadd.f32 1.0, %v3143_v33  ;;  %v757_v49 = vmul.f32 %v756_v32, %v560_v59 }
  0x4f   :  { %v3157_v48 = vmul.f32 0.5, %v3145_v34  ;;  %v745_v62 = vmul.f32 0.6931472, %v2638_v30  ;;  %vm2096_vm1 = vcmp.lt.f32.partialorder %v3094_v31, 10.0  ;;  %v765_v12 = vadd.f32 1.0, %v764_v28  ;;  %v182_v59 = vld [vmem:[#allocation5 + $0x70] sm:$0xff] }
  0x50   :  { %v2499_v13 = vadd.f32 7.917595, %v3107_v47  ;;  %2643 = vlog2.f32 %v770_v45  ;;  %v309_v46 = vsub.f32 %v53_v42, %v181_v11  ;;  %vm2097_vm2 = vcmp.lt.f32.partialorder %v3107_v47, 10.0  ;;  %v183_v19 = vld [vmem:[#allocation5 + $0x78] sm:$0xff]  ;;  %v184_v32 = vld [vmem:[#allocation5 + $0x80] sm:$0xff] }
  0x51   :  { %v779_v50 = vadd.f32 1.0, %v3157_v48  ;;  %v2640_v51 = vpop.eup %2639  ;;  %v751_v52 = vsel %vm3138_vm15, %v748_v36, %v745_v62  ;;  %v773_v53 = vmul.f32 -0.5, %v3143_v33  ;;  %v3166_v54 = vand.u32 2147483647, %v308_v41 }
  0x52   :  { %v1839_v55 = vmul.f32 10.0, %v751_v52  ;;  %v754_v56 = vmul.f32 0.6931472, %v2640_v51  ;;  %v782_v57 = vmul.f32 -0.5, %v3157_v48  ;;  %v766_v60 = vmul.f32 %v765_v12, %v561_v15  ;;  %v57_v51 = vld [vmem:[#allocation2 + $0x88] sm:$0xff] }
  0x53   :  { %2645 = vlog2.f32 %v779_v50  ;;  %vm3169_vm3 = vcmp.lt.f32.partialorder %v767_v44, 0.0004427343  ;;  %v2500_v0 = vadd.f32 7.917595, %v3135_v26  ;;  %v3175_v1 = vmul.f32 0.5, %v3166_v54  ;;  %v185_v52 = vld [vmem:[#allocation5 + $0x88] sm:$0xff] }
  0x54   :  { %v2223_v2 = vsel %vm2095_vm14, %v1839_v55, %v2497_v24  ;;  %v760_v4 = vsel %vm3151_vm0, %v757_v49, %v754_v56  ;;  %v776_v5 = vand.u32 2147483647, %v3143_v33  ;;  %v3182_v6 = vand.u32 2147483647, %v309_v46 }
  0x55   :  { %v2642_v7 = vpop.eup %2641  ;;  %2351 = vst [vmem:[#allocation7 + $0x38] sm:$0xff] %v2223_v2  ;;  %v1840_v25 = vmul.f32 10.0, %v760_v4  ;;  %v774_v61 = vadd.f32 1.0, %v773_v53  ;;  %v788_v8 = vadd.f32 1.0, %v3175_v1  ;;  %v310_v10 = vsub.f32 %v54_v58, %v182_v59  ;;  %v186_v2 = vld [vmem:[#allocation5 + $0x90] sm:$0xff] }
  0x56   :  { %v763_v14 = vmul.f32 0.6931472, %v2642_v7  ;;  %v783_v15 = vadd.f32 1.0, %v782_v57  ;;  %v791_v16 = vmul.f32 -0.5, %v3175_v1  ;;  %v3187_v38 = vmul.f32 0.5, %v3182_v6 }
  0x57   :  { %v2224_v17 = vsel %vm2096_vm1, %v1840_v25, %v2498_v37  ;;  %vm2098_vm4 = vcmp.lt.f32.partialorder %v3135_v26, 10.0  ;;  %v2501_v18 = vadd.f32 7.917595, %v3145_v34  ;;  %2647 = vlog2.f32 %v788_v8 }
  0x58   :  { %2352 = vst [vmem:[#allocation7 + $0x40] sm:$0xff] %v2224_v17  ;;  %v769_v20 = vsel %vm3169_vm3, %v766_v60, %v763_v14  ;;  %v785_v21 = vand.u32 2147483647, %v3157_v48  ;;  %vm2099_vm5 = vcmp.lt.f32.partialorder %v3145_v34, 10.0  ;;  %v797_v39 = vadd.f32 1.0, %v3187_v38 }
  0x59   :  { %v1841_v3 = vmul.f32 10.0, %v769_v20  ;;  %v775_v31 = vmul.f32 %v774_v61, %v3143_v33  ;;  %vm3199_vm6 = vcmp.lt.f32.partialorder %v776_v5, 0.0004427343  ;;  %v3203_v23 = vand.u32 2147483647, %v310_v10 }
  0x5a   :  { %v2644_v24 = vpop.eup %2643  ;;  %v784_v40 = vmul.f32 %v783_v15, %v3157_v48  ;;  %v792_v27 = vadd.f32 1.0, %v791_v16  ;;  %2649 = vlog2.f32 %v797_v39  ;;  %v311_v28 = vsub.f32 %v55_v9, %v183_v19  ;;  %v187_v9 = vld [vmem:[#allocation5 + $0x98] sm:$0xff] }
  0x5b   :  { %v2225_v35 = vsel %vm2097_vm2, %v1841_v3, %v2499_v13  ;;  %v772_v36 = vmul.f32 0.6931472, %v2644_v24  ;;  %v800_v33 = vmul.f32 -0.5, %v3187_v38  ;;  %v3210_v37 = vmul.f32 0.5, %v3203_v23 }
  0x5c   :  { %2353 = vst [vmem:[#allocation7 + $0x48] sm:$0xff] %v2225_v35  ;;  %vm3212_vm7 = vcmp.lt.f32.partialorder %v785_v21, 0.0004427343  ;;  %v794_v11 = vand.u32 2147483647, %v3175_v1  ;;  %v312_v45 = vsub.f32 %v56_v29, %v184_v32  ;;  %v793_v62 = vmul.f32 %v792_v27, %v3175_v1  ;;  %v58_v1 = vld [vmem:[#allocation2 + $0x90] sm:$0xff] }
  0x5d   :  { %v2646_v41 = vpop.eup %2645  ;;  %v3217_v30 = vand.u32 2147483647, %v311_v28  ;;  %v778_v47 = vsel %vm3199_vm6, %v775_v31, %v772_v36  ;;  %v806_v44 = vadd.f32 1.0, %v3210_v37  ;;  %v2502_v12 = vadd.f32 7.917595, %v3166_v54 }
  0x5e   :  { %v781_v43 = vmul.f32 0.6931472, %v2646_v41  ;;  %v1842_v48 = vmul.f32 10.0, %v778_v47  ;;  %v801_v50 = vadd.f32 1.0, %v800_v33  ;;  %v803_v46 = vand.u32 2147483647, %v3187_v38 }
  0x5f   :  { %v3225_v13 = vmul.f32 0.5, %v3217_v30  ;;  %2651 = vlog2.f32 %v806_v44  ;;  %v809_v56 = vmul.f32 -0.5, %v3210_v37  ;;  %vm3234_vm8 = vcmp.lt.f32.partialorder %v794_v11, 0.0004427343  ;;  %v188_v41 = vld [vmem:[#allocation5 + $0xa0] sm:$0xff] }
  0x60   :  { %v787_v49 = vsel %vm3212_vm7, %v784_v40, %v781_v43  ;;  %v2226_v53 = vsel %vm2098_vm4, %v1842_v48, %v2500_v0  ;;  %vm2100_vm9 = vcmp.lt.f32.partialorder %v3166_v54, 10.0  ;;  %v3239_v60 = vand.u32 2147483647, %v312_v45 }
  0x61   :  { %v1843_v55 = vmul.f32 10.0, %v787_v49  ;;  %v815_v57 = vadd.f32 1.0, %v3225_v13  ;;  %v2648_v58 = vpop.eup %2647  ;;  %2354 = vst [vmem:[#allocation7 + $0x50] sm:$0xff] %v2226_v53  ;;  %v313_v0 = vsub.f32 %v57_v51, %v185_v52  ;;  %v802_v4 = vmul.f32 %v801_v50, %v3187_v38  ;;  %v189_v51 = vld [vmem:[#allocation5 + $0xa8] sm:$0xff] }
  0x62   :  { %v790_v26 = vmul.f32 0.6931472, %v2648_v58  ;;  %vm3244_vm10 = vcmp.lt.f32.partialorder %v803_v46, 0.0004427343  ;;  %v818_v7 = vmul.f32 -0.5, %v3225_v13  ;;  %v3250_v25 = vmul.f32 0.5, %v3239_v60 }
  0x63   :  { %v2227_v63 = vsel %vm2099_vm5, %v1843_v55, %v2501_v18  ;;  %2653 = vlog2.f32 %v815_v57  ;;  %v810_v8 = vadd.f32 1.0, %v809_v56  ;;  %v812_v10 = vand.u32 2147483647, %v3210_v37  ;;  %v59_v18 = vld [vmem:[#allocation2 + $0x98] sm:$0xff]  ;;  %v61_v46 = vld [vmem:[#allocation2 + $0xa8] sm:$0xff] }
  0x64   :  { %2355 = vst [vmem:[#allocation7 + $0x58] sm:$0xff] %v2227_v63  ;;  %v2650_v61 = vpop.eup %2649  ;;  %v796_v34 = vsel %vm3234_vm8, %v793_v62, %v790_v26  ;;  %v3255_v14 = vand.u32 2147483647, %v313_v0  ;;  %v824_v38 = vadd.f32 1.0, %v3250_v25  ;;  %v314_v17 = vsub.f32 %v58_v1, %v186_v2 }
  0x65   :  { %v1844_v15 = vmul.f32 10.0, %v796_v34  ;;  %v799_v16 = vmul.f32 0.6931472, %v2650_v61  ;;  %v2503_v19 = vadd.f32 7.917595, %v3182_v6  ;;  %vm2101_vm11 = vcmp.lt.f32.partialorder %v3182_v6, 10.0 }
  0x66   :  { %v821_v20 = vand.u32 2147483647, %v3225_v13  ;;  %v3262_v21 = vmul.f32 0.5, %v3255_v14  ;;  %v819_v31 = vadd.f32 1.0, %v818_v7  ;;  %2655 = vlog2.f32 %v824_v38  ;;  %v190_v34 = vld [vmem:[#allocation5 + $0xb0] sm:$0xff] }
  0x67   :  { %v2228_v39 = vsel %vm2100_vm9, %v1844_v15, %v2502_v12  ;;  %v805_v3 = vsel %vm3244_vm10, %v802_v4, %v799_v16  ;;  %v811_v24 = vmul.f32 %v810_v8, %v3210_v37  ;;  %v827_v40 = vmul.f32 -0.5, %v3250_v25  ;;  %v60_v37 = vld [vmem:[#allocation2 + $0xa0] sm:$0xff] }
  0x68   :  { %2356 = vst [vmem:[#allocation7 + $0x60] sm:$0xff] %v2228_v39  ;;  %v1845_v22 = vmul.f32 10.0, %v805_v3  ;;  %v833_v27 = vadd.f32 1.0, %v3262_v21  ;;  %vm3271_vm12 = vcmp.lt.f32.partialorder %v812_v10, 0.0004427343  ;;  %v315_v35 = vsub.f32 %v59_v18, %v187_v9  ;;  %v63_v3 = vld [vmem:[#allocation2 + $0xb8] sm:$0xff] }
  0x69   :  { %v2652_v28 = vpop.eup %2651  ;;  %v2504_v54 = vadd.f32 7.917595, %v3203_v23  ;;  %v3276_v32 = vand.u32 2147483647, %v314_v17  ;;  %vm2102_vm13 = vcmp.lt.f32.partialorder %v3203_v23, 10.0  ;;  %v820_v42 = vmul.f32 %v819_v31, %v3225_v13  ;;  %v191_v31 = vld [vmem:[#allocation5 + $0xb8] sm:$0xff] }
  0x6a   :  { %v2229_v36 = vsel %vm2101_vm11, %v1845_v22, %v2503_v19  ;;  %v808_v33 = vmul.f32 0.6931472, %v2652_v28  ;;  %2657 = vlog2.f32 %v833_v27  ;;  %vm3282_vm14 = vcmp.lt.f32.partialorder %v821_v20, 0.0004427343 }
  0x6b   :  { %2357 = vst [vmem:[#allocation7 + $0x68] sm:$0xff] %v2229_v36  ;;  %v836_v47 = vmul.f32 -0.5, %v3262_v21  ;;  %v3288_v43 = vmul.f32 0.5, %v3276_v32  ;;  %v828_v45 = vadd.f32 1.0, %v827_v40  ;;  %v830_v48 = vand.u32 2147483647, %v3250_v25 }
  0x6c   :  { %v814_v44 = vsel %vm3271_vm12, %v811_v24, %v808_v33  ;;  %v3293_v62 = vand.u32 2147483647, %v315_v35  ;;  %v316_v50 = vsub.f32 %v60_v37, %v188_v41  ;;  %v2505_v52 = vadd.f32 7.917595, %v3217_v30 }
  0x6d   :  { %v2654_v6 = vpop.eup %2653  ;;  %v1846_v12 = vmul.f32 10.0, %v814_v44  ;;  %v842_v49 = vadd.f32 1.0, %v3288_v43  ;;  %vm2103_vm15 = vcmp.lt.f32.partialorder %v3217_v30, 10.0  ;;  %v839_v53 = vand.u32 2147483647, %v3262_v21  ;;  %v192_v44 = vld [vmem:[#allocation5 + $0xc0] sm:$0xff] }
  0x6e   :  { %v817_v13 = vmul.f32 0.6931472, %v2654_v6  ;;  %v3300_v55 = vmul.f32 0.5, %v3293_v62  ;;  %v837_v58 = vadd.f32 1.0, %v836_v47  ;;  %v829_v63 = vmul.f32 %v828_v45, %v3250_v25  ;;  %v62_v25 = vld [vmem:[#allocation2 + $0xb0] sm:$0xff] }
  0x6f   :  { %v2230_v56 = vsel %vm2102_vm13, %v1846_v12, %v2504_v54  ;;  %2659 = vlog2.f32 %v842_v49  ;;  %v845_v26 = vmul.f32 -0.5, %v3288_v43  ;;  %vm3309_vm0 = vcmp.lt.f32.partialorder %v830_v48, 0.0004427343 }
  0x70   :  { %v823_v57 = vsel %vm3282_vm14, %v820_v42, %v817_v13  ;;  %2358 = vst [vmem:[#allocation7 + $0x70] sm:$0xff] %v2230_v56  ;;  %v851_v0 = vadd.f32 1.0, %v3300_v55  ;;  %v2656_v1 = vpop.eup %2655  ;;  %v2506_v23 = vadd.f32 7.917595, %v3239_v60  ;;  %v3314_v4 = vand.u32 2147483647, %v316_v50 }
  0x71   :  { %v1847_v59 = vmul.f32 10.0, %v823_v57  ;;  %v317_v5 = vsub.f32 %v61_v46, %v189_v51  ;;  %v826_v61 = vmul.f32 0.6931472, %v2656_v1  ;;  %vm2104_vm1 = vcmp.lt.f32.partialorder %v3239_v60, 10.0  ;;  %v65_v57 = vld [vmem:[#allocation2 + $0xc8] sm:$0xff] }
  0x72   :  { %2661 = vlog2.f32 %v851_v0  ;;  %v838_v8 = vmul.f32 %v837_v58, %v3262_v21  ;;  %vm3320_vm2 = vcmp.lt.f32.partialorder %v839_v53, 0.0004427343  ;;  %v854_v15 = vmul.f32 -0.5, %v3300_v55  ;;  %v193_v58 = vld [vmem:[#allocation5 + $0xc8] sm:$0xff] }
  0x73   :  { %v2231_v7 = vsel %vm2103_vm15, %v1847_v59, %v2505_v52  ;;  %v3326_v16 = vmul.f32 0.5, %v3314_v4  ;;  %v832_v38 = vsel %vm3309_vm0, %v829_v63, %v826_v61  ;;  %v846_v17 = vadd.f32 1.0, %v845_v26 }
  0x74   :  { %2359 = vst [vmem:[#allocation7 + $0x78] sm:$0xff] %v2231_v7  ;;  %v2658_v30 = vpop.eup %2657  ;;  %v848_v18 = vand.u32 2147483647, %v3288_v43  ;;  %v3331_v9 = vand.u32 2147483647, %v317_v5  ;;  %v1848_v19 = vmul.f32 10.0, %v832_v38  ;;  %v318_v39 = vsub.f32 %v62_v25, %v190_v34 }
  0x75   :  { %v835_v20 = vmul.f32 0.6931472, %v2658_v30  ;;  %v860_v21 = vadd.f32 1.0, %v3326_v16  ;;  %v2507_v22 = vadd.f32 7.917595, %v3255_v14  ;;  %vm2105_vm3 = vcmp.lt.f32.partialorder %v3255_v14, 10.0 }
  0x76   :  { %v857_v24 = vand.u32 2147483647, %v3300_v55  ;;  %v3338_v40 = vmul.f32 0.5, %v3331_v9  ;;  %v2232_v27 = vsel %vm2104_vm1, %v1848_v19, %v2506_v23  ;;  %v855_v29 = vadd.f32 1.0, %v854_v15  ;;  %v194_v38 = vld [vmem:[#allocation5 + $0xd0] sm:$0xff] }
  0x77   :  { %v841_v28 = vsel %vm3320_vm2, %v838_v8, %v835_v20  ;;  %2663 = vlog2.f32 %v860_v21  ;;  %2360 = vst [vmem:[#allocation7 + $0x80] sm:$0xff] %v2232_v27  ;;  %v847_v35 = vmul.f32 %v846_v17, %v3288_v43  ;;  %v863_v36 = vmul.f32 -0.5, %v3326_v16  ;;  %v64_v43 = vld [vmem:[#allocation2 + $0xc0] sm:$0xff] }
  0x78   :  { %v1849_v54 = vmul.f32 10.0, %v841_v28  ;;  %v869_v33 = vadd.f32 1.0, %v3338_v40  ;;  %vm3347_vm4 = vcmp.lt.f32.partialorder %v848_v18, 0.0004427343  ;;  %v2508_v60 = vadd.f32 7.917595, %v3276_v32 }
  0x79   :  { %v2660_v37 = vpop.eup %2659  ;;  %v3352_v42 = vand.u32 2147483647, %v318_v39  ;;  %v319_v11 = vsub.f32 %v63_v3, %v191_v31  ;;  %vm2106_vm5 = vcmp.lt.f32.partialorder %v3276_v32, 10.0  ;;  %v856_v45 = vmul.f32 %v855_v29, %v3300_v55  ;;  %v67_v28 = vld [vmem:[#allocation2 + $0xd8] sm:$0xff] }
  0x7a   :  { %v2233_v47 = vsel %vm2105_vm3, %v1849_v54, %v2507_v22  ;;  %v844_v6 = vmul.f32 0.6931472, %v2660_v37  ;;  %2665 = vlog2.f32 %v869_v33  ;;  %vm3358_vm6 = vcmp.lt.f32.partialorder %v857_v24, 0.0004427343  ;;  %v195_v29 = vld [vmem:[#allocation5 + $0xd8] sm:$0xff] }
  0x7b   :  { %2361 = vst [vmem:[#allocation7 + $0x88] sm:$0xff] %v2233_v47  ;;  %v872_v12 = vmul.f32 -0.5, %v3338_v40  ;;  %v3364_v13 = vmul.f32 0.5, %v3352_v42  ;;  %v864_v50 = vadd.f32 1.0, %v863_v36  ;;  %v866_v46 = vand.u32 2147483647, %v3326_v16 }
  0x7c   :  { %v2662_v14 = vpop.eup %2661  ;;  %v850_v49 = vsel %vm3347_vm4, %v847_v35, %v844_v6  ;;  %v3369_v51 = vand.u32 2147483647, %v319_v11  ;;  %v320_v56 = vsub.f32 %v64_v43, %v192_v44  ;;  %v2509_v59 = vadd.f32 7.917595, %v3293_v62 }
  0x7d   :  { %v1850_v52 = vmul.f32 10.0, %v850_v49  ;;  %v853_v53 = vmul.f32 0.6931472, %v2662_v14  ;;  %v878_v55 = vadd.f32 1.0, %v3364_v13  ;;  %vm2107_vm7 = vcmp.lt.f32.partialorder %v3293_v62, 10.0  ;;  %v196_v49 = vld [vmem:[#allocation5 + $0xe0] sm:$0xff] }
  0x7e   :  { %v875_v63 = vand.u32 2147483647, %v3338_v40  ;;  %v3376_v26 = vmul.f32 0.5, %v3369_v51  ;;  %v873_v2 = vadd.f32 1.0, %v872_v12  ;;  %v865_v5 = vmul.f32 %v864_v50, %v3326_v16  ;;  %v66_v16 = vld [vmem:[#allocation2 + $0xd0] sm:$0xff] }
  0x7f   :  { %v2234_v0 = vsel %vm2106_vm5, %v1850_v52, %v2508_v60  ;;  %v859_v1 = vsel %vm3358_vm6, %v856_v45, %v853_v53  ;;  %2667 = vlog2.f32 %v878_v55  ;;  %v881_v7 = vmul.f32 -0.5, %v3364_v13 }
  0x80   :  { %2362 = vst [vmem:[#allocation7 + $0x90] sm:$0xff] %v2234_v0  ;;  %v1851_v23 = vmul.f32 10.0, %v859_v1  ;;  %v887_v61 = vadd.f32 1.0, %v3376_v26  ;;  %vm3385_vm8 = vcmp.lt.f32.partialorder %v866_v46, 0.0004427343  ;;  %v321_v10 = vsub.f32 %v65_v57, %v193_v58  ;;  %v69_v1 = vld [vmem:[#allocation2 + $0xe8] sm:$0xff] }
  0x81   :  { %v2664_v25 = vpop.eup %2663  ;;  %v2510_v32 = vadd.f32 7.917595, %v3314_v4  ;;  %v3390_v8 = vand.u32 2147483647, %v320_v56  ;;  %vm2108_vm9 = vcmp.lt.f32.partialorder %v3314_v4, 10.0  ;;  %v874_v17 = vmul.f32 %v873_v2, %v3338_v40  ;;  %v197_v2 = vld [vmem:[#allocation5 + $0xe8] sm:$0xff] }
  0x82   :  { %v2235_v15 = vsel %vm2107_vm7, %v1851_v23, %v2509_v59  ;;  %v862_v30 = vmul.f32 0.6931472, %v2664_v25  ;;  %2669 = vlog2.f32 %v887_v61  ;;  %vm3396_vm10 = vcmp.lt.f32.partialorder %v875_v63, 0.0004427343 }
  0x83   :  { %2363 = vst [vmem:[#allocation7 + $0x98] sm:$0xff] %v2235_v15  ;;  %v890_v19 = vmul.f32 -0.5, %v3376_v26  ;;  %v3402_v20 = vmul.f32 0.5, %v3390_v8  ;;  %v882_v39 = vadd.f32 1.0, %v881_v7  ;;  %v884_v3 = vand.u32 2147483647, %v3364_v13 }
  0x84   :  { %v2666_v62 = vpop.eup %2665  ;;  %v868_v21 = vsel %vm3385_vm8, %v865_v5, %v862_v30  ;;  %v3407_v31 = vand.u32 2147483647, %v321_v10  ;;  %v322_v27 = vsub.f32 %v66_v16, %v194_v38  ;;  %v2511_v54 = vadd.f32 7.917595, %v3331_v9 }
  0x85   :  { %v1852_v22 = vmul.f32 10.0, %v868_v21  ;;  %v871_v24 = vmul.f32 0.6931472, %v2666_v62  ;;  %v896_v40 = vadd.f32 1.0, %v3402_v20  ;;  %vm2109_vm11 = vcmp.lt.f32.partialorder %v3331_v9, 10.0  ;;  %v198_v21 = vld [vmem:[#allocation5 + $0xf0] sm:$0xff] }
  0x86   :  { %v893_v35 = vand.u32 2147483647, %v3376_v26  ;;  %v3414_v36 = vmul.f32 0.5, %v3407_v31  ;;  %v891_v41 = vadd.f32 1.0, %v890_v19  ;;  %v883_v11 = vmul.f32 %v882_v39, %v3364_v13  ;;  %v68_v13 = vld [vmem:[#allocation2 + $0xe0] sm:$0xff] }
  0x87   :  { %v2236_v33 = vsel %vm2108_vm9, %v1852_v22, %v2510_v32  ;;  %v877_v37 = vsel %vm3396_vm10, %v874_v17, %v871_v24  ;;  %2671 = vlog2.f32 %v896_v40  ;;  %v899_v47 = vmul.f32 -0.5, %v3402_v20 }
  0x88   :  { %2364 = vst [vmem:[#allocation7 + $0xa0] sm:$0xff] %v2236_v33  ;;  %v1853_v60 = vmul.f32 10.0, %v877_v37  ;;  %v905_v6 = vadd.f32 1.0, %v3414_v36  ;;  %vm3423_vm12 = vcmp.lt.f32.partialorder %v884_v3, 0.0004427343  ;;  %v323_v48 = vsub.f32 %v67_v28, %v195_v29  ;;  %v71_v37 = vld [vmem:[#allocation2 + $0xf8] sm:$0xff] }
  0x89   :  { %v2668_v43 = vpop.eup %2667  ;;  %v2512_v4 = vadd.f32 7.917595, %v3352_v42  ;;  %v3428_v45 = vand.u32 2147483647, %v322_v27  ;;  %vm2110_vm13 = vcmp.lt.f32.partialorder %v3352_v42, 10.0  ;;  %v892_v50 = vmul.f32 %v891_v41, %v3376_v26  ;;  %v199_v41 = vld [vmem:[#allocation5 + $0xf8] sm:$0xff] }
  0x8a   :  { %v2237_v12 = vsel %vm2109_vm11, %v1853_v60, %v2511_v54  ;;  %v880_v14 = vmul.f32 0.6931472, %v2668_v43  ;;  %2673 = vlog2.f32 %v905_v6  ;;  %vm3434_vm14 = vcmp.lt.f32.partialorder %v893_v35, 0.0004427343 }
  0x8b   :  { %2365 = vst [vmem:[#allocation7 + $0xa8] sm:$0xff] %v2237_v12  ;;  %v908_v52 = vmul.f32 -0.5, %v3414_v36  ;;  %v3440_v53 = vmul.f32 0.5, %v3428_v45  ;;  %v900_v56 = vadd.f32 1.0, %v899_v47  ;;  %v902_v57 = vand.u32 2147483647, %v3402_v20 }
  0x8c   :  { %v2670_v9 = vpop.eup %2669  ;;  %v886_v55 = vsel %vm3423_vm12, %v883_v11, %v880_v14  ;;  %v3445_v58 = vand.u32 2147483647, %v323_v48  ;;  %v324_v0 = vsub.f32 %v68_v13, %v196_v49  ;;  %v2513_v23 = vadd.f32 7.917595, %v3369_v51 }
  0x8d   :  { %v1854_v59 = vmul.f32 10.0, %v886_v55  ;;  %v889_v63 = vmul.f32 0.6931472, %v2670_v9  ;;  %v914_v26 = vadd.f32 1.0, %v3440_v53  ;;  %vm2111_vm15 = vcmp.lt.f32.partialorder %v3369_v51, 10.0  ;;  %v200_v55 = vld [vmem:[#allocation5 + $0x100] sm:$0xff] }
  0x8e   :  { %v911_v5 = vand.u32 2147483647, %v3414_v36  ;;  %v3452_v7 = vmul.f32 0.5, %v3445_v58  ;;  %v909_v34 = vadd.f32 1.0, %v908_v52  ;;  %v901_v10 = vmul.f32 %v900_v56, %v3402_v20  ;;  %v70_v20 = vld [vmem:[#allocation2 + $0xf0] sm:$0xff] }
  0x8f   :  { %v2238_v61 = vsel %vm2110_vm13, %v1854_v59, %v2512_v4  ;;  %v895_v25 = vsel %vm3434_vm14, %v892_v50, %v889_v63  ;;  %2675 = vlog2.f32 %v914_v26  ;;  %v917_v15 = vmul.f32 -0.5, %v3440_v53 }
  0x90   :  { %2366 = vst [vmem:[#allocation7 + $0xb0] sm:$0xff] %v2238_v61  ;;  %v1855_v32 = vmul.f32 10.0, %v895_v25  ;;  %v923_v30 = vadd.f32 1.0, %v3452_v7  ;;  %vm3461_vm0 = vcmp.lt.f32.partialorder %v902_v57, 0.0004427343  ;;  %v325_v18 = vsub.f32 %v69_v1, %v197_v2  ;;  %v73_v25 = vld [vmem:[#allocation2 + $0x108] sm:$0xff] }
  0x91   :  { %v2672_v16 = vpop.eup %2671  ;;  %v2514_v42 = vadd.f32 7.917595, %v3390_v8  ;;  %v3466_v17 = vand.u32 2147483647, %v324_v0  ;;  %vm2112_vm1 = vcmp.lt.f32.partialorder %v3390_v8, 10.0  ;;  %v910_v39 = vmul.f32 %v909_v34, %v3414_v36  ;;  %v201_v34 = vld [vmem:[#allocation5 + $0x108] sm:$0xff] }
  0x92   :  { %v2239_v19 = vsel %vm2111_vm15, %v1855_v32, %v2513_v23  ;;  %v898_v62 = vmul.f32 0.6931472, %v2672_v16  ;;  %2677 = vlog2.f32 %v923_v30  ;;  %vm3472_vm2 = vcmp.lt.f32.partialorder %v911_v5, 0.0004427343 }
  0x93   :  { %2367 = vst [vmem:[#allocation7 + $0xb8] sm:$0xff] %v2239_v19  ;;  %v926_v22 = vmul.f32 -0.5, %v3452_v7  ;;  %v3478_v24 = vmul.f32 0.5, %v3466_v17  ;;  %v918_v27 = vadd.f32 1.0, %v917_v15  ;;  %v920_v28 = vand.u32 2147483647, %v3440_v53 }
  0x94   :  { %v2674_v51 = vpop.eup %2673  ;;  %v904_v40 = vsel %vm3461_vm0, %v901_v10, %v898_v62  ;;  %v3483_v29 = vand.u32 2147483647, %v325_v18  ;;  %v326_v33 = vsub.f32 %v70_v20, %v198_v21  ;;  %v2515_v60 = vadd.f32 7.917595, %v3407_v31 }
  0x95   :  { %v1856_v54 = vmul.f32 10.0, %v904_v40  ;;  %v907_v35 = vmul.f32 0.6931472, %v2674_v51  ;;  %v932_v36 = vadd.f32 1.0, %v3478_v24  ;;  %vm2113_vm3 = vcmp.lt.f32.partialorder %v3407_v31, 10.0  ;;  %v202_v40 = vld [vmem:[#allocation5 + $0x110] sm:$0xff] }
  0x96   :  { %v929_v11 = vand.u32 2147483647, %v3452_v7  ;;  %v3490_v47 = vmul.f32 0.5, %v3483_v29  ;;  %v927_v44 = vadd.f32 1.0, %v926_v22  ;;  %v919_v48 = vmul.f32 %v918_v27, %v3440_v53  ;;  %v72_v53 = vld [vmem:[#allocation2 + $0x100] sm:$0xff] }
  0x97   :  { %v2240_v6 = vsel %vm2112_vm1, %v1856_v54, %v2514_v42  ;;  %v913_v43 = vsel %vm3472_vm2, %v910_v39, %v907_v35  ;;  %2679 = vlog2.f32 %v932_v36  ;;  %v935_v12 = vmul.f32 -0.5, %v3478_v24 }
  0x98   :  { %2368 = vst [vmem:[#allocation7 + $0xc0] sm:$0xff] %v2240_v6  ;;  %v1857_v4 = vmul.f32 10.0, %v913_v43  ;;  %v941_v14 = vadd.f32 1.0, %v3490_v47  ;;  %vm3499_vm4 = vcmp.lt.f32.partialorder %v920_v28, 0.0004427343  ;;  %v327_v46 = vsub.f32 %v71_v37, %v199_v41  ;;  %v75_v43 = vld [vmem:[#allocation2 + $0x118] sm:$0xff] }
  0x99   :  { %v2676_v13 = vpop.eup %2675  ;;  %v2516_v8 = vadd.f32 7.917595, %v3428_v45  ;;  %v3504_v50 = vand.u32 2147483647, %v326_v33  ;;  %vm2114_vm5 = vcmp.lt.f32.partialorder %v3428_v45, 10.0  ;;  %v928_v56 = vmul.f32 %v927_v44, %v3452_v7  ;;  %v203_v44 = vld [vmem:[#allocation5 + $0x118] sm:$0xff] }
  0x9a   :  { %v2241_v52 = vsel %vm2113_vm3, %v1857_v4, %v2515_v60  ;;  %v916_v9 = vmul.f32 0.6931472, %v2676_v13  ;;  %2681 = vlog2.f32 %v941_v14  ;;  %vm3510_vm6 = vcmp.lt.f32.partialorder %v929_v11, 0.0004427343 }
  0x9b   :  { %2369 = vst [vmem:[#allocation7 + $0xc8] sm:$0xff] %v2241_v52  ;;  %v944_v59 = vmul.f32 -0.5, %v3490_v47  ;;  %v3516_v63 = vmul.f32 0.5, %v3504_v50  ;;  %v936_v0 = vadd.f32 1.0, %v935_v12  ;;  %v938_v1 = vand.u32 2147483647, %v3478_v24 }
  0x9c   :  { %v2678_v31 = vpop.eup %2677  ;;  %v922_v26 = vsel %vm3499_vm4, %v919_v48, %v916_v9  ;;  %v3521_v2 = vand.u32 2147483647, %v327_v46  ;;  %v328_v61 = vsub.f32 %v72_v53, %v200_v55  ;;  %v2517_v32 = vadd.f32 7.917595, %v3445_v58 }
  0x9d   :  { %v1858_v23 = vmul.f32 10.0, %v922_v26  ;;  %v925_v5 = vmul.f32 0.6931472, %v2678_v31  ;;  %v950_v7 = vadd.f32 1.0, %v3516_v63  ;;  %vm2115_vm7 = vcmp.lt.f32.partialorder %v3445_v58, 10.0  ;;  %v204_v26 = vld [vmem:[#allocation5 + $0x120] sm:$0xff] }
  0x9e   :  { %v947_v10 = vand.u32 2147483647, %v3490_v47  ;;  %v3528_v15 = vmul.f32 0.5, %v3521_v2  ;;  %v945_v38 = vadd.f32 1.0, %v944_v59  ;;  %v937_v18 = vmul.f32 %v936_v0, %v3478_v24  ;;  %v74_v24 = vld [vmem:[#allocation2 + $0x110] sm:$0xff] }
  0x9f   :  { %v2242_v30 = vsel %vm2114_vm5, %v1858_v23, %v2516_v8  ;;  %v931_v16 = vsel %vm3510_vm6, %v928_v56, %v925_v5  ;;  %2683 = vlog2.f32 %v950_v7  ;;  %v953_v19 = vmul.f32 -0.5, %v3516_v63 }
  0xa0   :  { %2370 = vst [vmem:[#allocation7 + $0xd0] sm:$0xff] %v2242_v30  ;;  %v1859_v42 = vmul.f32 10.0, %v931_v16  ;;  %v959_v62 = vadd.f32 1.0, %v3528_v15  ;;  %vm3537_vm8 = vcmp.lt.f32.partialorder %v938_v1, 0.0004427343  ;;  %v329_v3 = vsub.f32 %v73_v25, %v201_v34  ;;  %v77_v16 = vld [vmem:[#allocation2 + $0x128] sm:$0xff] }
  0xa1   :  { %v2680_v20 = vpop.eup %2679  ;;  %v2518_v45 = vadd.f32 7.917595, %v3466_v17  ;;  %v3542_v39 = vand.u32 2147483647, %v328_v61  ;;  %vm2116_vm9 = vcmp.lt.f32.partialorder %v3466_v17, 10.0  ;;  %v946_v27 = vmul.f32 %v945_v38, %v3490_v47  ;;  %v205_v38 = vld [vmem:[#allocation5 + $0x128] sm:$0xff] }
  0xa2   :  { %v2243_v22 = vsel %vm2115_vm7, %v1859_v42, %v2517_v32  ;;  %v934_v51 = vmul.f32 0.6931472, %v2680_v20  ;;  %2685 = vlog2.f32 %v959_v62  ;;  %vm3548_vm10 = vcmp.lt.f32.partialorder %v947_v10, 0.0004427343 }
  0xa3   :  { %2371 = vst [vmem:[#allocation7 + $0xd8] sm:$0xff] %v2243_v22  ;;  %v962_v54 = vmul.f32 -0.5, %v3528_v15  ;;  %v3554_v35 = vmul.f32 0.5, %v3542_v39  ;;  %v954_v33 = vadd.f32 1.0, %v953_v19  ;;  %v956_v37 = vand.u32 2147483647, %v3516_v63 }
  0xa4   :  { %v2682_v58 = vpop.eup %2681  ;;  %v940_v36 = vsel %vm3537_vm8, %v937_v18, %v934_v51  ;;  %v3559_v41 = vand.u32 2147483647, %v329_v3  ;;  %v330_v6 = vsub.f32 %v74_v24, %v202_v40  ;;  %v2519_v4 = vadd.f32 7.917595, %v3483_v29 }
  0xa5   :  { %v1860_v60 = vmul.f32 10.0, %v940_v36  ;;  %v943_v11 = vmul.f32 0.6931472, %v2682_v58  ;;  %v968_v47 = vadd.f32 1.0, %v3554_v35  ;;  %vm2117_vm11 = vcmp.lt.f32.partialorder %v3483_v29, 10.0  ;;  %v206_v36 = vld [vmem:[#allocation5 + $0x130] sm:$0xff] }
  0xa6   :  { %v965_v48 = vand.u32 2147483647, %v3528_v15  ;;  %v3566_v12 = vmul.f32 0.5, %v3559_v41  ;;  %v963_v49 = vadd.f32 1.0, %v962_v54  ;;  %v955_v46 = vmul.f32 %v954_v33, %v3516_v63  ;;  %v76_v63 = vld [vmem:[#allocation2 + $0x120] sm:$0xff] }
  0xa7   :  { %v2244_v14 = vsel %vm2116_vm9, %v1860_v60, %v2518_v45  ;;  %v949_v13 = vsel %vm3548_vm10, %v946_v27, %v943_v11  ;;  %2687 = vlog2.f32 %v968_v47  ;;  %v971_v52 = vmul.f32 -0.5, %v3554_v35 }
  0xa8   :  { %2372 = vst [vmem:[#allocation7 + $0xe0] sm:$0xff] %v2244_v14  ;;  %v1861_v8 = vmul.f32 10.0, %v949_v13  ;;  %v977_v9 = vadd.f32 1.0, %v3566_v12  ;;  %vm3575_vm12 = vcmp.lt.f32.partialorder %v956_v37, 0.0004427343  ;;  %v331_v57 = vsub.f32 %v75_v43, %v203_v44  ;;  %v79_v13 = vld [vmem:[#allocation2 + $0x138] sm:$0xff] }
  0xa9   :  { %v2684_v53 = vpop.eup %2683  ;;  %v2520_v17 = vadd.f32 7.917595, %v3504_v50  ;;  %v3580_v56 = vand.u32 2147483647, %v330_v6  ;;  %vm2118_vm13 = vcmp.lt.f32.partialorder %v3504_v50, 10.0  ;;  %v964_v0 = vmul.f32 %v963_v49, %v3528_v15  ;;  %v207_v49 = vld [vmem:[#allocation5 + $0x138] sm:$0xff] }
  0xaa   :  { %v2245_v59 = vsel %vm2117_vm11, %v1861_v8, %v2519_v4  ;;  %v952_v31 = vmul.f32 0.6931472, %v2684_v53  ;;  %2689 = vlog2.f32 %v977_v9  ;;  %vm3586_vm14 = vcmp.lt.f32.partialorder %v965_v48, 0.0004427343 }
  0xab   :  { %2373 = vst [vmem:[#allocation7 + $0xe8] sm:$0xff] %v2245_v59  ;;  %v980_v23 = vmul.f32 -0.5, %v3566_v12  ;;  %v3592_v5 = vmul.f32 0.5, %v3580_v56  ;;  %v972_v61 = vadd.f32 1.0, %v971_v52  ;;  %v974_v25 = vand.u32 2147483647, %v3554_v35 }
  0xac   :  { %v2686_v29 = vpop.eup %2685  ;;  %v958_v7 = vsel %vm3575_vm12, %v955_v46, %v952_v31  ;;  %v3597_v34 = vand.u32 2147483647, %v331_v57  ;;  %v332_v30 = vsub.f32 %v76_v63, %v204_v26  ;;  %v2521_v42 = vadd.f32 7.917595, %v3521_v2 }
  0xad   :  { %v1862_v32 = vmul.f32 10.0, %v958_v7  ;;  %v961_v10 = vmul.f32 0.6931472, %v2686_v29  ;;  %v986_v15 = vadd.f32 1.0, %v3592_v5  ;;  %vm2119_vm15 = vcmp.lt.f32.partialorder %v3521_v2, 10.0  ;;  %v208_v7 = vld [vmem:[#allocation5 + $0x140] sm:$0xff] }
  0xae   :  { %v983_v18 = vand.u32 2147483647, %v3566_v12  ;;  %v3604_v19 = vmul.f32 0.5, %v3597_v34  ;;  %v981_v21 = vadd.f32 1.0, %v980_v23  ;;  %v973_v3 = vmul.f32 %v972_v61, %v3554_v35  ;;  %v78_v35 = vld [vmem:[#allocation2 + $0x130] sm:$0xff] }
  0xaf   :  { %v2246_v62 = vsel %vm2118_vm13, %v1862_v32, %v2520_v17  ;;  %v967_v20 = vsel %vm3586_vm14, %v964_v0, %v961_v10  ;;  %2691 = vlog2.f32 %v986_v15  ;;  %v989_v22 = vmul.f32 -0.5, %v3592_v5 }
  0xb0   :  { %2374 = vst [vmem:[#allocation7 + $0xf0] sm:$0xff] %v2246_v62  ;;  %v1863_v45 = vmul.f32 10.0, %v967_v20  ;;  %v995_v51 = vadd.f32 1.0, %v3604_v19  ;;  %vm3613_vm0 = vcmp.lt.f32.partialorder %v974_v25, 0.0004427343  ;;  %v333_v28 = vsub.f32 %v77_v16, %v205_v38  ;;  %v81_v20 = vld [vmem:[#allocation2 + $0x148] sm:$0xff] }
  0xb1   :  { %v2688_v24 = vpop.eup %2687  ;;  %v2522_v50 = vadd.f32 7.917595, %v3542_v39  ;;  %v3618_v27 = vand.u32 2147483647, %v332_v30  ;;  %vm2120_vm1 = vcmp.lt.f32.partialorder %v3542_v39, 10.0  ;;  %v982_v33 = vmul.f32 %v981_v21, %v3566_v12  ;;  %v209_v21 = vld [vmem:[#allocation5 + $0x148] sm:$0xff] }
  0xb2   :  { %v2247_v54 = vsel %vm2119_vm15, %v1863_v45, %v2521_v42  ;;  %v970_v58 = vmul.f32 0.6931472, %v2688_v24  ;;  %2693 = vlog2.f32 %v995_v51  ;;  %vm3624_vm2 = vcmp.lt.f32.partialorder %v983_v18, 0.0004427343 }
  0xb3   :  { %2375 = vst [vmem:[#allocation7 + $0xf8] sm:$0xff] %v2247_v54  ;;  %v998_v60 = vmul.f32 -0.5, %v3604_v19  ;;  %v3630_v11 = vmul.f32 0.5, %v3618_v27  ;;  %v990_v6 = vadd.f32 1.0, %v989_v22  ;;  %v992_v43 = vand.u32 2147483647, %v3592_v5 }
  0xb4   :  { %v2690_v2 = vpop.eup %2689  ;;  %v976_v47 = vsel %vm3613_vm0, %v973_v3, %v970_v58  ;;  %v3635_v44 = vand.u32 2147483647, %v333_v28  ;;  %v334_v14 = vsub.f32 %v78_v35, %v206_v36  ;;  %v2523_v8 = vadd.f32 7.917595, %v3559_v41 }
  0xb5   :  { %v1864_v4 = vmul.f32 10.0, %v976_v47  ;;  %v979_v48 = vmul.f32 0.6931472, %v2690_v2  ;;  %v1004_v12 = vadd.f32 1.0, %v3630_v11  ;;  %vm2121_vm3 = vcmp.lt.f32.partialorder %v3559_v41, 10.0  ;;  %v210_v47 = vld [vmem:[#allocation5 + $0x150] sm:$0xff] }
  0xb6   :  { %v1001_v46 = vand.u32 2147483647, %v3604_v19  ;;  %v3642_v52 = vmul.f32 0.5, %v3635_v44  ;;  %v999_v55 = vadd.f32 1.0, %v998_v60  ;;  %v991_v57 = vmul.f32 %v990_v6, %v3592_v5  ;;  %v80_v5 = vld [vmem:[#allocation2 + $0x140] sm:$0xff] }
  0xb7   :  { %v2248_v9 = vsel %vm2120_vm1, %v1864_v4, %v2522_v50  ;;  %v985_v53 = vsel %vm3624_vm2, %v982_v33, %v979_v48  ;;  %2695 = vlog2.f32 %v1004_v12  ;;  %v1007_v59 = vmul.f32 -0.5, %v3630_v11 }
  0xb8   :  { %2376 = vst [vmem:[#allocation7 + $0x100] sm:$0xff] %v2248_v9  ;;  %v1865_v17 = vmul.f32 10.0, %v985_v53  ;;  %v1013_v31 = vadd.f32 1.0, %v3642_v52  ;;  %vm3651_vm4 = vcmp.lt.f32.partialorder %v992_v43, 0.0004427343  ;;  %v335_v1 = vsub.f32 %v79_v13, %v207_v49  ;;  %v83_v53 = vld [vmem:[#allocation2 + $0x158] sm:$0xff] }
  0xb9   :  { %v2692_v63 = vpop.eup %2691  ;;  %v2524_v39 = vadd.f32 7.917595, %v3580_v56  ;;  %v3656_v0 = vand.u32 2147483647, %v334_v14  ;;  %vm2122_vm5 = vcmp.lt.f32.partialorder %v3580_v56, 10.0  ;;  %v1000_v61 = vmul.f32 %v999_v55, %v3604_v19  ;;  %v211_v55 = vld [vmem:[#allocation5 + $0x158] sm:$0xff] }
  0xba   :  { %v2249_v23 = vsel %vm2121_vm3, %v1865_v17, %v2523_v8  ;;  %v988_v29 = vmul.f32 0.6931472, %v2692_v63  ;;  %2697 = vlog2.f32 %v1013_v31  ;;  %vm3662_vm6 = vcmp.lt.f32.partialorder %v1001_v46, 0.0004427343 }
  0xbb   :  { %2377 = vst [vmem:[#allocation7 + $0x108] sm:$0xff] %v2249_v23  ;;  %v1016_v32 = vmul.f32 -0.5, %v3642_v52  ;;  %v3668_v10 = vmul.f32 0.5, %v3656_v0  ;;  %v1008_v30 = vadd.f32 1.0, %v1007_v59  ;;  %v1010_v16 = vand.u32 2147483647, %v3630_v11 }
  0xbc   :  { %v2694_v41 = vpop.eup %2693  ;;  %v994_v15 = vsel %vm3651_vm4, %v991_v57, %v988_v29  ;;  %v3673_v38 = vand.u32 2147483647, %v335_v1  ;;  %v336_v62 = vsub.f32 %v80_v5, %v208_v7  ;;  %v2525_v45 = vadd.f32 7.917595, %v3597_v34 }
  0xbd   :  { %v1866_v42 = vmul.f32 10.0, %v994_v15  ;;  %v997_v18 = vmul.f32 0.6931472, %v2694_v41  ;;  %v1022_v19 = vadd.f32 1.0, %v3668_v10  ;;  %vm2123_vm7 = vcmp.lt.f32.partialorder %v3597_v34, 10.0  ;;  %v212_v15 = vld [vmem:[#allocation5 + $0x160] sm:$0xff] }
  0xbe   :  { %v1019_v3 = vand.u32 2147483647, %v3642_v52  ;;  %v3680_v22 = vmul.f32 0.5, %v3673_v38  ;;  %v1017_v40 = vadd.f32 1.0, %v1016_v32  ;;  %v1009_v28 = vmul.f32 %v1008_v30, %v3630_v11  ;;  %v82_v11 = vld [vmem:[#allocation2 + $0x150] sm:$0xff] }
  0xbf   :  { %v2250_v51 = vsel %vm2122_vm5, %v1866_v42, %v2524_v39  ;;  %v1003_v24 = vsel %vm3662_vm6, %v1000_v61, %v997_v18  ;;  %2699 = vlog2.f32 %v1022_v19  ;;  %v1025_v54 = vmul.f32 -0.5, %v3668_v10 }
  0xc0   :  { %2378 = vst [vmem:[#allocation7 + $0x110] sm:$0xff] %v2250_v51  ;;  %v1867_v50 = vmul.f32 10.0, %v1003_v24  ;;  %v1031_v58 = vadd.f32 1.0, %v3680_v22  ;;  %vm3689_vm8 = vcmp.lt.f32.partialorder %v1010_v16, 0.0004427343  ;;  %v337_v37 = vsub.f32 %v81_v20, %v209_v21  ;;  %v85_v24 = vld [vmem:[#allocation2 + $0x168] sm:$0xff] }
  0xc1   :  { %v2696_v35 = vpop.eup %2695  ;;  %v2526_v56 = vadd.f32 7.917595, %v3618_v27  ;;  %v3694_v33 = vand.u32 2147483647, %v336_v62  ;;  %vm2124_vm9 = vcmp.lt.f32.partialorder %v3618_v27, 10.0  ;;  %v1018_v6 = vmul.f32 %v1017_v40, %v3642_v52  ;;  %v213_v40 = vld [vmem:[#allocation5 + $0x168] sm:$0xff] }
  0xc2   :  { %v2251_v60 = vsel %vm2123_vm7, %v1867_v50, %v2525_v45  ;;  %v1006_v2 = vmul.f32 0.6931472, %v2696_v35  ;;  %2701 = vlog2.f32 %v1031_v58  ;;  %vm3700_vm10 = vcmp.lt.f32.partialorder %v1019_v3, 0.0004427343 }
  0xc3   :  { %2379 = vst [vmem:[#allocation7 + $0x118] sm:$0xff] %v2251_v60  ;;  %v1034_v4 = vmul.f32 -0.5, %v3680_v22  ;;  %v3706_v48 = vmul.f32 0.5, %v3694_v33  ;;  %v1026_v14 = vadd.f32 1.0, %v1025_v54  ;;  %v1028_v13 = vand.u32 2147483647, %v3668_v10 }
  0xc4   :  { %v2698_v34 = vpop.eup %2697  ;;  %v1012_v12 = vsel %vm3689_vm8, %v1009_v28, %v1006_v2  ;;  %v3711_v49 = vand.u32 2147483647, %v337_v37  ;;  %v338_v9 = vsub.f32 %v82_v11, %v210_v47  ;;  %v2527_v17 = vadd.f32 7.917595, %v3635_v44 }
  0xc5   :  { %v1868_v8 = vmul.f32 10.0, %v1012_v12  ;;  %v1015_v46 = vmul.f32 0.6931472, %v2698_v34  ;;  %v1040_v52 = vadd.f32 1.0, %v3706_v48  ;;  %vm2125_vm11 = vcmp.lt.f32.partialorder %v3635_v44, 10.0  ;;  %v214_v12 = vld [vmem:[#allocation5 + $0x170] sm:$0xff] }
  0xc6   :  { %v1037_v57 = vand.u32 2147483647, %v3680_v22  ;;  %v3718_v59 = vmul.f32 0.5, %v3711_v49  ;;  %v1035_v26 = vadd.f32 1.0, %v1034_v4  ;;  %v1027_v1 = vmul.f32 %v1026_v14, %v3668_v10  ;;  %v84_v10 = vld [vmem:[#allocation2 + $0x160] sm:$0xff] }
  0xc7   :  { %v2252_v31 = vsel %vm2124_vm9, %v1868_v8, %v2526_v56  ;;  %v1021_v63 = vsel %vm3700_vm10, %v1018_v6, %v1015_v46  ;;  %2703 = vlog2.f32 %v1040_v52  ;;  %v1043_v23 = vmul.f32 -0.5, %v3706_v48 }
  0xc8   :  { %2380 = vst [vmem:[#allocation7 + $0x120] sm:$0xff] %v2252_v31  ;;  %v1869_v39 = vmul.f32 10.0, %v1021_v63  ;;  %v1049_v29 = vadd.f32 1.0, %v3718_v59  ;;  %vm3727_vm12 = vcmp.lt.f32.partialorder %v1028_v13, 0.0004427343  ;;  %v339_v25 = vsub.f32 %v83_v53, %v211_v55  ;;  %v87_v63 = vld [vmem:[#allocation2 + $0x178] sm:$0xff] }
  0xc9   :  { %v2700_v5 = vpop.eup %2699  ;;  %v2528_v27 = vadd.f32 7.917595, %v3656_v0  ;;  %v3732_v61 = vand.u32 2147483647, %v338_v9  ;;  %vm2126_vm13 = vcmp.lt.f32.partialorder %v3656_v0, 10.0  ;;  %v1036_v30 = vmul.f32 %v1035_v26, %v3680_v22  ;;  %v215_v26 = vld [vmem:[#allocation5 + $0x178] sm:$0xff] }
  0xca   :  { %v2253_v32 = vsel %vm2125_vm11, %v1869_v39, %v2527_v17  ;;  %v1024_v41 = vmul.f32 0.6931472, %v2700_v5  ;;  %2705 = vlog2.f32 %v1049_v29  ;;  %vm3738_vm14 = vcmp.lt.f32.partialorder %v1037_v57, 0.0004427343 }
  0xcb   :  { %2381 = vst [vmem:[#allocation7 + $0x128] sm:$0xff] %v2253_v32  ;;  %v1052_v42 = vmul.f32 -0.5, %v3718_v59  ;;  %v3744_v18 = vmul.f32 0.5, %v3732_v61  ;;  %v1044_v62 = vadd.f32 1.0, %v1043_v23  ;;  %v1046_v20 = vand.u32 2147483647, %v3706_v48 }
  0xcc   :  { %v2702_v44 = vpop.eup %2701  ;;  %v1030_v19 = vsel %vm3727_vm12, %v1027_v1, %v1024_v41  ;;  %v3749_v21 = vand.u32 2147483647, %v339_v25  ;;  %v340_v51 = vsub.f32 %v84_v10, %v212_v15  ;;  %v2529_v50 = vadd.f32 7.917595, %v3673_v38 }
  0xcd   :  { %v1870_v45 = vmul.f32 10.0, %v1030_v19  ;;  %v1033_v3 = vmul.f32 0.6931472, %v2702_v44  ;;  %v1058_v22 = vadd.f32 1.0, %v3744_v18  ;;  %vm2127_vm15 = vcmp.lt.f32.partialorder %v3673_v38, 10.0  ;;  %v216_v19 = vld [vmem:[#allocation5 + $0x180] sm:$0xff] }
  0xce   :  { %v1055_v28 = vand.u32 2147483647, %v3718_v59  ;;  %v3756_v54 = vmul.f32 0.5, %v3749_v21  ;;  %v1053_v36 = vadd.f32 1.0, %v1052_v42  ;;  %v1045_v37 = vmul.f32 %v1044_v62, %v3706_v48  ;;  %v86_v48 = vld [vmem:[#allocation2 + $0x170] sm:$0xff] }
  0xcf   :  { %v2254_v58 = vsel %vm2126_vm13, %v1870_v45, %v2528_v27  ;;  %v1039_v35 = vsel %vm3738_vm14, %v1036_v30, %v1033_v3  ;;  %2707 = vlog2.f32 %v1058_v22  ;;  %v1061_v60 = vmul.f32 -0.5, %v3744_v18 }
  0xd0   :  { %2382 = vst [vmem:[#allocation7 + $0x130] sm:$0xff] %v2254_v58  ;;  %v1871_v56 = vmul.f32 10.0, %v1039_v35  ;;  %v1067_v2 = vadd.f32 1.0, %v3756_v54  ;;  %vm3765_vm0 = vcmp.lt.f32.partialorder %v1046_v20, 0.0004427343  ;;  %v341_v43 = vsub.f32 %v85_v24, %v213_v40  ;;  %v89_v35 = vld [vmem:[#allocation2 + $0x188] sm:$0xff] }
  0xd1   :  { %v2704_v11 = vpop.eup %2703  ;;  %v2530_v0 = vadd.f32 7.917595, %v3694_v33  ;;  %v3770_v6 = vand.u32 2147483647, %v340_v51  ;;  %vm2128_vm1 = vcmp.lt.f32.partialorder %v3694_v33, 10.0  ;;  %v1054_v14 = vmul.f32 %v1053_v36, %v3718_v59  ;;  %v217_v36 = vld [vmem:[#allocation5 + $0x188] sm:$0xff] }
  0xd2   :  { %v2255_v4 = vsel %vm2127_vm15, %v1871_v56, %v2529_v50  ;;  %v1042_v34 = vmul.f32 0.6931472, %v2704_v11  ;;  %2709 = vlog2.f32 %v1067_v2  ;;  %vm3776_vm2 = vcmp.lt.f32.partialorder %v1055_v28, 0.0004427343 }
  0xd3   :  { %2383 = vst [vmem:[#allocation7 + $0x138] sm:$0xff] %v2255_v4  ;;  %v1070_v8 = vmul.f32 -0.5, %v3756_v54  ;;  %v3782_v46 = vmul.f32 0.5, %v3770_v6  ;;  %v1062_v9 = vadd.f32 1.0, %v1061_v60  ;;  %v1064_v53 = vand.u32 2147483647, %v3744_v18 }
  0xd4   :  { %v2706_v38 = vpop.eup %2705  ;;  %v1048_v52 = vsel %vm3765_vm0, %v1045_v37, %v1042_v34  ;;  %v3787_v55 = vand.u32 2147483647, %v341_v43  ;;  %v342_v31 = vsub.f32 %v86_v48, %v214_v12  ;;  %v2531_v39 = vadd.f32 7.917595, %v3711_v49 }
  0xd5   :  { %v1872_v17 = vmul.f32 10.0, %v1048_v52  ;;  %v1051_v57 = vmul.f32 0.6931472, %v2706_v38  ;;  %v1076_v59 = vadd.f32 1.0, %v3782_v46  ;;  %vm2129_vm3 = vcmp.lt.f32.partialorder %v3711_v49, 10.0  ;;  %v218_v52 = vld [vmem:[#allocation5 + $0x190] sm:$0xff] }
  0xd6   :  { %v1073_v1 = vand.u32 2147483647, %v3756_v54  ;;  %v3794_v23 = vmul.f32 0.5, %v3787_v55  ;;  %v1071_v7 = vadd.f32 1.0, %v1070_v8  ;;  %v1063_v25 = vmul.f32 %v1062_v9, %v3744_v18  ;;  %v88_v18 = vld [vmem:[#allocation2 + $0x180] sm:$0xff] }
  0xd7   :  { %v2256_v29 = vsel %vm2128_vm1, %v1872_v17, %v2530_v0  ;;  %v1057_v5 = vsel %vm3776_vm2, %v1054_v14, %v1051_v57  ;;  %2711 = vlog2.f32 %v1076_v59  ;;  %v1079_v32 = vmul.f32 -0.5, %v3782_v46 }
  0xd8   :  { %2384 = vst [vmem:[#allocation7 + $0x140] sm:$0xff] %v2256_v29  ;;  %v1873_v27 = vmul.f32 10.0, %v1057_v5  ;;  %v1085_v41 = vadd.f32 1.0, %v3794_v23  ;;  %vm3803_vm4 = vcmp.lt.f32.partialorder %v1064_v53, 0.0004427343  ;;  %v343_v16 = vsub.f32 %v87_v63, %v215_v26  ;;  %v91_v5 = vld [vmem:[#allocation2 + $0x198] sm:$0xff] }
  0xd9   :  { %v2708_v10 = vpop.eup %2707  ;;  %v2532_v33 = vadd.f32 7.917595, %v3732_v61  ;;  %v3808_v30 = vand.u32 2147483647, %v342_v31  ;;  %vm2130_vm5 = vcmp.lt.f32.partialorder %v3732_v61, 10.0  ;;  %v1072_v62 = vmul.f32 %v1071_v7, %v3756_v54  ;;  %v219_v7 = vld [vmem:[#allocation5 + $0x198] sm:$0xff] }
  0xda   :  { %v2257_v42 = vsel %vm2129_vm3, %v1873_v27, %v2531_v39  ;;  %v1060_v44 = vmul.f32 0.6931472, %v2708_v10  ;;  %2713 = vlog2.f32 %v1085_v41  ;;  %vm3814_vm6 = vcmp.lt.f32.partialorder %v1073_v1, 0.0004427343 }
  0xdb   :  { %2385 = vst [vmem:[#allocation7 + $0x148] sm:$0xff] %v2257_v42  ;;  %v1088_v45 = vmul.f32 -0.5, %v3794_v23  ;;  %v3820_v3 = vmul.f32 0.5, %v3808_v30  ;;  %v1080_v51 = vadd.f32 1.0, %v1079_v32  ;;  %v1082_v24 = vand.u32 2147483647, %v3782_v46 }
  0xdc   :  { %v2710_v49 = vpop.eup %2709  ;;  %v1066_v22 = vsel %vm3803_vm4, %v1063_v25, %v1060_v44  ;;  %v3825_v40 = vand.u32 2147483647, %v343_v16  ;;  %v344_v58 = vsub.f32 %v88_v18, %v216_v19  ;;  %v2533_v56 = vadd.f32 7.917595, %v3749_v21 }
  0xdd   :  { %v1874_v50 = vmul.f32 10.0, %v1066_v22  ;;  %v1069_v28 = vmul.f32 0.6931472, %v2710_v49  ;;  %v1094_v54 = vadd.f32 1.0, %v3820_v3  ;;  %vm2131_vm7 = vcmp.lt.f32.partialorder %v3749_v21, 10.0  ;;  %v220_v22 = vld [vmem:[#allocation5 + $0x1a0] sm:$0xff] }
  0xde   :  { %v1091_v37 = vand.u32 2147483647, %v3794_v23  ;;  %v3832_v60 = vmul.f32 0.5, %v3825_v40  ;;  %v1089_v47 = vadd.f32 1.0, %v1088_v45  ;;  %v1081_v43 = vmul.f32 %v1080_v51, %v3782_v46  ;;  %v90_v46 = vld [vmem:[#allocation2 + $0x190] sm:$0xff] }
  0xdf   :  { %v2258_v2 = vsel %vm2130_vm5, %v1874_v50, %v2532_v33  ;;  %v1075_v11 = vsel %vm3814_vm6, %v1072_v62, %v1069_v28  ;;  %2715 = vlog2.f32 %v1094_v54  ;;  %v1097_v4 = vmul.f32 -0.5, %v3820_v3 }
  0xe0   :  { %2386 = vst [vmem:[#allocation7 + $0x150] sm:$0xff] %v2258_v2  ;;  %v1875_v0 = vmul.f32 10.0, %v1075_v11  ;;  %v1103_v34 = vadd.f32 1.0, %v3832_v60  ;;  %vm3841_vm8 = vcmp.lt.f32.partialorder %v1082_v24, 0.0004427343  ;;  %v345_v13 = vsub.f32 %v89_v35, %v217_v36  ;;  %v93_v11 = vld [vmem:[#allocation2 + $0x1a8] sm:$0xff] }
  0xe1   :  { %v2712_v48 = vpop.eup %2711  ;;  %v2534_v61 = vadd.f32 7.917595, %v3770_v6  ;;  %v3846_v14 = vand.u32 2147483647, %v344_v58  ;;  %vm2132_vm9 = vcmp.lt.f32.partialorder %v3770_v6, 10.0  ;;  %v1090_v9 = vmul.f32 %v1089_v47, %v3794_v23  ;;  %v221_v47 = vld [vmem:[#allocation5 + $0x1a8] sm:$0xff] }
  0xe2   :  { %v2259_v8 = vsel %vm2131_vm7, %v1875_v0, %v2533_v56  ;;  %v1078_v38 = vmul.f32 0.6931472, %v2712_v48  ;;  %2717 = vlog2.f32 %v1103_v34  ;;  %vm3852_vm10 = vcmp.lt.f32.partialorder %v1091_v37, 0.0004427343 }
  0xe3   :  { %2387 = vst [vmem:[#allocation7 + $0x158] sm:$0xff] %v2259_v8  ;;  %v1106_v17 = vmul.f32 -0.5, %v3832_v60  ;;  %v3858_v57 = vmul.f32 0.5, %v3846_v14  ;;  %v1098_v31 = vadd.f32 1.0, %v1097_v4  ;;  %v1100_v63 = vand.u32 2147483647, %v3820_v3 }
  0xe4   :  { %v2714_v21 = vpop.eup %2713  ;;  %v1084_v59 = vsel %vm3841_vm8, %v1081_v43, %v1078_v38  ;;  %v3863_v26 = vand.u32 2147483647, %v345_v13  ;;  %v346_v29 = vsub.f32 %v90_v46, %v218_v52  ;;  %v2535_v27 = vadd.f32 7.917595, %v3787_v55 }
  0xe5   :  { %v1876_v39 = vmul.f32 10.0, %v1084_v59  ;;  %v1087_v1 = vmul.f32 0.6931472, %v2714_v21  ;;  %v1112_v23 = vadd.f32 1.0, %v3858_v57  ;;  %vm2133_vm11 = vcmp.lt.f32.partialorder %v3787_v55, 10.0  ;;  %v222_v59 = vld [vmem:[#allocation5 + $0x1b0] sm:$0xff] }
  0xe6   :  { %v1109_v25 = vand.u32 2147483647, %v3832_v60  ;;  %v3870_v32 = vmul.f32 0.5, %v3863_v26  ;;  %v1107_v15 = vadd.f32 1.0, %v1106_v17  ;;  %v1099_v16 = vmul.f32 %v1098_v31, %v3820_v3  ;;  %v92_v3 = vld [vmem:[#allocation2 + $0x1a0] sm:$0xff] }
  0xe7   :  { %v2260_v41 = vsel %vm2132_vm9, %v1876_v39, %v2534_v61  ;;  %v1093_v10 = vsel %vm3852_vm10, %v1090_v9, %v1087_v1  ;;  %2719 = vlog2.f32 %v1112_v23  ;;  %v1115_v42 = vmul.f32 -0.5, %v3858_v57 }
  0xe8   :  { %2388 = vst [vmem:[#allocation7 + $0x160] sm:$0xff] %v2260_v41  ;;  %v1877_v33 = vmul.f32 10.0, %v1093_v10  ;;  %v1121_v44 = vadd.f32 1.0, %v3870_v32  ;;  %vm3879_vm12 = vcmp.lt.f32.partialorder %v1100_v63, 0.0004427343  ;;  %v347_v20 = vsub.f32 %v91_v5, %v219_v7  ;;  %v95_v10 = vld [vmem:[#allocation2 + $0x1b8] sm:$0xff] }
  0xe9   :  { %v2716_v18 = vpop.eup %2715  ;;  %v2536_v6 = vadd.f32 7.917595, %v3808_v30  ;;  %v3884_v62 = vand.u32 2147483647, %v346_v29  ;;  %vm2134_vm13 = vcmp.lt.f32.partialorder %v3808_v30, 10.0  ;;  %v1108_v51 = vmul.f32 %v1107_v15, %v3832_v60  ;;  %v223_v15 = vld [vmem:[#allocation5 + $0x1b8] sm:$0xff] }
  0xea   :  { %v2261_v45 = vsel %vm2133_vm11, %v1877_v33, %v2535_v27  ;;  %v1096_v49 = vmul.f32 0.6931472, %v2716_v18  ;;  %2721 = vlog2.f32 %v1121_v44  ;;  %vm3890_vm14 = vcmp.lt.f32.partialorder %v1109_v25, 0.0004427343 }
  0xeb   :  { %2389 = vst [vmem:[#allocation7 + $0x168] sm:$0xff] %v2261_v45  ;;  %v1124_v50 = vmul.f32 -0.5, %v3870_v32  ;;  %v3896_v28 = vmul.f32 0.5, %v3884_v62  ;;  %v1116_v58 = vadd.f32 1.0, %v1115_v42  ;;  %v1118_v35 = vand.u32 2147483647, %v3858_v57 }
  0xec   :  { %v2718_v55 = vpop.eup %2717  ;;  %v1102_v54 = vsel %vm3879_vm12, %v1099_v16, %v1096_v49  ;;  %v3901_v36 = vand.u32 2147483647, %v347_v20  ;;  %v348_v2 = vsub.f32 %v92_v3, %v220_v22  ;;  %v2537_v0 = vadd.f32 7.917595, %v3825_v40 }
  0xed   :  { %v1878_v56 = vmul.f32 10.0, %v1102_v54  ;;  %v1105_v37 = vmul.f32 0.6931472, %v2718_v55  ;;  %v1130_v60 = vadd.f32 1.0, %v3896_v28  ;;  %vm2135_vm15 = vcmp.lt.f32.partialorder %v3825_v40, 10.0  ;;  %v224_v54 = vld [vmem:[#allocation5 + $0x1c0] sm:$0xff] }
  0xee   :  { %v1127_v43 = vand.u32 2147483647, %v3870_v32  ;;  %v3908_v4 = vmul.f32 0.5, %v3901_v36  ;;  %v1125_v12 = vadd.f32 1.0, %v1124_v50  ;;  %v1117_v13 = vmul.f32 %v1116_v58, %v3858_v57  ;;  %v94_v57 = vld [vmem:[#allocation2 + $0x1b0] sm:$0xff] }
  0xef   :  { %v2262_v34 = vsel %vm2134_vm13, %v1878_v56, %v2536_v6  ;;  %v1111_v48 = vsel %vm3890_vm14, %v1108_v51, %v1105_v37  ;;  %2723 = vlog2.f32 %v1130_v60  ;;  %v1133_v8 = vmul.f32 -0.5, %v3896_v28 }
  0xf0   :  { %2390 = vst [vmem:[#allocation7 + $0x170] sm:$0xff] %v2262_v34  ;;  %v1879_v61 = vmul.f32 10.0, %v1111_v48  ;;  %v1139_v38 = vadd.f32 1.0, %v3908_v4  ;;  %vm3917_vm0 = vcmp.lt.f32.partialorder %v1118_v35, 0.0004427343  ;;  %v349_v53 = vsub.f32 %v93_v11, %v221_v47  ;;  %v97_v48 = vld [vmem:[#allocation2 + $0x1c8] sm:$0xff] }
  0xf1   :  { %v2720_v46 = vpop.eup %2719  ;;  %v2538_v30 = vadd.f32 7.917595, %v3846_v14  ;;  %v3922_v9 = vand.u32 2147483647, %v348_v2  ;;  %vm2136_vm1 = vcmp.lt.f32.partialorder %v3846_v14, 10.0  ;;  %v1126_v31 = vmul.f32 %v1125_v12, %v3870_v32  ;;  %v225_v12 = vld [vmem:[#allocation5 + $0x1c8] sm:$0xff] }
  0xf2   :  { %v2263_v17 = vsel %vm2135_vm15, %v1879_v61, %v2537_v0  ;;  %v1114_v21 = vmul.f32 0.6931472, %v2720_v46  ;;  %2725 = vlog2.f32 %v1139_v38  ;;  %vm3928_vm2 = vcmp.lt.f32.partialorder %v1127_v43, 0.0004427343 }
  0xf3   :  { %2391 = vst [vmem:[#allocation7 + $0x178] sm:$0xff] %v2263_v17  ;;  %v1142_v39 = vmul.f32 -0.5, %v3908_v4  ;;  %v3934_v1 = vmul.f32 0.5, %v3922_v9  ;;  %v1134_v29 = vadd.f32 1.0, %v1133_v8  ;;  %v1136_v5 = vand.u32 2147483647, %v3896_v28 }
  0xf4   :  { %v2722_v40 = vpop.eup %2721  ;;  %v1120_v23 = vsel %vm3917_vm0, %v1117_v13, %v1114_v21  ;;  %v3939_v7 = vand.u32 2147483647, %v349_v53  ;;  %v350_v41 = vsub.f32 %v94_v57, %v222_v59  ;;  %v2539_v33 = vadd.f32 7.917595, %v3863_v26 }
  0xf5   :  { %v1880_v27 = vmul.f32 10.0, %v1120_v23  ;;  %v1123_v25 = vmul.f32 0.6931472, %v2722_v40  ;;  %v1148_v32 = vadd.f32 1.0, %v3934_v1  ;;  %vm2137_vm3 = vcmp.lt.f32.partialorder %v3863_v26, 10.0  ;;  %v226_v23 = vld [vmem:[#allocation5 + $0x1d0] sm:$0xff] }
  0xf6   :  { %v1145_v16 = vand.u32 2147483647, %v3908_v4  ;;  %v3946_v42 = vmul.f32 0.5, %v3939_v7  ;;  %v1143_v19 = vadd.f32 1.0, %v1142_v39  ;;  %v1135_v20 = vmul.f32 %v1134_v29, %v3896_v28  ;;  %v96_v28 = vld [vmem:[#allocation2 + $0x1c0] sm:$0xff] }
  0xf7   :  { %v2264_v44 = vsel %vm2136_vm1, %v1880_v27, %v2538_v30  ;;  %v1129_v18 = vsel %vm3928_vm2, %v1126_v31, %v1123_v25  ;;  %2727 = vlog2.f32 %v1148_v32  ;;  %v1151_v45 = vmul.f32 -0.5, %v3934_v1 }
  0xf8   :  { %2392 = vst [vmem:[#allocation7 + $0x180] sm:$0xff] %v2264_v44  ;;  %v1881_v6 = vmul.f32 10.0, %v1129_v18  ;;  %v1157_v49 = vadd.f32 1.0, %v3946_v42  ;;  %vm3955_vm4 = vcmp.lt.f32.partialorder %v1136_v5, 0.0004427343  ;;  %v351_v24 = vsub.f32 %v95_v10, %v223_v15  ;;  %v99_v18 = vld [vmem:[#allocation2 + $0x1d8] sm:$0xff] }
  0xf9   :  { %v2724_v3 = vpop.eup %2723  ;;  %v2540_v14 = vadd.f32 7.917595, %v3884_v62  ;;  %v3960_v51 = vand.u32 2147483647, %v350_v41  ;;  %vm2138_vm5 = vcmp.lt.f32.partialorder %v3884_v62, 10.0  ;;  %v1144_v58 = vmul.f32 %v1143_v19, %v3908_v4  ;;  %v227_v19 = vld [vmem:[#allocation5 + $0x1d8] sm:$0xff] }
  0xfa   :  { %v2265_v50 = vsel %vm2137_vm3, %v1881_v6, %v2539_v33  ;;  %v1132_v55 = vmul.f32 0.6931472, %v2724_v3  ;;  %2729 = vlog2.f32 %v1157_v49  ;;  %vm3966_vm6 = vcmp.lt.f32.partialorder %v1145_v16, 0.0004427343 }
  0xfb   :  { %2393 = vst [vmem:[#allocation7 + $0x188] sm:$0xff] %v2265_v50  ;;  %v1160_v56 = vmul.f32 -0.5, %v3946_v42  ;;  %v3972_v37 = vmul.f32 0.5, %v3960_v51  ;;  %v1152_v2 = vadd.f32 1.0, %v1151_v45  ;;  %v1154_v11 = vand.u32 2147483647, %v3934_v1 }
  0xfc   :  { %v2726_v26 = vpop.eup %2725  ;;  %v1138_v60 = vsel %vm3955_vm4, %v1135_v20, %v1132_v55  ;;  %v3977_v47 = vand.u32 2147483647, %v351_v24  ;;  %v352_v34 = vsub.f32 %v96_v28, %v224_v54  ;;  %v2541_v61 = vadd.f32 7.917595, %v3901_v36 }
  0xfd   :  { %v1882_v0 = vmul.f32 10.0, %v1138_v60  ;;  %v1141_v43 = vmul.f32 0.6931472, %v2726_v26  ;;  %v1166_v4 = vadd.f32 1.0, %v3972_v37  ;;  %vm2139_vm7 = vcmp.lt.f32.partialorder %v3901_v36, 10.0  ;;  %v228_v60 = vld [vmem:[#allocation5 + $0x1e0] sm:$0xff] }
  0xfe   :  { %v1163_v13 = vand.u32 2147483647, %v3946_v42  ;;  %v3984_v8 = vmul.f32 0.5, %v3977_v47  ;;  %v1161_v52 = vadd.f32 1.0, %v1160_v56  ;;  %v1153_v53 = vmul.f32 %v1152_v2, %v3934_v1  ;;  %v98_v1 = vld [vmem:[#allocation2 + $0x1d0] sm:$0xff] }
  0xff   :  { %v2266_v38 = vsel %vm2138_vm5, %v1882_v0, %v2540_v14  ;;  %v1147_v46 = vsel %vm3966_vm6, %v1144_v58, %v1141_v43  ;;  %2731 = vlog2.f32 %v1166_v4  ;;  %v1169_v17 = vmul.f32 -0.5, %v3972_v37 }
 0x100   :  { %2394 = vst [vmem:[#allocation7 + $0x190] sm:$0xff] %v2266_v38  ;;  %v1883_v30 = vmul.f32 10.0, %v1147_v46  ;;  %v1175_v21 = vadd.f32 1.0, %v3984_v8  ;;  %vm3993_vm8 = vcmp.lt.f32.partialorder %v1154_v11, 0.0004427343  ;;  %v353_v63 = vsub.f32 %v97_v48, %v225_v12  ;;  %v101_v46 = vld [vmem:[#allocation2 + $0x1e8] sm:$0xff] }
 0x101   :  { %v2728_v57 = vpop.eup %2727  ;;  %v2542_v62 = vadd.f32 7.917595, %v3922_v9  ;;  %v3998_v31 = vand.u32 2147483647, %v352_v34  ;;  %vm2140_vm9 = vcmp.lt.f32.partialorder %v3922_v9, 10.0  ;;  %v1162_v29 = vmul.f32 %v1161_v52, %v3946_v42  ;;  %v229_v52 = vld [vmem:[#allocation5 + $0x1e8] sm:$0xff] }
 0x102   :  { %v2267_v39 = vsel %vm2139_vm7, %v1883_v30, %v2541_v61  ;;  %v1150_v40 = vmul.f32 0.6931472, %v2728_v57  ;;  %2733 = vlog2.f32 %v1175_v21  ;;  %vm4004_vm10 = vcmp.lt.f32.partialorder %v1163_v13, 0.0004427343 }
 0x103   :  { %2395 = vst [vmem:[#allocation7 + $0x198] sm:$0xff] %v2267_v39  ;;  %v1178_v27 = vmul.f32 -0.5, %v3984_v8  ;;  %v4010_v25 = vmul.f32 0.5, %v3998_v31  ;;  %v1170_v41 = vadd.f32 1.0, %v1169_v17  ;;  %v1172_v10 = vand.u32 2147483647, %v3972_v37 }
 0x104   :  { %v2730_v36 = vpop.eup %2729  ;;  %v1156_v32 = vsel %vm3993_vm8, %v1153_v53, %v1150_v40  ;;  %v4015_v15 = vand.u32 2147483647, %v353_v63  ;;  %v354_v44 = vsub.f32 %v98_v1, %v226_v23  ;;  %v2543_v6 = vadd.f32 7.917595, %v3939_v7 }
 0x105   :  { %v1884_v33 = vmul.f32 10.0, %v1156_v32  ;;  %v1159_v16 = vmul.f32 0.6931472, %v2730_v36  ;;  %v1184_v42 = vadd.f32 1.0, %v4010_v25  ;;  %vm2141_vm11 = vcmp.lt.f32.partialorder %v3939_v7, 10.0  ;;  %v230_v32 = vld [vmem:[#allocation5 + $0x1f0] sm:$0xff] }
 0x106   :  { %v1181_v20 = vand.u32 2147483647, %v3984_v8  ;;  %v4022_v45 = vmul.f32 0.5, %v4015_v15  ;;  %v1179_v22 = vadd.f32 1.0, %v1178_v27  ;;  %v1171_v24 = vmul.f32 %v1170_v41, %v3972_v37  ;;  %v100_v37 = vld [vmem:[#allocation2 + $0x1e0] sm:$0xff] }
 0x107   :  { %v2268_v49 = vsel %vm2140_vm9, %v1884_v33, %v2542_v62  ;;  %v1165_v3 = vsel %vm4004_vm10, %v1162_v29, %v1159_v16  ;;  %2735 = vlog2.f32 %v1184_v42  ;;  %v1187_v50 = vmul.f32 -0.5, %v4010_v25 }
 0x108   :  { %2396 = vst [vmem:[#allocation7 + $0x1a0] sm:$0xff] %v2268_v49  ;;  %v1885_v14 = vmul.f32 10.0, %v1165_v3  ;;  %v1193_v55 = vadd.f32 1.0, %v4022_v45  ;;  %vm4031_vm12 = vcmp.lt.f32.partialorder %v1172_v10, 0.0004427343  ;;  %v355_v35 = vsub.f32 %v99_v18, %v227_v19  ;;  %v103_v3 = vld [vmem:[#allocation2 + $0x1f8] sm:$0xff] }
 0x109   :  { %v2732_v28 = vpop.eup %2731  ;;  %v2544_v9 = vadd.f32 7.917595, %v3960_v51  ;;  %v4036_v58 = vand.u32 2147483647, %v354_v44  ;;  %vm2142_vm13 = vcmp.lt.f32.partialorder %v3960_v51, 10.0  ;;  %v1180_v2 = vmul.f32 %v1179_v22, %v3984_v8  ;;  %v231_v22 = vld [vmem:[#allocation5 + $0x1f8] sm:$0xff] }
 0x10a   :  { %v2269_v56 = vsel %vm2141_vm11, %v1885_v14, %v2543_v6  ;;  %v1168_v26 = vmul.f32 0.6931472, %v2732_v28  ;;  %2737 = vlog2.f32 %v1193_v55  ;;  %vm4042_vm14 = vcmp.lt.f32.partialorder %v1181_v20, 0.0004427343 }
 0x10b   :  { %2397 = vst [vmem:[#allocation7 + $0x1a8] sm:$0xff] %v2269_v56  ;;  %v1196_v0 = vmul.f32 -0.5, %v4022_v45  ;;  %v4048_v43 = vmul.f32 0.5, %v4036_v58  ;;  %v1188_v34 = vadd.f32 1.0, %v1187_v50  ;;  %v1190_v48 = vand.u32 2147483647, %v4010_v25 }
 0x10c   :  { %v2734_v7 = vpop.eup %2733  ;;  %v1174_v4 = vsel %vm4031_vm12, %v1171_v24, %v1168_v26  ;;  %v4053_v12 = vand.u32 2147483647, %v355_v35  ;;  %v356_v38 = vsub.f32 %v100_v37, %v228_v60  ;;  %v2545_v30 = vadd.f32 7.917595, %v3977_v47 }
 0x10d   :  { %v1886_v61 = vmul.f32 10.0, %v1174_v4  ;;  %v1177_v13 = vmul.f32 0.6931472, %v2734_v7  ;;  %v1202_v8 = vadd.f32 1.0, %v4048_v43  ;;  %vm2143_vm15 = vcmp.lt.f32.partialorder %v3977_v47, 10.0  ;;  %v232_v4 = vld [vmem:[#allocation5 + $0x200] sm:$0xff] }
 0x10e   :  { %v1199_v53 = vand.u32 2147483647, %v4022_v45  ;;  %v4060_v17 = vmul.f32 0.5, %v4053_v12  ;;  %v1197_v59 = vadd.f32 1.0, %v1196_v0  ;;  %v1189_v63 = vmul.f32 %v1188_v34, %v4010_v25  ;;  %v102_v25 = vld [vmem:[#allocation2 + $0x1f0] sm:$0xff] }
 0x10f   :  { %v2270_v21 = vsel %vm2142_vm13, %v1886_v61, %v2544_v9  ;;  %v1183_v57 = vsel %vm4042_vm14, %v1180_v2, %v1177_v13  ;;  %2739 = vlog2.f32 %v1202_v8  ;;  %v1205_v39 = vmul.f32 -0.5, %v4048_v43 }
 0x110   :  { %2398 = vst [vmem:[#allocation7 + $0x1b0] sm:$0xff] %v2270_v21  ;;  %v1887_v62 = vmul.f32 10.0, %v1183_v57  ;;  %v1211_v40 = vadd.f32 1.0, %v4060_v17  ;;  %vm4069_vm0 = vcmp.lt.f32.partialorder %v1190_v48, 0.0004427343  ;;  %v357_v5 = vsub.f32 %v101_v46, %v229_v52  ;;  %v105_v57 = vld [vmem:[#allocation2 + $0x208] sm:$0xff] }
 0x111   :  { %v2736_v1 = vpop.eup %2735  ;;  %v2546_v51 = vadd.f32 7.917595, %v3998_v31  ;;  %v4074_v29 = vand.u32 2147483647, %v356_v38  ;;  %vm2144_vm1 = vcmp.lt.f32.partialorder %v3998_v31, 10.0  ;;  %v1198_v41 = vmul.f32 %v1197_v59, %v4022_v45  ;;  %v233_v59 = vld [vmem:[#allocation5 + $0x208] sm:$0xff] }
 0x112   :  { %v2271_v27 = vsel %vm2143_vm15, %v1887_v62, %v2545_v30  ;;  %v1186_v36 = vmul.f32 0.6931472, %v2736_v1  ;;  %2741 = vlog2.f32 %v1211_v40  ;;  %vm4080_vm2 = vcmp.lt.f32.partialorder %v1199_v53, 0.0004427343 }
 0x113   :  { %2399 = vst [vmem:[#allocation7 + $0x1b8] sm:$0xff] %v2271_v27  ;;  %v1214_v33 = vmul.f32 -0.5, %v4060_v17  ;;  %v4086_v16 = vmul.f32 0.5, %v4074_v29  ;;  %v1206_v44 = vadd.f32 1.0, %v1205_v39  ;;  %v1208_v18 = vand.u32 2147483647, %v4048_v43 }
 0x114   :  { %v2738_v47 = vpop.eup %2737  ;;  %v1192_v42 = vsel %vm4069_vm0, %v1189_v63, %v1186_v36  ;;  %v4091_v19 = vand.u32 2147483647, %v357_v5  ;;  %v358_v49 = vsub.f32 %v102_v25, %v230_v32  ;;  %v2547_v14 = vadd.f32 7.917595, %v4015_v15 }
 0x115   :  { %v1888_v6 = vmul.f32 10.0, %v1192_v42  ;;  %v1195_v20 = vmul.f32 0.6931472, %v2738_v47  ;;  %v1220_v45 = vadd.f32 1.0, %v4086_v16  ;;  %vm2145_vm3 = vcmp.lt.f32.partialorder %v4015_v15, 10.0  ;;  %v234_v42 = vld [vmem:[#allocation5 + $0x210] sm:$0xff] }
 0x116   :  { %v1217_v24 = vand.u32 2147483647, %v4060_v17  ;;  %v4098_v50 = vmul.f32 0.5, %v4091_v19  ;;  %v1215_v54 = vadd.f32 1.0, %v1214_v33  ;;  %v1207_v35 = vmul.f32 %v1206_v44, %v4048_v43  ;;  %v104_v43 = vld [vmem:[#allocation2 + $0x200] sm:$0xff] }
 0x117   :  { %v2272_v55 = vsel %vm2144_vm1, %v1888_v6, %v2546_v51  ;;  %v1201_v28 = vsel %vm4080_vm2, %v1198_v41, %v1195_v20  ;;  %2743 = vlog2.f32 %v1220_v45  ;;  %v1223_v56 = vmul.f32 -0.5, %v4086_v16 }
 0x118   :  { %2400 = vst [vmem:[#allocation7 + $0x1c0] sm:$0xff] %v2272_v55  ;;  %v1889_v9 = vmul.f32 10.0, %v1201_v28  ;;  %v1229_v26 = vadd.f32 1.0, %v4098_v50  ;;  %vm4107_vm4 = vcmp.lt.f32.partialorder %v1208_v18, 0.0004427343  ;;  %v359_v11 = vsub.f32 %v103_v3, %v231_v22  ;;  %v107_v28 = vld [vmem:[#allocation2 + $0x218] sm:$0xff] }
 0x119   :  { %v2740_v37 = vpop.eup %2739  ;;  %v2548_v31 = vadd.f32 7.917595, %v4036_v58  ;;  %v4112_v2 = vand.u32 2147483647, %v358_v49  ;;  %vm2146_vm5 = vcmp.lt.f32.partialorder %v4036_v58, 10.0  ;;  %v1216_v34 = vmul.f32 %v1215_v54, %v4060_v17  ;;  %v235_v54 = vld [vmem:[#allocation5 + $0x218] sm:$0xff] }
 0x11a   :  { %v2273_v0 = vsel %vm2145_vm3, %v1889_v9, %v2547_v14  ;;  %v1204_v7 = vmul.f32 0.6931472, %v2740_v37  ;;  %2745 = vlog2.f32 %v1229_v26  ;;  %vm4118_vm6 = vcmp.lt.f32.partialorder %v1217_v24, 0.0004427343 }
 0x11b   :  { %2401 = vst [vmem:[#allocation7 + $0x1c8] sm:$0xff] %v2273_v0  ;;  %v1232_v61 = vmul.f32 -0.5, %v4098_v50  ;;  %v4124_v13 = vmul.f32 0.5, %v4112_v2  ;;  %v1224_v38 = vadd.f32 1.0, %v1223_v56  ;;  %v1226_v46 = vand.u32 2147483647, %v4086_v16 }
 0x11c   :  { %v2742_v15 = vpop.eup %2741  ;;  %v1210_v8 = vsel %vm4107_vm4, %v1207_v35, %v1204_v7  ;;  %v4129_v52 = vand.u32 2147483647, %v359_v11  ;;  %v360_v21 = vsub.f32 %v104_v43, %v232_v4  ;;  %v2549_v62 = vadd.f32 7.917595, %v4053_v12 }
 0x11d   :  { %v1890_v30 = vmul.f32 10.0, %v1210_v8  ;;  %v1213_v53 = vmul.f32 0.6931472, %v2742_v15  ;;  %v1238_v17 = vadd.f32 1.0, %v4124_v13  ;;  %vm2147_vm7 = vcmp.lt.f32.partialorder %v4053_v12, 10.0  ;;  %v236_v8 = vld [vmem:[#allocation5 + $0x220] sm:$0xff] }
 0x11e   :  { %v1235_v63 = vand.u32 2147483647, %v4098_v50  ;;  %v4136_v39 = vmul.f32 0.5, %v4129_v52  ;;  %v1233_v23 = vadd.f32 1.0, %v1232_v61  ;;  %v1225_v5 = vmul.f32 %v1224_v38, %v4086_v16  ;;  %v106_v16 = vld [vmem:[#allocation2 + $0x210] sm:$0xff] }
 0x11f   :  { %v2274_v40 = vsel %vm2146_vm5, %v1890_v30, %v2548_v31  ;;  %v1219_v1 = vsel %vm4118_vm6, %v1216_v34, %v1213_v53  ;;  %2747 = vlog2.f32 %v1238_v17  ;;  %v1241_v27 = vmul.f32 -0.5, %v4124_v13 }
 0x120   :  { %2402 = vst [vmem:[#allocation7 + $0x1d0] sm:$0xff] %v2274_v40  ;;  %v1891_v51 = vmul.f32 10.0, %v1219_v1  ;;  %v1247_v36 = vadd.f32 1.0, %v4136_v39  ;;  %vm4145_vm8 = vcmp.lt.f32.partialorder %v1226_v46, 0.0004427343  ;;  %v361_v10 = vsub.f32 %v105_v57, %v233_v59  ;;  %v109_v1 = vld [vmem:[#allocation2 + $0x228] sm:$0xff] }
 0x121   :  { %v2744_v25 = vpop.eup %2743  ;;  %v2550_v58 = vadd.f32 7.917595, %v4074_v29  ;;  %v4150_v41 = vand.u32 2147483647, %v360_v21  ;;  %vm2148_vm9 = vcmp.lt.f32.partialorder %v4074_v29, 10.0  ;;  %v1234_v44 = vmul.f32 %v1233_v23, %v4098_v50  ;;  %v237_v23 = vld [vmem:[#allocation5 + $0x228] sm:$0xff] }
 0x122   :  { %v2275_v33 = vsel %vm2147_vm7, %v1891_v51, %v2549_v62  ;;  %v1222_v47 = vmul.f32 0.6931472, %v2744_v25  ;;  %2749 = vlog2.f32 %v1247_v36  ;;  %vm4156_vm10 = vcmp.lt.f32.partialorder %v1235_v63, 0.0004427343 }
 0x123   :  { %2403 = vst [vmem:[#allocation7 + $0x1d8] sm:$0xff] %v2275_v33  ;;  %v1250_v6 = vmul.f32 -0.5, %v4136_v39  ;;  %v4162_v20 = vmul.f32 0.5, %v4150_v41  ;;  %v1242_v49 = vadd.f32 1.0, %v1241_v27  ;;  %v1244_v3 = vand.u32 2147483647, %v4124_v13 }
 0x124   :  { %v2746_v12 = vpop.eup %2745  ;;  %v1228_v45 = vsel %vm4145_vm8, %v1225_v5, %v1222_v47  ;;  %v4167_v22 = vand.u32 2147483647, %v361_v10  ;;  %v362_v55 = vsub.f32 %v106_v16, %v234_v42  ;;  %v2551_v9 = vadd.f32 7.917595, %v4091_v19 }
 0x125   :  { %v1892_v14 = vmul.f32 10.0, %v1228_v45  ;;  %v1231_v24 = vmul.f32 0.6931472, %v2746_v12  ;;  %v1256_v50 = vadd.f32 1.0, %v4162_v20  ;;  %vm2149_vm11 = vcmp.lt.f32.partialorder %v4091_v19, 10.0  ;;  %v238_v45 = vld [vmem:[#allocation5 + $0x230] sm:$0xff] }
 0x126   :  { %v1253_v35 = vand.u32 2147483647, %v4136_v39  ;;  %v4174_v56 = vmul.f32 0.5, %v4167_v22  ;;  %v1251_v60 = vadd.f32 1.0, %v1250_v6  ;;  %v1243_v11 = vmul.f32 %v1242_v49, %v4124_v13  ;;  %v108_v13 = vld [vmem:[#allocation2 + $0x220] sm:$0xff] }
 0x127   :  { %v2276_v26 = vsel %vm2148_vm9, %v1892_v14, %v2550_v58  ;;  %v1237_v37 = vsel %vm4156_vm10, %v1234_v44, %v1231_v24  ;;  %2751 = vlog2.f32 %v1256_v50  ;;  %v1259_v0 = vmul.f32 -0.5, %v4162_v20 }
 0x128   :  { %2404 = vst [vmem:[#allocation7 + $0x1e0] sm:$0xff] %v2276_v26  ;;  %v1893_v31 = vmul.f32 10.0, %v1237_v37  ;;  %v1265_v7 = vadd.f32 1.0, %v4174_v56  ;;  %vm4183_vm12 = vcmp.lt.f32.partialorder %v1244_v3, 0.0004427343  ;;  %v363_v48 = vsub.f32 %v107_v28, %v235_v54  ;;  %v111_v37 = vld [vmem:[#allocation2 + $0x238] sm:$0xff] }
 0x129   :  { %v2748_v43 = vpop.eup %2747  ;;  %v2552_v29 = vadd.f32 7.917595, %v4112_v2  ;;  %v4188_v34 = vand.u32 2147483647, %v362_v55  ;;  %vm2150_vm13 = vcmp.lt.f32.partialorder %v4112_v2, 10.0  ;;  %v1252_v38 = vmul.f32 %v1251_v60, %v4136_v39  ;;  %v239_v60 = vld [vmem:[#allocation5 + $0x238] sm:$0xff] }
 0x12a   :  { %v2277_v61 = vsel %vm2149_vm11, %v1893_v31, %v2551_v9  ;;  %v1240_v15 = vmul.f32 0.6931472, %v2748_v43  ;;  %2753 = vlog2.f32 %v1265_v7  ;;  %vm4194_vm14 = vcmp.lt.f32.partialorder %v1253_v35, 0.0004427343 }
 0x12b   :  { %2405 = vst [vmem:[#allocation7 + $0x1e8] sm:$0xff] %v2277_v61  ;;  %v1268_v30 = vmul.f32 -0.5, %v4174_v56  ;;  %v4200_v53 = vmul.f32 0.5, %v4188_v34  ;;  %v1260_v21 = vadd.f32 1.0, %v1259_v0  ;;  %v1262_v57 = vand.u32 2147483647, %v4162_v20 }
 0x12c   :  { %v2750_v19 = vpop.eup %2749  ;;  %v1246_v17 = vsel %vm4183_vm12, %v1243_v11, %v1240_v15  ;;  %v4205_v59 = vand.u32 2147483647, %v363_v48  ;;  %v364_v40 = vsub.f32 %v108_v13, %v236_v8  ;;  %v2553_v51 = vadd.f32 7.917595, %v4129_v52 }
 0x12d   :  { %v1894_v62 = vmul.f32 10.0, %v1246_v17  ;;  %v1249_v63 = vmul.f32 0.6931472, %v2750_v19  ;;  %v1274_v39 = vadd.f32 1.0, %v4200_v53  ;;  %vm2151_vm15 = vcmp.lt.f32.partialorder %v4129_v52, 10.0  ;;  %v240_v17 = vld [vmem:[#allocation5 + $0x240] sm:$0xff] }
 0x12e   :  { %v1271_v5 = vand.u32 2147483647, %v4174_v56  ;;  %v4212_v27 = vmul.f32 0.5, %v4205_v59  ;;  %v1269_v32 = vadd.f32 1.0, %v1268_v30  ;;  %v1261_v10 = vmul.f32 %v1260_v21, %v4162_v20  ;;  %v110_v20 = vld [vmem:[#allocation2 + $0x230] sm:$0xff] }
 0x12f   :  { %v2278_v36 = vsel %vm2150_vm13, %v1894_v62, %v2552_v29  ;;  %v1255_v25 = vsel %vm4194_vm14, %v1252_v38, %v1249_v63  ;;  %2755 = vlog2.f32 %v1274_v39  ;;  %v1277_v33 = vmul.f32 -0.5, %v4200_v53 }
 0x130   :  { %2406 = vst [vmem:[#allocation7 + $0x1f0] sm:$0xff] %v2278_v36  ;;  %v1895_v58 = vmul.f32 10.0, %v1255_v25  ;;  %v1283_v47 = vadd.f32 1.0, %v4212_v27  ;;  %vm4221_vm0 = vcmp.lt.f32.partialorder %v1262_v57, 0.0004427343  ;;  %v365_v18 = vsub.f32 %v109_v1, %v237_v23  ;;  %v113_v25 = vld [vmem:[#allocation2 + $0x248] sm:$0xff] }
 0x131   :  { %v2752_v16 = vpop.eup %2751  ;;  %v2554_v2 = vadd.f32 7.917595, %v4150_v41  ;;  %v4226_v44 = vand.u32 2147483647, %v364_v40  ;;  %vm2152_vm1 = vcmp.lt.f32.partialorder %v4150_v41, 10.0  ;;  %v1270_v49 = vmul.f32 %v1269_v32, %v4174_v56  ;;  %v241_v32 = vld [vmem:[#allocation5 + $0x248] sm:$0xff] }
 0x132   :  { %v2279_v6 = vsel %vm2151_vm15, %v1895_v58, %v2553_v51  ;;  %v1258_v12 = vmul.f32 0.6931472, %v2752_v16  ;;  %2757 = vlog2.f32 %v1283_v47  ;;  %vm4232_vm2 = vcmp.lt.f32.partialorder %v1271_v5, 0.0004427343 }
 0x133   :  { %2407 = vst [vmem:[#allocation7 + $0x1f8] sm:$0xff] %v2279_v6  ;;  %v1286_v14 = vmul.f32 -0.5, %v4212_v27  ;;  %v4238_v24 = vmul.f32 0.5, %v4226_v44  ;;  %v1278_v55 = vadd.f32 1.0, %v1277_v33  ;;  %v1280_v28 = vand.u32 2147483647, %v4200_v53 }
 0x134   :  { %v2754_v52 = vpop.eup %2753  ;;  %v1264_v50 = vsel %vm4221_vm0, %v1261_v10, %v1258_v12  ;;  %v4243_v54 = vand.u32 2147483647, %v365_v18  ;;  %v366_v26 = vsub.f32 %v110_v20, %v238_v45  ;;  %v2555_v31 = vadd.f32 7.917595, %v4167_v22 }
 0x135   :  { %v1896_v9 = vmul.f32 10.0, %v1264_v50  ;;  %v1267_v35 = vmul.f32 0.6931472, %v2754_v52  ;;  %v1292_v56 = vadd.f32 1.0, %v4238_v24  ;;  %vm2153_vm3 = vcmp.lt.f32.partialorder %v4167_v22, 10.0  ;;  %v242_v50 = vld [vmem:[#allocation5 + $0x250] sm:$0xff] }
 0x136   :  { %v1289_v11 = vand.u32 2147483647, %v4212_v27  ;;  %v4250_v0 = vmul.f32 0.5, %v4243_v54  ;;  %v1287_v4 = vadd.f32 1.0, %v1286_v14  ;;  %v1279_v48 = vmul.f32 %v1278_v55, %v4200_v53  ;;  %v112_v53 = vld [vmem:[#allocation2 + $0x240] sm:$0xff] }
 0x137   :  { %v2280_v7 = vsel %vm2152_vm1, %v1896_v9, %v2554_v2  ;;  %v1273_v43 = vsel %vm4232_vm2, %v1270_v49, %v1267_v35  ;;  %2759 = vlog2.f32 %v1292_v56  ;;  %v1295_v61 = vmul.f32 -0.5, %v4238_v24 }
 0x138   :  { %2408 = vst [vmem:[#allocation7 + $0x200] sm:$0xff] %v2280_v7  ;;  %v1897_v29 = vmul.f32 10.0, %v1273_v43  ;;  %v1301_v15 = vadd.f32 1.0, %v4250_v0  ;;  %vm4259_vm4 = vcmp.lt.f32.partialorder %v1280_v28, 0.0004427343  ;;  %v367_v46 = vsub.f32 %v111_v37, %v239_v60  ;;  %v115_v43 = vld [vmem:[#allocation2 + $0x258] sm:$0xff] }
 0x139   :  { %v2756_v13 = vpop.eup %2755  ;;  %v2556_v41 = vadd.f32 7.917595, %v4188_v34  ;;  %v4264_v38 = vand.u32 2147483647, %v366_v26  ;;  %vm2154_vm5 = vcmp.lt.f32.partialorder %v4188_v34, 10.0  ;;  %v1288_v21 = vmul.f32 %v1287_v4, %v4212_v27  ;;  %v243_v4 = vld [vmem:[#allocation5 + $0x258] sm:$0xff] }
 0x13a   :  { %v2281_v30 = vsel %vm2153_vm3, %v1897_v29, %v2555_v31  ;;  %v1276_v19 = vmul.f32 0.6931472, %v2756_v13  ;;  %2761 = vlog2.f32 %v1301_v15  ;;  %vm4270_vm6 = vcmp.lt.f32.partialorder %v1289_v11, 0.0004427343 }
 0x13b   :  { %2409 = vst [vmem:[#allocation7 + $0x208] sm:$0xff] %v2281_v30  ;;  %v1304_v62 = vmul.f32 -0.5, %v4250_v0  ;;  %v4276_v63 = vmul.f32 0.5, %v4264_v38  ;;  %v1296_v40 = vadd.f32 1.0, %v1295_v61  ;;  %v1298_v1 = vand.u32 2147483647, %v4238_v24 }
 0x13c   :  { %v2758_v22 = vpop.eup %2757  ;;  %v1282_v39 = vsel %vm4259_vm4, %v1279_v48, %v1276_v19  ;;  %v4281_v23 = vand.u32 2147483647, %v367_v46  ;;  %v368_v36 = vsub.f32 %v112_v53, %v240_v17  ;;  %v2557_v58 = vadd.f32 7.917595, %v4205_v59 }
 0x13d   :  { %v1898_v51 = vmul.f32 10.0, %v1282_v39  ;;  %v1285_v5 = vmul.f32 0.6931472, %v2758_v22  ;;  %v1310_v27 = vadd.f32 1.0, %v4276_v63  ;;  %vm2155_vm7 = vcmp.lt.f32.partialorder %v4205_v59, 10.0  ;;  %v244_v39 = vld [vmem:[#allocation5 + $0x260] sm:$0xff] }
 0x13e   :  { %v1307_v10 = vand.u32 2147483647, %v4250_v0  ;;  %v4288_v33 = vmul.f32 0.5, %v4281_v23  ;;  %v1305_v42 = vadd.f32 1.0, %v1304_v62  ;;  %v1297_v18 = vmul.f32 %v1296_v40, %v4238_v24  ;;  %v114_v24 = vld [vmem:[#allocation2 + $0x250] sm:$0xff] }
 0x13f   :  { %v2282_v47 = vsel %vm2154_vm5, %v1898_v51, %v2556_v41  ;;  %v1291_v16 = vsel %vm4270_vm6, %v1288_v21, %v1285_v5  ;;  %2763 = vlog2.f32 %v1310_v27  ;;  %v1313_v6 = vmul.f32 -0.5, %v4276_v63 }
 0x140   :  { %2410 = vst [vmem:[#allocation7 + $0x210] sm:$0xff] %v2282_v47  ;;  %v1899_v2 = vmul.f32 10.0, %v1291_v16  ;;  %v1319_v12 = vadd.f32 1.0, %v4288_v33  ;;  %vm4297_vm8 = vcmp.lt.f32.partialorder %v1298_v1, 0.0004427343  ;;  %v369_v3 = vsub.f32 %v113_v25, %v241_v32  ;;  %v117_v16 = vld [vmem:[#allocation2 + $0x268] sm:$0xff] }
 0x141   :  { %v2760_v20 = vpop.eup %2759  ;;  %v2558_v34 = vadd.f32 7.917595, %v4226_v44  ;;  %v4302_v49 = vand.u32 2147483647, %v368_v36  ;;  %vm2156_vm9 = vcmp.lt.f32.partialorder %v4226_v44, 10.0  ;;  %v1306_v55 = vmul.f32 %v1305_v42, %v4250_v0  ;;  %v245_v42 = vld [vmem:[#allocation5 + $0x268] sm:$0xff] }
 0x142   :  { %v2283_v14 = vsel %vm2155_vm7, %v1899_v2, %v2557_v58  ;;  %v1294_v52 = vmul.f32 0.6931472, %v2760_v20  ;;  %2765 = vlog2.f32 %v1319_v12  ;;  %vm4308_vm10 = vcmp.lt.f32.partialorder %v1307_v10, 0.0004427343 }
 0x143   :  { %2411 = vst [vmem:[#allocation7 + $0x218] sm:$0xff] %v2283_v14  ;;  %v1322_v9 = vmul.f32 -0.5, %v4288_v33  ;;  %v4314_v35 = vmul.f32 0.5, %v4302_v49  ;;  %v1314_v26 = vadd.f32 1.0, %v1313_v6  ;;  %v1316_v37 = vand.u32 2147483647, %v4276_v63 }
 0x144   :  { %v2762_v59 = vpop.eup %2761  ;;  %v1300_v56 = vsel %vm4297_vm8, %v1297_v18, %v1294_v52  ;;  %v4319_v60 = vand.u32 2147483647, %v369_v3  ;;  %v370_v7 = vsub.f32 %v114_v24, %v242_v50  ;;  %v2559_v29 = vadd.f32 7.917595, %v4243_v54 }
 0x145   :  { %v1900_v31 = vmul.f32 10.0, %v1300_v56  ;;  %v1303_v11 = vmul.f32 0.6931472, %v2762_v59  ;;  %v1328_v0 = vadd.f32 1.0, %v4314_v35  ;;  %vm2157_vm11 = vcmp.lt.f32.partialorder %v4243_v54, 10.0  ;;  %v246_v56 = vld [vmem:[#allocation5 + $0x270] sm:$0xff] }
 0x146   :  { %v1325_v48 = vand.u32 2147483647, %v4288_v33  ;;  %v4326_v61 = vmul.f32 0.5, %v4319_v60  ;;  %v1323_v8 = vadd.f32 1.0, %v1322_v9  ;;  %v1315_v46 = vmul.f32 %v1314_v26, %v4276_v63  ;;  %v116_v63 = vld [vmem:[#allocation2 + $0x260] sm:$0xff] }
 0x147   :  { %v2284_v15 = vsel %vm2156_vm9, %v1900_v31, %v2558_v34  ;;  %v1309_v13 = vsel %vm4308_vm10, %v1306_v55, %v1303_v11  ;;  %2767 = vlog2.f32 %v1328_v0  ;;  %v1331_v30 = vmul.f32 -0.5, %v4314_v35 }
 0x148   :  { %2412 = vst [vmem:[#allocation7 + $0x220] sm:$0xff] %v2284_v15  ;;  %v1901_v41 = vmul.f32 10.0, %v1309_v13  ;;  %v1337_v19 = vadd.f32 1.0, %v4326_v61  ;;  %vm4335_vm12 = vcmp.lt.f32.partialorder %v1316_v37, 0.0004427343  ;;  %v371_v57 = vsub.f32 %v115_v43, %v243_v4  ;;  %v119_v13 = vld [vmem:[#allocation2 + $0x278] sm:$0xff] }
 0x149   :  { %v2764_v53 = vpop.eup %2763  ;;  %v2560_v44 = vadd.f32 7.917595, %v4264_v38  ;;  %v4340_v21 = vand.u32 2147483647, %v370_v7  ;;  %vm2158_vm13 = vcmp.lt.f32.partialorder %v4264_v38, 10.0  ;;  %v1324_v40 = vmul.f32 %v1323_v8, %v4288_v33  ;;  %v247_v8 = vld [vmem:[#allocation5 + $0x278] sm:$0xff] }
 0x14a   :  { %v2285_v62 = vsel %vm2157_vm11, %v1901_v41, %v2559_v29  ;;  %v1312_v22 = vmul.f32 0.6931472, %v2764_v53  ;;  %2769 = vlog2.f32 %v1337_v19  ;;  %vm4346_vm14 = vcmp.lt.f32.partialorder %v1325_v48, 0.0004427343 }
 0x14b   :  { %2413 = vst [vmem:[#allocation7 + $0x228] sm:$0xff] %v2285_v62  ;;  %v1340_v51 = vmul.f32 -0.5, %v4326_v61  ;;  %v4352_v5 = vmul.f32 0.5, %v4340_v21  ;;  %v1332_v36 = vadd.f32 1.0, %v1331_v30  ;;  %v1334_v25 = vand.u32 2147483647, %v4314_v35 }
 0x14c   :  { %v2766_v54 = vpop.eup %2765  ;;  %v1318_v27 = vsel %vm4335_vm12, %v1315_v46, %v1312_v22  ;;  %v4357_v32 = vand.u32 2147483647, %v371_v57  ;;  %v372_v47 = vsub.f32 %v116_v63, %v244_v39  ;;  %v2561_v2 = vadd.f32 7.917595, %v4281_v23 }
 0x14d   :  { %v1902_v58 = vmul.f32 10.0, %v1318_v27  ;;  %v1321_v10 = vmul.f32 0.6931472, %v2766_v54  ;;  %v1346_v33 = vadd.f32 1.0, %v4352_v5  ;;  %vm2159_vm15 = vcmp.lt.f32.partialorder %v4281_v23, 10.0  ;;  %v248_v27 = vld [vmem:[#allocation5 + $0x280] sm:$0xff] }
 0x14e   :  { %v1343_v18 = vand.u32 2147483647, %v4326_v61  ;;  %v4364_v6 = vmul.f32 0.5, %v4357_v32  ;;  %v1341_v45 = vadd.f32 1.0, %v1340_v51  ;;  %v1333_v3 = vmul.f32 %v1332_v36, %v4314_v35  ;;  %v118_v35 = vld [vmem:[#allocation2 + $0x270] sm:$0xff] }
 0x14f   :  { %v2286_v12 = vsel %vm2158_vm13, %v1902_v58, %v2560_v44  ;;  %v1327_v20 = vsel %vm4346_vm14, %v1324_v40, %v1321_v10  ;;  %2771 = vlog2.f32 %v1346_v33  ;;  %v1349_v14 = vmul.f32 -0.5, %v4352_v5 }
 0x150   :  { %2414 = vst [vmem:[#allocation7 + $0x230] sm:$0xff] %v2286_v12  ;;  %v1903_v34 = vmul.f32 10.0, %v1327_v20  ;;  %v1355_v52 = vadd.f32 1.0, %v4364_v6  ;;  %vm4373_vm0 = vcmp.lt.f32.partialorder %v1334_v25, 0.0004427343  ;;  %v373_v28 = vsub.f32 %v117_v16, %v245_v42  ;;  %v121_v20 = vld [vmem:[#allocation2 + $0x288] sm:$0xff] }
 0x151   :  { %v2768_v24 = vpop.eup %2767  ;;  %v2562_v38 = vadd.f32 7.917595, %v4302_v49  ;;  %v4378_v55 = vand.u32 2147483647, %v372_v47  ;;  %vm2160_vm1 = vcmp.lt.f32.partialorder %v4302_v49, 10.0  ;;  %v1342_v26 = vmul.f32 %v1341_v45, %v4326_v61  ;;  %v249_v45 = vld [vmem:[#allocation5 + $0x288] sm:$0xff] }
 0x152   :  { %v2287_v9 = vsel %vm2159_vm15, %v1903_v34, %v2561_v2  ;;  %v1330_v59 = vmul.f32 0.6931472, %v2768_v24  ;;  %2773 = vlog2.f32 %v1355_v52  ;;  %vm4384_vm2 = vcmp.lt.f32.partialorder %v1343_v18, 0.0004427343 }
 0x153   :  { %2415 = vst [vmem:[#allocation7 + $0x238] sm:$0xff] %v2287_v9  ;;  %v1358_v31 = vmul.f32 -0.5, %v4364_v6  ;;  %v4390_v11 = vmul.f32 0.5, %v4378_v55  ;;  %v1350_v7 = vadd.f32 1.0, %v1349_v14  ;;  %v1352_v43 = vand.u32 2147483647, %v4352_v5 }
 0x154   :  { %v2770_v23 = vpop.eup %2769  ;;  %v1336_v0 = vsel %vm4373_vm0, %v1333_v3, %v1330_v59  ;;  %v4395_v4 = vand.u32 2147483647, %v373_v28  ;;  %v374_v15 = vsub.f32 %v118_v35, %v246_v56  ;;  %v2563_v41 = vadd.f32 7.917595, %v4319_v60 }
 0x155   :  { %v1904_v29 = vmul.f32 10.0, %v1336_v0  ;;  %v1339_v48 = vmul.f32 0.6931472, %v2770_v23  ;;  %v1364_v61 = vadd.f32 1.0, %v4390_v11  ;;  %vm2161_vm3 = vcmp.lt.f32.partialorder %v4319_v60, 10.0  ;;  %v250_v0 = vld [vmem:[#allocation5 + $0x290] sm:$0xff] }
 0x156   :  { %v1361_v46 = vand.u32 2147483647, %v4364_v6  ;;  %v4402_v30 = vmul.f32 0.5, %v4395_v4  ;;  %v1359_v17 = vadd.f32 1.0, %v1358_v31  ;;  %v1351_v57 = vmul.f32 %v1350_v7, %v4352_v5  ;;  %v120_v5 = vld [vmem:[#allocation2 + $0x280] sm:$0xff] }
 0x157   :  { %v2288_v19 = vsel %vm2160_vm1, %v1904_v29, %v2562_v38  ;;  %v1345_v53 = vsel %vm4384_vm2, %v1342_v26, %v1339_v48  ;;  %2775 = vlog2.f32 %v1364_v61  ;;  %v1367_v62 = vmul.f32 -0.5, %v4390_v11 }
 0x158   :  { %2416 = vst [vmem:[#allocation7 + $0x240] sm:$0xff] %v2288_v19  ;;  %v1905_v44 = vmul.f32 10.0, %v1345_v53  ;;  %v1373_v22 = vadd.f32 1.0, %v4402_v30  ;;  %vm4411_vm4 = vcmp.lt.f32.partialorder %v1352_v43, 0.0004427343  ;;  %v375_v1 = vsub.f32 %v119_v13, %v247_v8  ;;  %v123_v53 = vld [vmem:[#allocation2 + $0x298] sm:$0xff] }
 0x159   :  { %v2772_v63 = vpop.eup %2771  ;;  %v2564_v49 = vadd.f32 7.917595, %v4340_v21  ;;  %v4416_v40 = vand.u32 2147483647, %v374_v15  ;;  %vm2162_vm5 = vcmp.lt.f32.partialorder %v4340_v21, 10.0  ;;  %v1360_v36 = vmul.f32 %v1359_v17, %v4364_v6  ;;  %v251_v17 = vld [vmem:[#allocation5 + $0x298] sm:$0xff] }
 0x15a   :  { %v2289_v51 = vsel %vm2161_vm3, %v1905_v44, %v2563_v41  ;;  %v1348_v54 = vmul.f32 0.6931472, %v2772_v63  ;;  %2777 = vlog2.f32 %v1373_v22  ;;  %vm4422_vm6 = vcmp.lt.f32.partialorder %v1361_v46, 0.0004427343 }
 0x15b   :  { %2417 = vst [vmem:[#allocation7 + $0x248] sm:$0xff] %v2289_v51  ;;  %v1376_v58 = vmul.f32 -0.5, %v4402_v30  ;;  %v4428_v10 = vmul.f32 0.5, %v4416_v40  ;;  %v1368_v47 = vadd.f32 1.0, %v1367_v62  ;;  %v1370_v16 = vand.u32 2147483647, %v4390_v11 }
 0x15c   :  { %v2774_v60 = vpop.eup %2773  ;;  %v1354_v33 = vsel %vm4411_vm4, %v1351_v57, %v1348_v54  ;;  %v4433_v42 = vand.u32 2147483647, %v375_v1  ;;  %v376_v12 = vsub.f32 %v120_v5, %v248_v27  ;;  %v2565_v34 = vadd.f32 7.917595, %v4357_v32 }
 0x15d   :  { %v1906_v2 = vmul.f32 10.0, %v1354_v33  ;;  %v1357_v18 = vmul.f32 0.6931472, %v2774_v60  ;;  %v1382_v6 = vadd.f32 1.0, %v4428_v10  ;;  %vm2163_vm7 = vcmp.lt.f32.partialorder %v4357_v32, 10.0  ;;  %v252_v33 = vld [vmem:[#allocation5 + $0x2a0] sm:$0xff] }
 0x15e   :  { %v1379_v3 = vand.u32 2147483647, %v4402_v30  ;;  %v4440_v14 = vmul.f32 0.5, %v4433_v42  ;;  %v1377_v50 = vadd.f32 1.0, %v1376_v58  ;;  %v1369_v28 = vmul.f32 %v1368_v47, %v4390_v11  ;;  %v122_v11 = vld [vmem:[#allocation2 + $0x290] sm:$0xff] }
 0x15f   :  { %v2290_v52 = vsel %vm2162_vm5, %v1906_v2, %v2564_v49  ;;  %v1363_v24 = vsel %vm4422_vm6, %v1360_v36, %v1357_v18  ;;  %2779 = vlog2.f32 %v1382_v6  ;;  %v1385_v9 = vmul.f32 -0.5, %v4428_v10 }
 0x160   :  { %2418 = vst [vmem:[#allocation7 + $0x250] sm:$0xff] %v2290_v52  ;;  %v1907_v38 = vmul.f32 10.0, %v1363_v24  ;;  %v1391_v59 = vadd.f32 1.0, %v4440_v14  ;;  %vm4449_vm8 = vcmp.lt.f32.partialorder %v1370_v16, 0.0004427343  ;;  %v377_v37 = vsub.f32 %v121_v20, %v249_v45  ;;  %v125_v24 = vld [vmem:[#allocation2 + $0x2a8] sm:$0xff] }
 0x161   :  { %v2776_v35 = vpop.eup %2775  ;;  %v2566_v21 = vadd.f32 7.917595, %v4378_v55  ;;  %v4454_v26 = vand.u32 2147483647, %v376_v12  ;;  %vm2164_vm9 = vcmp.lt.f32.partialorder %v4378_v55, 10.0  ;;  %v1378_v7 = vmul.f32 %v1377_v50, %v4402_v30  ;;  %v253_v50 = vld [vmem:[#allocation5 + $0x2a8] sm:$0xff] }
 0x162   :  { %v2291_v31 = vsel %vm2163_vm7, %v1907_v38, %v2565_v34  ;;  %v1366_v23 = vmul.f32 0.6931472, %v2776_v35  ;;  %2781 = vlog2.f32 %v1391_v59  ;;  %vm4460_vm10 = vcmp.lt.f32.partialorder %v1379_v3, 0.0004427343 }
 0x163   :  { %2419 = vst [vmem:[#allocation7 + $0x258] sm:$0xff] %v2291_v31  ;;  %v1394_v29 = vmul.f32 -0.5, %v4440_v14  ;;  %v4466_v48 = vmul.f32 0.5, %v4454_v26  ;;  %v1386_v15 = vadd.f32 1.0, %v1385_v9  ;;  %v1388_v13 = vand.u32 2147483647, %v4428_v10 }
 0x164   :  { %v2778_v32 = vpop.eup %2777  ;;  %v1372_v61 = vsel %vm4449_vm8, %v1369_v28, %v1366_v23  ;;  %v4471_v8 = vand.u32 2147483647, %v377_v37  ;;  %v378_v19 = vsub.f32 %v122_v11, %v250_v0  ;;  %v2567_v44 = vadd.f32 7.917595, %v4395_v4 }
 0x165   :  { %v1908_v41 = vmul.f32 10.0, %v1372_v61  ;;  %v1375_v46 = vmul.f32 0.6931472, %v2778_v32  ;;  %v1400_v30 = vadd.f32 1.0, %v4466_v48  ;;  %vm2165_vm11 = vcmp.lt.f32.partialorder %v4395_v4, 10.0  ;;  %v254_v61 = vld [vmem:[#allocation5 + $0x2b0] sm:$0xff] }
 0x166   :  { %v1397_v57 = vand.u32 2147483647, %v4440_v14  ;;  %v4478_v62 = vmul.f32 0.5, %v4471_v8  ;;  %v1395_v39 = vadd.f32 1.0, %v1394_v29  ;;  %v1387_v1 = vmul.f32 %v1386_v15, %v4428_v10  ;;  %v124_v10 = vld [vmem:[#allocation2 + $0x2a0] sm:$0xff] }
 0x167   :  { %v2292_v22 = vsel %vm2164_vm9, %v1908_v41, %v2566_v21  ;;  %v1381_v63 = vsel %vm4460_vm10, %v1378_v7, %v1375_v46  ;;  %2783 = vlog2.f32 %v1400_v30  ;;  %v1403_v51 = vmul.f32 -0.5, %v4466_v48 }
 0x168   :  { %2420 = vst [vmem:[#allocation7 + $0x260] sm:$0xff] %v2292_v22  ;;  %v1909_v49 = vmul.f32 10.0, %v1381_v63  ;;  %v1409_v54 = vadd.f32 1.0, %v4478_v62  ;;  %vm4487_vm12 = vcmp.lt.f32.partialorder %v1388_v13, 0.0004427343  ;;  %v379_v25 = vsub.f32 %v123_v53, %v251_v17  ;;  %v127_v63 = vld [vmem:[#allocation2 + $0x2b8] sm:$0xff] }
 0x169   :  { %v2780_v5 = vpop.eup %2779  ;;  %v2568_v55 = vadd.f32 7.917595, %v4416_v40  ;;  %v4492_v36 = vand.u32 2147483647, %v378_v19  ;;  %vm2166_vm13 = vcmp.lt.f32.partialorder %v4416_v40, 10.0  ;;  %v1396_v47 = vmul.f32 %v1395_v39, %v4440_v14  ;;  %v255_v39 = vld [vmem:[#allocation5 + $0x2b8] sm:$0xff] }
 0x16a   :  { %v2293_v58 = vsel %vm2165_vm11, %v1909_v49, %v2567_v44  ;;  %v1384_v60 = vmul.f32 0.6931472, %v2780_v5  ;;  %2785 = vlog2.f32 %v1409_v54  ;;  %vm4498_vm14 = vcmp.lt.f32.partialorder %v1397_v57, 0.0004427343 }
 0x16b   :  { %2421 = vst [vmem:[#allocation7 + $0x268] sm:$0xff] %v2293_v58  ;;  %v1412_v2 = vmul.f32 -0.5, %v4478_v62  ;;  %v4504_v18 = vmul.f32 0.5, %v4492_v36  ;;  %v1404_v12 = vadd.f32 1.0, %v1403_v51  ;;  %v1406_v20 = vand.u32 2147483647, %v4466_v48 }
 0x16c   :  { %v2782_v4 = vpop.eup %2781  ;;  %v1390_v6 = vsel %vm4487_vm12, %v1387_v1, %v1384_v60  ;;  %v4509_v45 = vand.u32 2147483647, %v379_v25  ;;  %v380_v52 = vsub.f32 %v124_v10, %v252_v33  ;;  %v2569_v38 = vadd.f32 7.917595, %v4433_v42 }
 0x16d   :  { %v1910_v34 = vmul.f32 10.0, %v1390_v6  ;;  %v1393_v3 = vmul.f32 0.6931472, %v2782_v4  ;;  %v1418_v14 = vadd.f32 1.0, %v4504_v18  ;;  %vm2167_vm15 = vcmp.lt.f32.partialorder %v4433_v42, 10.0  ;;  %v256_v6 = vld [vmem:[#allocation5 + $0x2c0] sm:$0xff] }
 0x16e   :  { %v1415_v28 = vand.u32 2147483647, %v4478_v62  ;;  %v4516_v9 = vmul.f32 0.5, %v4509_v45  ;;  %v1413_v56 = vadd.f32 1.0, %v1412_v2  ;;  %v1405_v37 = vmul.f32 %v1404_v12, %v4466_v48  ;;  %v126_v48 = vld [vmem:[#allocation2 + $0x2b0] sm:$0xff] }
 0x16f   :  { %v2294_v59 = vsel %vm2166_vm13, %v1910_v34, %v2568_v55  ;;  %v1399_v35 = vsel %vm4498_vm14, %v1396_v47, %v1393_v3  ;;  %2787 = vlog2.f32 %v1418_v14  ;;  %v1421_v31 = vmul.f32 -0.5, %v4504_v18 }
 0x170   :  { %2422 = vst [vmem:[#allocation7 + $0x270] sm:$0xff] %v2294_v59  ;;  %v1911_v21 = vmul.f32 10.0, %v1399_v35  ;;  %v1427_v23 = vadd.f32 1.0, %v4516_v9  ;;  %vm4525_vm0 = vcmp.lt.f32.partialorder %v1406_v20, 0.0004427343  ;;  %v381_v43 = vsub.f32 %v125_v24, %v253_v50  ;;  %v129_v35 = vld [vmem:[#allocation2 + $0x2c8] sm:$0xff] }
 0x171   :  { %v2784_v11 = vpop.eup %2783  ;;  %v2570_v40 = vadd.f32 7.917595, %v4454_v26  ;;  %v4530_v7 = vand.u32 2147483647, %v380_v52  ;;  %vm2168_vm1 = vcmp.lt.f32.partialorder %v4454_v26, 10.0  ;;  %v1414_v15 = vmul.f32 %v1413_v56, %v4478_v62  ;;  %v257_v56 = vld [vmem:[#allocation5 + $0x2c8] sm:$0xff] }
 0x172   :  { %v2295_v29 = vsel %vm2167_vm15, %v1911_v21, %v2569_v38  ;;  %v1402_v32 = vmul.f32 0.6931472, %v2784_v11  ;;  %2789 = vlog2.f32 %v1427_v23  ;;  %vm4536_vm2 = vcmp.lt.f32.partialorder %v1415_v28, 0.0004427343 }
 0x173   :  { %2423 = vst [vmem:[#allocation7 + $0x278] sm:$0xff] %v2295_v29  ;;  %v1430_v41 = vmul.f32 -0.5, %v4516_v9  ;;  %v4542_v46 = vmul.f32 0.5, %v4530_v7  ;;  %v1422_v19 = vadd.f32 1.0, %v1421_v31  ;;  %v1424_v53 = vand.u32 2147483647, %v4504_v18 }
 0x174   :  { %v2786_v42 = vpop.eup %2785  ;;  %v1408_v30 = vsel %vm4525_vm0, %v1405_v37, %v1402_v32  ;;  %v4547_v17 = vand.u32 2147483647, %v381_v43  ;;  %v382_v22 = vsub.f32 %v126_v48, %v254_v61  ;;  %v2571_v49 = vadd.f32 7.917595, %v4471_v8 }
 0x175   :  { %v1912_v44 = vmul.f32 10.0, %v1408_v30  ;;  %v1411_v57 = vmul.f32 0.6931472, %v2786_v42  ;;  %v1436_v62 = vadd.f32 1.0, %v4542_v46  ;;  %vm2169_vm3 = vcmp.lt.f32.partialorder %v4471_v8, 10.0  ;;  %v258_v30 = vld [vmem:[#allocation5 + $0x2d0] sm:$0xff] }
 0x176   :  { %v1433_v1 = vand.u32 2147483647, %v4516_v9  ;;  %v4554_v51 = vmul.f32 0.5, %v4547_v17  ;;  %v1431_v27 = vadd.f32 1.0, %v1430_v41  ;;  %v1423_v25 = vmul.f32 %v1422_v19, %v4504_v18  ;;  %v128_v18 = vld [vmem:[#allocation2 + $0x2c0] sm:$0xff] }
 0x177   :  { %v2296_v54 = vsel %vm2168_vm1, %v1912_v44, %v2570_v40  ;;  %v1417_v5 = vsel %vm4536_vm2, %v1414_v15, %v1411_v57  ;;  %2791 = vlog2.f32 %v1436_v62  ;;  %v1439_v58 = vmul.f32 -0.5, %v4542_v46 }
 0x178   :  { %2424 = vst [vmem:[#allocation7 + $0x280] sm:$0xff] %v2296_v54  ;;  %v1913_v55 = vmul.f32 10.0, %v1417_v5  ;;  %v1445_v60 = vadd.f32 1.0, %v4554_v51  ;;  %vm4563_vm4 = vcmp.lt.f32.partialorder %v1424_v53, 0.0004427343  ;;  %v383_v16 = vsub.f32 %v127_v63, %v255_v39  ;;  %v131_v5 = vld [vmem:[#allocation2 + $0x2d8] sm:$0xff] }
 0x179   :  { %v2788_v10 = vpop.eup %2787  ;;  %v2572_v26 = vadd.f32 7.917595, %v4492_v36  ;;  %v4568_v47 = vand.u32 2147483647, %v382_v22  ;;  %vm2170_vm5 = vcmp.lt.f32.partialorder %v4492_v36, 10.0  ;;  %v1432_v12 = vmul.f32 %v1431_v27, %v4516_v9  ;;  %v259_v27 = vld [vmem:[#allocation5 + $0x2d8] sm:$0xff] }
 0x17a   :  { %v2297_v2 = vsel %vm2169_vm3, %v1913_v55, %v2571_v49  ;;  %v1420_v4 = vmul.f32 0.6931472, %v2788_v10  ;;  %2793 = vlog2.f32 %v1445_v60  ;;  %vm4574_vm6 = vcmp.lt.f32.partialorder %v1433_v1, 0.0004427343 }
 0x17b   :  { %2425 = vst [vmem:[#allocation7 + $0x288] sm:$0xff] %v2297_v2  ;;  %v1448_v34 = vmul.f32 -0.5, %v4554_v51  ;;  %v4580_v3 = vmul.f32 0.5, %v4568_v47  ;;  %v1440_v52 = vadd.f32 1.0, %v1439_v58  ;;  %v1442_v24 = vand.u32 2147483647, %v4542_v46 }
 0x17c   :  { %v2790_v8 = vpop.eup %2789  ;;  %v1426_v14 = vsel %vm4563_vm4, %v1423_v25, %v1420_v4  ;;  %v4585_v50 = vand.u32 2147483647, %v383_v16  ;;  %v384_v59 = vsub.f32 %v128_v18, %v256_v6  ;;  %v2573_v21 = vadd.f32 7.917595, %v4509_v45 }
 0x17d   :  { %v1914_v38 = vmul.f32 10.0, %v1426_v14  ;;  %v1429_v28 = vmul.f32 0.6931472, %v2790_v8  ;;  %v1454_v9 = vadd.f32 1.0, %v4580_v3  ;;  %vm2171_vm7 = vcmp.lt.f32.partialorder %v4509_v45, 10.0  ;;  %v260_v14 = vld [vmem:[#allocation5 + $0x2e0] sm:$0xff] }
 0x17e   :  { %v1451_v37 = vand.u32 2147483647, %v4554_v51  ;;  %v4592_v31 = vmul.f32 0.5, %v4585_v50  ;;  %v1449_v0 = vadd.f32 1.0, %v1448_v34  ;;  %v1441_v43 = vmul.f32 %v1440_v52, %v4542_v46  ;;  %v130_v46 = vld [vmem:[#allocation2 + $0x2d0] sm:$0xff] }
 0x17f   :  { %v2298_v23 = vsel %vm2170_vm5, %v1914_v38, %v2572_v26  ;;  %v1435_v11 = vsel %vm4574_vm6, %v1432_v12, %v1429_v28  ;;  %2795 = vlog2.f32 %v1454_v9  ;;  %v1457_v29 = vmul.f32 -0.5, %v4580_v3 }
 0x180   :  { %2426 = vst [vmem:[#allocation7 + $0x290] sm:$0xff] %v2298_v23  ;;  %v1915_v40 = vmul.f32 10.0, %v1435_v11  ;;  %v1463_v32 = vadd.f32 1.0, %v4592_v31  ;;  %vm4601_vm8 = vcmp.lt.f32.partialorder %v1442_v24, 0.0004427343  ;;  %v385_v13 = vsub.f32 %v129_v35, %v257_v56  ;;  %v133_v11 = vld [vmem:[#allocation2 + $0x2e8] sm:$0xff] }
 0x181   :  { %v2792_v48 = vpop.eup %2791  ;;  %v2574_v36 = vadd.f32 7.917595, %v4530_v7  ;;  %v4606_v15 = vand.u32 2147483647, %v384_v59  ;;  %vm2172_vm9 = vcmp.lt.f32.partialorder %v4530_v7, 10.0  ;;  %v1450_v19 = vmul.f32 %v1449_v0, %v4554_v51  ;;  %v261_v0 = vld [vmem:[#allocation5 + $0x2e8] sm:$0xff] }
 0x182   :  { %v2299_v41 = vsel %vm2171_vm7, %v1915_v40, %v2573_v21  ;;  %v1438_v42 = vmul.f32 0.6931472, %v2792_v48  ;;  %2797 = vlog2.f32 %v1463_v32  ;;  %vm4612_vm10 = vcmp.lt.f32.partialorder %v1451_v37, 0.0004427343 }
 0x183   :  { %2427 = vst [vmem:[#allocation7 + $0x298] sm:$0xff] %v2299_v41  ;;  %v1466_v44 = vmul.f32 -0.5, %v4592_v31  ;;  %v4618_v57 = vmul.f32 0.5, %v4606_v15  ;;  %v1458_v22 = vadd.f32 1.0, %v1457_v29  ;;  %v1460_v63 = vand.u32 2147483647, %v4580_v3 }
 0x184   :  { %v2794_v45 = vpop.eup %2793  ;;  %v1444_v62 = vsel %vm4601_vm8, %v1441_v43, %v1438_v42  ;;  %v4623_v39 = vand.u32 2147483647, %v385_v13  ;;  %v386_v54 = vsub.f32 %v130_v46, %v258_v30  ;;  %v2575_v55 = vadd.f32 7.917595, %v4547_v17 }
 0x185   :  { %v1916_v49 = vmul.f32 10.0, %v1444_v62  ;;  %v1447_v1 = vmul.f32 0.6931472, %v2794_v45  ;;  %v1472_v51 = vadd.f32 1.0, %v4618_v57  ;;  %vm2173_vm11 = vcmp.lt.f32.partialorder %v4547_v17, 10.0  ;;  %v262_v62 = vld [vmem:[#allocation5 + $0x2f0] sm:$0xff] }
 0x186   :  { %v1469_v25 = vand.u32 2147483647, %v4592_v31  ;;  %v4630_v58 = vmul.f32 0.5, %v4623_v39  ;;  %v1467_v33 = vadd.f32 1.0, %v1466_v44  ;;  %v1459_v16 = vmul.f32 %v1458_v22, %v4580_v3  ;;  %v132_v3 = vld [vmem:[#allocation2 + $0x2e0] sm:$0xff] }
 0x187   :  { %v2300_v60 = vsel %vm2172_vm9, %v1916_v49, %v2574_v36  ;;  %v1453_v10 = vsel %vm4612_vm10, %v1450_v19, %v1447_v1  ;;  %2799 = vlog2.f32 %v1472_v51  ;;  %v1475_v2 = vmul.f32 -0.5, %v4618_v57 }
 0x188   :  { %2428 = vst [vmem:[#allocation7 + $0x2a0] sm:$0xff] %v2300_v60  ;;  %v1917_v26 = vmul.f32 10.0, %v1453_v10  ;;  %v1481_v4 = vadd.f32 1.0, %v4630_v58  ;;  %vm4639_vm12 = vcmp.lt.f32.partialorder %v1460_v63, 0.0004427343  ;;  %v387_v20 = vsub.f32 %v131_v5, %v259_v27  ;;  %v135_v10 = vld [vmem:[#allocation2 + $0x2f8] sm:$0xff] }
 0x189   :  { %v2796_v18 = vpop.eup %2795  ;;  %v2576_v7 = vadd.f32 7.917595, %v4568_v47  ;;  %v4644_v12 = vand.u32 2147483647, %v386_v54  ;;  %vm2174_vm13 = vcmp.lt.f32.partialorder %v4568_v47, 10.0  ;;  %v1468_v52 = vmul.f32 %v1467_v33, %v4592_v31  ;;  %v263_v33 = vld [vmem:[#allocation5 + $0x2f8] sm:$0xff] }
 0x18a   :  { %v2301_v34 = vsel %vm2173_vm11, %v1917_v26, %v2575_v55  ;;  %v1456_v8 = vmul.f32 0.6931472, %v2796_v18  ;;  %2801 = vlog2.f32 %v1481_v4  ;;  %vm4650_vm14 = vcmp.lt.f32.partialorder %v1469_v25, 0.0004427343 }
 0x18b   :  { %2429 = vst [vmem:[#allocation7 + $0x2a8] sm:$0xff] %v2301_v34  ;;  %v1484_v38 = vmul.f32 -0.5, %v4630_v58  ;;  %v4656_v28 = vmul.f32 0.5, %v4644_v12  ;;  %v1476_v59 = vadd.f32 1.0, %v1475_v2  ;;  %v1478_v35 = vand.u32 2147483647, %v4618_v57 }
 0x18c   :  { %v2798_v17 = vpop.eup %2797  ;;  %v1462_v9 = vsel %vm4639_vm12, %v1459_v16, %v1456_v8  ;;  %v4661_v56 = vand.u32 2147483647, %v387_v20  ;;  %v388_v23 = vsub.f32 %v132_v3, %v260_v14  ;;  %v2577_v40 = vadd.f32 7.917595, %v4585_v50 }
 0x18d   :  { %v1918_v21 = vmul.f32 10.0, %v1462_v9  ;;  %v1465_v37 = vmul.f32 0.6931472, %v2798_v17  ;;  %v1490_v31 = vadd.f32 1.0, %v4656_v28  ;;  %vm2175_vm15 = vcmp.lt.f32.partialorder %v4585_v50, 10.0  ;;  %v264_v9 = vld [vmem:[#allocation5 + $0x300] sm:$0xff] }
 0x18e   :  { %v1487_v43 = vand.u32 2147483647, %v4630_v58  ;;  %v4668_v29 = vmul.f32 0.5, %v4661_v56  ;;  %v1485_v61 = vadd.f32 1.0, %v1484_v38  ;;  %v1477_v13 = vmul.f32 %v1476_v59, %v4618_v57  ;;  %v134_v57 = vld [vmem:[#allocation2 + $0x2f0] sm:$0xff] }
 0x18f   :  { %v2302_v32 = vsel %vm2174_vm13, %v1918_v21, %v2576_v7  ;;  %v1471_v48 = vsel %vm4650_vm14, %v1468_v52, %v1465_v37  ;;  %2803 = vlog2.f32 %v1490_v31  ;;  %v1493_v41 = vmul.f32 -0.5, %v4656_v28 }
 0x190   :  { %2430 = vst [vmem:[#allocation7 + $0x2b0] sm:$0xff] %v2302_v32  ;;  %v1919_v36 = vmul.f32 10.0, %v1471_v48  ;;  %v1499_v42 = vadd.f32 1.0, %v4668_v29  ;;  %vm4677_vm0 = vcmp.lt.f32.partialorder %v1478_v35, 0.0004427343  ;;  %v389_v53 = vsub.f32 %v133_v11, %v261_v0  ;;  %v137_v48 = vld [vmem:[#allocation2 + $0x308] sm:$0xff] }
 0x191   :  { %v2800_v46 = vpop.eup %2799  ;;  %v2578_v47 = vadd.f32 7.917595, %v4606_v15  ;;  %v4682_v19 = vand.u32 2147483647, %v388_v23  ;;  %vm2176_vm1 = vcmp.lt.f32.partialorder %v4606_v15, 10.0  ;;  %v1486_v22 = vmul.f32 %v1485_v61, %v4630_v58  ;;  %v265_v61 = vld [vmem:[#allocation5 + $0x308] sm:$0xff] }
 0x192   :  { %v2303_v44 = vsel %vm2175_vm15, %v1919_v36, %v2577_v40  ;;  %v1474_v45 = vmul.f32 0.6931472, %v2800_v46  ;;  %2805 = vlog2.f32 %v1499_v42  ;;  %vm4688_vm2 = vcmp.lt.f32.partialorder %v1487_v43, 0.0004427343 }
 0x193   :  { %2431 = vst [vmem:[#allocation7 + $0x2b8] sm:$0xff] %v2303_v44  ;;  %v1502_v49 = vmul.f32 -0.5, %v4668_v29  ;;  %v4694_v1 = vmul.f32 0.5, %v4682_v19  ;;  %v1494_v54 = vadd.f32 1.0, %v1493_v41  ;;  %v1496_v5 = vand.u32 2147483647, %v4656_v28 }
 0x194   :  { %v2802_v50 = vpop.eup %2801  ;;  %v1480_v51 = vsel %vm4677_vm0, %v1477_v13, %v1474_v45  ;;  %v4699_v27 = vand.u32 2147483647, %v389_v53  ;;  %v390_v60 = vsub.f32 %v134_v57, %v262_v62  ;;  %v2579_v26 = vadd.f32 7.917595, %v4623_v39 }
 0x195   :  { %v1920_v55 = vmul.f32 10.0, %v1480_v51  ;;  %v1483_v25 = vmul.f32 0.6931472, %v2802_v50  ;;  %v1508_v58 = vadd.f32 1.0, %v4694_v1  ;;  %vm2177_vm3 = vcmp.lt.f32.partialorder %v4623_v39, 10.0  ;;  %v266_v51 = vld [vmem:[#allocation5 + $0x310] sm:$0xff] }
 0x196   :  { %v1505_v16 = vand.u32 2147483647, %v4668_v29  ;;  %v4706_v2 = vmul.f32 0.5, %v4699_v27  ;;  %v1503_v6 = vadd.f32 1.0, %v1502_v49  ;;  %v1495_v20 = vmul.f32 %v1494_v54, %v4656_v28  ;;  %v136_v28 = vld [vmem:[#allocation2 + $0x300] sm:$0xff] }
 0x197   :  { %v2304_v4 = vsel %vm2176_vm1, %v1920_v55, %v2578_v47  ;;  %v1489_v18 = vsel %vm4688_vm2, %v1486_v22, %v1483_v25  ;;  %2807 = vlog2.f32 %v1508_v58  ;;  %v1511_v34 = vmul.f32 -0.5, %v4694_v1 }
 0x198   :  { %2432 = vst [vmem:[#allocation7 + $0x2c0] sm:$0xff] %v2304_v4  ;;  %v1921_v7 = vmul.f32 10.0, %v1489_v18  ;;  %v1517_v8 = vadd.f32 1.0, %v4706_v2  ;;  %vm4715_vm4 = vcmp.lt.f32.partialorder %v1496_v5, 0.0004427343  ;;  %v391_v24 = vsub.f32 %v135_v10, %v263_v33  ;;  %v139_v18 = vld [vmem:[#allocation2 + $0x318] sm:$0xff] }
 0x199   :  { %v2804_v3 = vpop.eup %2803  ;;  %v2580_v15 = vadd.f32 7.917595, %v4644_v12  ;;  %v4720_v52 = vand.u32 2147483647, %v390_v60  ;;  %vm2178_vm5 = vcmp.lt.f32.partialorder %v4644_v12, 10.0  ;;  %v1504_v59 = vmul.f32 %v1503_v6, %v4668_v29  ;;  %v267_v6 = vld [vmem:[#allocation5 + $0x318] sm:$0xff] }
 0x19a   :  { %v2305_v38 = vsel %vm2177_vm3, %v1921_v7, %v2579_v26  ;;  %v1492_v17 = vmul.f32 0.6931472, %v2804_v3  ;;  %2809 = vlog2.f32 %v1517_v8  ;;  %vm4726_vm6 = vcmp.lt.f32.partialorder %v1505_v16, 0.0004427343 }
 0x19b   :  { %2433 = vst [vmem:[#allocation7 + $0x2c8] sm:$0xff] %v2305_v38  ;;  %v1520_v21 = vmul.f32 -0.5, %v4706_v2  ;;  %v4732_v37 = vmul.f32 0.5, %v4720_v52  ;;  %v1512_v23 = vadd.f32 1.0, %v1511_v34  ;;  %v1514_v11 = vand.u32 2147483647, %v4694_v1 }
 0x19c   :  { %v2806_v39 = vpop.eup %2805  ;;  %v1498_v31 = vsel %vm4715_vm4, %v1495_v20, %v1492_v17  ;;  %v4737_v0 = vand.u32 2147483647, %v391_v24  ;;  %v392_v32 = vsub.f32 %v136_v28, %v264_v9  ;;  %v2581_v36 = vadd.f32 7.917595, %v4661_v56 }
 0x19d   :  { %v1922_v40 = vmul.f32 10.0, %v1498_v31  ;;  %v1501_v43 = vmul.f32 0.6931472, %v2806_v39  ;;  %v1526_v29 = vadd.f32 1.0, %v4732_v37  ;;  %vm2179_vm7 = vcmp.lt.f32.partialorder %v4661_v56, 10.0  ;;  %v268_v31 = vld [vmem:[#allocation5 + $0x320] sm:$0xff] }
 0x19e   :  { %v1523_v13 = vand.u32 2147483647, %v4706_v2  ;;  %v4744_v41 = vmul.f32 0.5, %v4737_v0  ;;  %v1521_v30 = vadd.f32 1.0, %v1520_v21  ;;  %v1513_v53 = vmul.f32 %v1512_v23, %v4694_v1  ;;  %v138_v1 = vld [vmem:[#allocation2 + $0x310] sm:$0xff] }
 0x19f   :  { %v2306_v42 = vsel %vm2178_vm5, %v1922_v40, %v2580_v15  ;;  %v1507_v46 = vsel %vm4726_vm6, %v1504_v59, %v1501_v43  ;;  %2811 = vlog2.f32 %v1526_v29  ;;  %v1529_v44 = vmul.f32 -0.5, %v4732_v37 }
 0x1a0   :  { %2434 = vst [vmem:[#allocation7 + $0x2d0] sm:$0xff] %v2306_v42  ;;  %v1923_v47 = vmul.f32 10.0, %v1507_v46  ;;  %v1535_v45 = vadd.f32 1.0, %v4744_v41  ;;  %vm4753_vm8 = vcmp.lt.f32.partialorder %v1514_v11, 0.0004427343  ;;  %v393_v63 = vsub.f32 %v137_v48, %v265_v61  ;;  %v141_v46 = vld [vmem:[#allocation2 + $0x328] sm:$0xff] }
 0x1a1   :  { %v2808_v57 = vpop.eup %2807  ;;  %v2582_v12 = vadd.f32 7.917595, %v4682_v19  ;;  %v4758_v22 = vand.u32 2147483647, %v392_v32  ;;  %vm2180_vm9 = vcmp.lt.f32.partialorder %v4682_v19, 10.0  ;;  %v1522_v54 = vmul.f32 %v1521_v30, %v4706_v2  ;;  %v269_v30 = vld [vmem:[#allocation5 + $0x328] sm:$0xff] }
 0x1a2   :  { %v2307_v49 = vsel %vm2179_vm7, %v1923_v47, %v2581_v36  ;;  %v1510_v50 = vmul.f32 0.6931472, %v2808_v57  ;;  %2813 = vlog2.f32 %v1535_v45  ;;  %vm4764_vm10 = vcmp.lt.f32.partialorder %v1523_v13, 0.0004427343 }
 0x1a3   :  { %2435 = vst [vmem:[#allocation7 + $0x2d8] sm:$0xff] %v2307_v49  ;;  %v1538_v55 = vmul.f32 -0.5, %v4744_v41  ;;  %v4770_v25 = vmul.f32 0.5, %v4758_v22  ;;  %v1530_v60 = vadd.f32 1.0, %v1529_v44  ;;  %v1532_v10 = vand.u32 2147483647, %v4732_v37 }
 0x1a4   :  { %v2810_v56 = vpop.eup %2809  ;;  %v1516_v58 = vsel %vm4753_vm8, %v1513_v53, %v1510_v50  ;;  %v4775_v33 = vand.u32 2147483647, %v393_v63  ;;  %v394_v4 = vsub.f32 %v138_v1, %v266_v51  ;;  %v2583_v7 = vadd.f32 7.917595, %v4699_v27 }
 0x1a5   :  { %v1924_v26 = vmul.f32 10.0, %v1516_v58  ;;  %v1519_v16 = vmul.f32 0.6931472, %v2810_v56  ;;  %v1544_v2 = vadd.f32 1.0, %v4770_v25  ;;  %vm2181_vm11 = vcmp.lt.f32.partialorder %v4699_v27, 10.0  ;;  %v270_v58 = vld [vmem:[#allocation5 + $0x330] sm:$0xff] }
 0x1a6   :  { %v1541_v20 = vand.u32 2147483647, %v4744_v41  ;;  %v4782_v34 = vmul.f32 0.5, %v4775_v33  ;;  %v1539_v14 = vadd.f32 1.0, %v1538_v55  ;;  %v1531_v24 = vmul.f32 %v1530_v60, %v4732_v37  ;;  %v140_v37 = vld [vmem:[#allocation2 + $0x320] sm:$0xff] }
 0x1a7   :  { %v2308_v8 = vsel %vm2180_vm9, %v1924_v26, %v2582_v12  ;;  %v1525_v3 = vsel %vm4764_vm10, %v1522_v54, %v1519_v16  ;;  %2815 = vlog2.f32 %v1544_v2  ;;  %v1547_v38 = vmul.f32 -0.5, %v4770_v25 }
 0x1a8   :  { %2436 = vst [vmem:[#allocation7 + $0x2e0] sm:$0xff] %v2308_v8  ;;  %v1925_v15 = vmul.f32 10.0, %v1525_v3  ;;  %v1553_v17 = vadd.f32 1.0, %v4782_v34  ;;  %vm4791_vm12 = vcmp.lt.f32.partialorder %v1532_v10, 0.0004427343  ;;  %v395_v35 = vsub.f32 %v139_v18, %v267_v6  ;;  %v143_v3 = vld [vmem:[#allocation2 + $0x338] sm:$0xff] }
 0x1a9   :  { %v2812_v28 = vpop.eup %2811  ;;  %v2584_v19 = vadd.f32 7.917595, %v4720_v52  ;;  %v4796_v59 = vand.u32 2147483647, %v394_v4  ;;  %vm2182_vm13 = vcmp.lt.f32.partialorder %v4720_v52, 10.0  ;;  %v1540_v23 = vmul.f32 %v1539_v14, %v4744_v41  ;;  %v271_v14 = vld [vmem:[#allocation5 + $0x338] sm:$0xff] }
 0x1aa   :  { %v2309_v21 = vsel %vm2181_vm11, %v1925_v15, %v2583_v7  ;;  %v1528_v39 = vmul.f32 0.6931472, %v2812_v28  ;;  %2817 = vlog2.f32 %v1553_v17  ;;  %vm4802_vm14 = vcmp.lt.f32.partialorder %v1541_v20, 0.0004427343 }
 0x1ab   :  { %2437 = vst [vmem:[#allocation7 + $0x2e8] sm:$0xff] %v2309_v21  ;;  %v1556_v40 = vmul.f32 -0.5, %v4782_v34  ;;  %v4808_v43 = vmul.f32 0.5, %v4796_v59  ;;  %v1548_v32 = vadd.f32 1.0, %v1547_v38  ;;  %v1550_v48 = vand.u32 2147483647, %v4770_v25 }
 0x1ac   :  { %v2814_v27 = vpop.eup %2813  ;;  %v1534_v29 = vsel %vm4791_vm12, %v1531_v24, %v1528_v39  ;;  %v4813_v61 = vand.u32 2147483647, %v395_v35  ;;  %v396_v42 = vsub.f32 %v140_v37, %v268_v31  ;;  %v2585_v47 = vadd.f32 7.917595, %v4737_v0 }
 0x1ad   :  { %v1926_v36 = vmul.f32 10.0, %v1534_v29  ;;  %v1537_v13 = vmul.f32 0.6931472, %v2814_v27  ;;  %v1562_v41 = vadd.f32 1.0, %v4808_v43  ;;  %vm2183_vm15 = vcmp.lt.f32.partialorder %v4737_v0, 10.0  ;;  %v272_v29 = vld [vmem:[#allocation5 + $0x340] sm:$0xff] }
 0x1ae   :  { %v1559_v53 = vand.u32 2147483647, %v4782_v34  ;;  %v4820_v44 = vmul.f32 0.5, %v4813_v61  ;;  %v1557_v62 = vadd.f32 1.0, %v1556_v40  ;;  %v1549_v63 = vmul.f32 %v1548_v32, %v4770_v25  ;;  %v142_v25 = vld [vmem:[#allocation2 + $0x330] sm:$0xff] }
 0x1af   :  { %v2310_v45 = vsel %vm2182_vm13, %v1926_v36, %v2584_v19  ;;  %v1543_v57 = vsel %vm4802_vm14, %v1540_v23, %v1537_v13  ;;  %2819 = vlog2.f32 %v1562_v41  ;;  %v1565_v49 = vmul.f32 -0.5, %v4808_v43 }
 0x1b0   :  { %2438 = vst [vmem:[#allocation7 + $0x2f0] sm:$0xff] %v2310_v45  ;;  %v1927_v12 = vmul.f32 10.0, %v1543_v57  ;;  %v1571_v50 = vadd.f32 1.0, %v4820_v44  ;;  %vm4829_vm0 = vcmp.lt.f32.partialorder %v1550_v48, 0.0004427343  ;;  %v397_v5 = vsub.f32 %v141_v46, %v269_v30  ;;  %v145_v57 = vld [vmem:[#allocation2 + $0x348] sm:$0xff] }
 0x1b1   :  { %v2816_v1 = vpop.eup %2815  ;;  %v2586_v52 = vadd.f32 7.917595, %v4758_v22  ;;  %v4834_v54 = vand.u32 2147483647, %v396_v42  ;;  %vm2184_vm1 = vcmp.lt.f32.partialorder %v4758_v22, 10.0  ;;  %v1558_v60 = vmul.f32 %v1557_v62, %v4782_v34  ;;  %v273_v62 = vld [vmem:[#allocation5 + $0x348] sm:$0xff] }
 0x1b2   :  { %v2311_v55 = vsel %vm2183_vm15, %v1927_v12, %v2585_v47  ;;  %v1546_v56 = vmul.f32 0.6931472, %v2816_v1  ;;  %2821 = vlog2.f32 %v1571_v50  ;;  %vm4840_vm2 = vcmp.lt.f32.partialorder %v1559_v53, 0.0004427343 }
 0x1b3   :  { %2439 = vst [vmem:[#allocation7 + $0x2f8] sm:$0xff] %v2311_v55  ;;  %v1574_v26 = vmul.f32 -0.5, %v4820_v44  ;;  %v4846_v16 = vmul.f32 0.5, %v4834_v54  ;;  %v1566_v4 = vadd.f32 1.0, %v1565_v49  ;;  %v1568_v18 = vand.u32 2147483647, %v4808_v43 }
 0x1b4   :  { %v2818_v0 = vpop.eup %2817  ;;  %v1552_v2 = vsel %vm4829_vm0, %v1549_v63, %v1546_v56  ;;  %v4851_v6 = vand.u32 2147483647, %v397_v5  ;;  %v398_v8 = vsub.f32 %v142_v25, %v270_v58  ;;  %v2587_v15 = vadd.f32 7.917595, %v4775_v33 }
 0x1b5   :  { %v1928_v7 = vmul.f32 10.0, %v1552_v2  ;;  %v1555_v20 = vmul.f32 0.6931472, %v2818_v0  ;;  %v1580_v34 = vadd.f32 1.0, %v4846_v16  ;;  %vm2185_vm3 = vcmp.lt.f32.partialorder %v4775_v33, 10.0  ;;  %v274_v2 = vld [vmem:[#allocation5 + $0x350] sm:$0xff] }
 0x1b6   :  { %v1577_v24 = vand.u32 2147483647, %v4820_v44  ;;  %v4858_v38 = vmul.f32 0.5, %v4851_v6  ;;  %v1575_v9 = vadd.f32 1.0, %v1574_v26  ;;  %v1567_v35 = vmul.f32 %v1566_v4, %v4808_v43  ;;  %v144_v43 = vld [vmem:[#allocation2 + $0x340] sm:$0xff] }
 0x1b7   :  { %v2312_v17 = vsel %vm2184_vm1, %v1928_v7, %v2586_v52  ;;  %v1561_v28 = vsel %vm4840_vm2, %v1558_v60, %v1555_v20  ;;  %2823 = vlog2.f32 %v1580_v34  ;;  %v1583_v21 = vmul.f32 -0.5, %v4846_v16 }
 0x1b8   :  { %2440 = vst [vmem:[#allocation7 + $0x300] sm:$0xff] %v2312_v17  ;;  %v1929_v19 = vmul.f32 10.0, %v1561_v28  ;;  %v1589_v39 = vadd.f32 1.0, %v4858_v38  ;;  %vm4867_vm4 = vcmp.lt.f32.partialorder %v1568_v18, 0.0004427343  ;;  %v399_v11 = vsub.f32 %v143_v3, %v271_v14  ;;  %v147_v28 = vld [vmem:[#allocation2 + $0x358] sm:$0xff] }
 0x1b9   :  { %v2820_v37 = vpop.eup %2819  ;;  %v2588_v22 = vadd.f32 7.917595, %v4796_v59  ;;  %v4872_v23 = vand.u32 2147483647, %v398_v8  ;;  %vm2186_vm5 = vcmp.lt.f32.partialorder %v4796_v59, 10.0  ;;  %v1576_v32 = vmul.f32 %v1575_v9, %v4820_v44  ;;  %v275_v9 = vld [vmem:[#allocation5 + $0x358] sm:$0xff] }
 0x1ba   :  { %v2313_v40 = vsel %vm2185_vm3, %v1929_v19, %v2587_v15  ;;  %v1564_v27 = vmul.f32 0.6931472, %v2820_v37  ;;  %2825 = vlog2.f32 %v1589_v39  ;;  %vm4878_vm6 = vcmp.lt.f32.partialorder %v1577_v24, 0.0004427343 }
 0x1bb   :  { %2441 = vst [vmem:[#allocation7 + $0x308] sm:$0xff] %v2313_v40  ;;  %v1592_v36 = vmul.f32 -0.5, %v4858_v38  ;;  %v4884_v13 = vmul.f32 0.5, %v4872_v23  ;;  %v1584_v42 = vadd.f32 1.0, %v1583_v21  ;;  %v1586_v46 = vand.u32 2147483647, %v4846_v16 }
 0x1bc   :  { %v2822_v33 = vpop.eup %2821  ;;  %v1570_v41 = vsel %vm4867_vm4, %v1567_v35, %v1564_v27  ;;  %v4889_v30 = vand.u32 2147483647, %v399_v11  ;;  %v400_v45 = vsub.f32 %v144_v43, %v272_v29  ;;  %v2589_v12 = vadd.f32 7.917595, %v4813_v61 }
 0x1bd   :  { %v1930_v47 = vmul.f32 10.0, %v1570_v41  ;;  %v1573_v53 = vmul.f32 0.6931472, %v2822_v33  ;;  %v1598_v44 = vadd.f32 1.0, %v4884_v13  ;;  %vm2187_vm7 = vcmp.lt.f32.partialorder %v4813_v61, 10.0  ;;  %v276_v41 = vld [vmem:[#allocation5 + $0x360] sm:$0xff] }
 0x1be   :  { %v1595_v63 = vand.u32 2147483647, %v4858_v38  ;;  %v4896_v49 = vmul.f32 0.5, %v4889_v30  ;;  %v1593_v51 = vadd.f32 1.0, %v1592_v36  ;;  %v1585_v5 = vmul.f32 %v1584_v42, %v4846_v16  ;;  %v146_v16 = vld [vmem:[#allocation2 + $0x350] sm:$0xff] }
 0x1bf   :  { %v2314_v50 = vsel %vm2186_vm5, %v1930_v47, %v2588_v22  ;;  %v1579_v1 = vsel %vm4878_vm6, %v1576_v32, %v1573_v53  ;;  %2827 = vlog2.f32 %v1598_v44  ;;  %v1601_v55 = vmul.f32 -0.5, %v4884_v13 }
 0x1c0   :  { %2442 = vst [vmem:[#allocation7 + $0x310] sm:$0xff] %v2314_v50  ;;  %v1931_v52 = vmul.f32 10.0, %v1579_v1  ;;  %v1607_v56 = vadd.f32 1.0, %v4896_v49  ;;  %vm4905_vm8 = vcmp.lt.f32.partialorder %v1586_v46, 0.0004427343  ;;  %v401_v10 = vsub.f32 %v145_v57, %v273_v62  ;;  %v149_v1 = vld [vmem:[#allocation2 + $0x368] sm:$0xff] }
 0x1c1   :  { %v2824_v25 = vpop.eup %2823  ;;  %v2590_v59 = vadd.f32 7.917595, %v4834_v54  ;;  %v4910_v60 = vand.u32 2147483647, %v400_v45  ;;  %vm2188_vm9 = vcmp.lt.f32.partialorder %v4834_v54, 10.0  ;;  %v1594_v4 = vmul.f32 %v1593_v51, %v4858_v38  ;;  %v277_v51 = vld [vmem:[#allocation5 + $0x368] sm:$0xff] }
 0x1c2   :  { %v2315_v26 = vsel %vm2187_vm7, %v1931_v52, %v2589_v12  ;;  %v1582_v0 = vmul.f32 0.6931472, %v2824_v25  ;;  %2829 = vlog2.f32 %v1607_v56  ;;  %vm4916_vm10 = vcmp.lt.f32.partialorder %v1595_v63, 0.0004427343 }
 0x1c3   :  { %2443 = vst [vmem:[#allocation7 + $0x318] sm:$0xff] %v2315_v26  ;;  %v1610_v7 = vmul.f32 -0.5, %v4896_v49  ;;  %v4922_v20 = vmul.f32 0.5, %v4910_v60  ;;  %v1602_v8 = vadd.f32 1.0, %v1601_v55  ;;  %v1604_v3 = vand.u32 2147483647, %v4884_v13 }
 0x1c4   :  { %v2826_v61 = vpop.eup %2825  ;;  %v1588_v34 = vsel %vm4905_vm8, %v1585_v5, %v1582_v0  ;;  %v4927_v14 = vand.u32 2147483647, %v401_v10  ;;  %v402_v17 = vsub.f32 %v146_v16, %v274_v2  ;;  %v2591_v19 = vadd.f32 7.917595, %v4851_v6 }
 0x1c5   :  { %v1932_v15 = vmul.f32 10.0, %v1588_v34  ;;  %v1591_v24 = vmul.f32 0.6931472, %v2826_v61  ;;  %v1616_v38 = vadd.f32 1.0, %v4922_v20  ;;  %vm2189_vm11 = vcmp.lt.f32.partialorder %v4851_v6, 10.0  ;;  %v278_v34 = vld [vmem:[#allocation5 + $0x370] sm:$0xff] }
 0x1c6   :  { %v1613_v35 = vand.u32 2147483647, %v4896_v49  ;;  %v4934_v21 = vmul.f32 0.5, %v4927_v14  ;;  %v1611_v31 = vadd.f32 1.0, %v1610_v7  ;;  %v1603_v11 = vmul.f32 %v1602_v8, %v4884_v13  ;;  %v148_v13 = vld [vmem:[#allocation2 + $0x360] sm:$0xff] }
 0x1c7   :  { %v2316_v39 = vsel %vm2188_vm9, %v1932_v15, %v2590_v59  ;;  %v1597_v37 = vsel %vm4916_vm10, %v1594_v4, %v1591_v24  ;;  %2831 = vlog2.f32 %v1616_v38  ;;  %v1619_v40 = vmul.f32 -0.5, %v4922_v20 }
 0x1c8   :  { %2444 = vst [vmem:[#allocation7 + $0x320] sm:$0xff] %v2316_v39  ;;  %v1933_v22 = vmul.f32 10.0, %v1597_v37  ;;  %v1625_v27 = vadd.f32 1.0, %v4934_v21  ;;  %vm4943_vm12 = vcmp.lt.f32.partialorder %v1604_v3, 0.0004427343  ;;  %v403_v48 = vsub.f32 %v147_v28, %v275_v9  ;;  %v151_v37 = vld [vmem:[#allocation2 + $0x378] sm:$0xff] }
 0x1c9   :  { %v2828_v43 = vpop.eup %2827  ;;  %v2592_v54 = vadd.f32 7.917595, %v4872_v23  ;;  %v4948_v32 = vand.u32 2147483647, %v402_v17  ;;  %vm2190_vm13 = vcmp.lt.f32.partialorder %v4872_v23, 10.0  ;;  %v1612_v42 = vmul.f32 %v1611_v31, %v4896_v49  ;;  %v279_v31 = vld [vmem:[#allocation5 + $0x378] sm:$0xff] }
 0x1ca   :  { %v2317_v36 = vsel %vm2189_vm11, %v1933_v22, %v2591_v19  ;;  %v1600_v33 = vmul.f32 0.6931472, %v2828_v43  ;;  %2833 = vlog2.f32 %v1625_v27  ;;  %vm4954_vm14 = vcmp.lt.f32.partialorder %v1613_v35, 0.0004427343 }
 0x1cb   :  { %2445 = vst [vmem:[#allocation7 + $0x328] sm:$0xff] %v2317_v36  ;;  %v1628_v47 = vmul.f32 -0.5, %v4934_v21  ;;  %v4960_v53 = vmul.f32 0.5, %v4948_v32  ;;  %v1620_v45 = vadd.f32 1.0, %v1619_v40  ;;  %v1622_v57 = vand.u32 2147483647, %v4922_v20 }
 0x1cc   :  { %v2830_v6 = vpop.eup %2829  ;;  %v1606_v44 = vsel %vm4943_vm12, %v1603_v11, %v1600_v33  ;;  %v4965_v62 = vand.u32 2147483647, %v403_v48  ;;  %v404_v50 = vsub.f32 %v148_v13, %v276_v41  ;;  %v2593_v52 = vadd.f32 7.917595, %v4889_v30 }
 0x1cd   :  { %v1934_v12 = vmul.f32 10.0, %v1606_v44  ;;  %v1609_v63 = vmul.f32 0.6931472, %v2830_v6  ;;  %v1634_v49 = vadd.f32 1.0, %v4960_v53  ;;  %vm2191_vm15 = vcmp.lt.f32.partialorder %v4889_v30, 10.0  ;;  %v280_v44 = vld [vmem:[#allocation5 + $0x380] sm:$0xff] }
 0x1ce   :  { %v1631_v5 = vand.u32 2147483647, %v4934_v21  ;;  %v4972_v55 = vmul.f32 0.5, %v4965_v62  ;;  %v1629_v58 = vadd.f32 1.0, %v1628_v47  ;;  %v1621_v10 = vmul.f32 %v1620_v45, %v4922_v20  ;;  %v150_v20 = vld [vmem:[#allocation2 + $0x370] sm:$0xff] }
 0x1cf   :  { %v2318_v56 = vsel %vm2190_vm13, %v1934_v12, %v2592_v54  ;;  %v1615_v25 = vsel %vm4954_vm14, %v1612_v42, %v1609_v63  ;;  %2835 = vlog2.f32 %v1634_v49  ;;  %v1637_v26 = vmul.f32 -0.5, %v4960_v53 }
 0x1d0   :  { %2446 = vst [vmem:[#allocation7 + $0x330] sm:$0xff] %v2318_v56  ;;  %v1935_v59 = vmul.f32 10.0, %v1615_v25  ;;  %v1643_v0 = vadd.f32 1.0, %v4972_v55  ;;  %vm4981_vm0 = vcmp.lt.f32.partialorder %v1622_v57, 0.0004427343  ;;  %v405_v18 = vsub.f32 %v149_v1, %v277_v51  ;;  %v153_v25 = vld [vmem:[#allocation2 + $0x388] sm:$0xff] }
 0x1d1   :  { %v2832_v16 = vpop.eup %2831  ;;  %v2594_v23 = vadd.f32 7.917595, %v4910_v60  ;;  %v4986_v4 = vand.u32 2147483647, %v404_v50  ;;  %vm2192_vm1 = vcmp.lt.f32.partialorder %v4910_v60, 10.0  ;;  %v1630_v8 = vmul.f32 %v1629_v58, %v4934_v21  ;;  %v281_v58 = vld [vmem:[#allocation5 + $0x388] sm:$0xff] }
 0x1d2   :  { %v2319_v7 = vsel %vm2191_vm15, %v1935_v59, %v2593_v52  ;;  %v1618_v61 = vmul.f32 0.6931472, %v2832_v16  ;;  %2837 = vlog2.f32 %v1643_v0  ;;  %vm4992_vm2 = vcmp.lt.f32.partialorder %v1631_v5, 0.0004427343 }
 0x1d3   :  { %2447 = vst [vmem:[#allocation7 + $0x338] sm:$0xff] %v2319_v7  ;;  %v1646_v15 = vmul.f32 -0.5, %v4972_v55  ;;  %v4998_v24 = vmul.f32 0.5, %v4986_v4  ;;  %v1638_v17 = vadd.f32 1.0, %v1637_v26  ;;  %v1640_v28 = vand.u32 2147483647, %v4960_v53 }
 0x1d4   :  { %v2834_v30 = vpop.eup %2833  ;;  %v1624_v38 = vsel %vm4981_vm0, %v1621_v10, %v1618_v61  ;;  %v5003_v9 = vand.u32 2147483647, %v405_v18  ;;  %v406_v39 = vsub.f32 %v150_v20, %v278_v34  ;;  %v2595_v22 = vadd.f32 7.917595, %v4927_v14 }
 0x1d5   :  { %v1936_v19 = vmul.f32 10.0, %v1624_v38  ;;  %v1627_v35 = vmul.f32 0.6931472, %v2834_v30  ;;  %v1652_v21 = vadd.f32 1.0, %v4998_v24  ;;  %vm2193_vm3 = vcmp.lt.f32.partialorder %v4927_v14, 10.0  ;;  %v282_v38 = vld [vmem:[#allocation5 + $0x390] sm:$0xff] }
 0x1d6   :  { %v1649_v11 = vand.u32 2147483647, %v4972_v55  ;;  %v5010_v40 = vmul.f32 0.5, %v5003_v9  ;;  %v1647_v29 = vadd.f32 1.0, %v1646_v15  ;;  %v1639_v48 = vmul.f32 %v1638_v17, %v4960_v53  ;;  %v152_v53 = vld [vmem:[#allocation2 + $0x380] sm:$0xff] }
 0x1d7   :  { %v2320_v27 = vsel %vm2192_vm1, %v1936_v19, %v2594_v23  ;;  %v1633_v43 = vsel %vm4992_vm2, %v1630_v8, %v1627_v35  ;;  %2839 = vlog2.f32 %v1652_v21  ;;  %v1655_v36 = vmul.f32 -0.5, %v4998_v24 }
 0x1d8   :  { %2448 = vst [vmem:[#allocation7 + $0x340] sm:$0xff] %v2320_v27  ;;  %v1937_v54 = vmul.f32 10.0, %v1633_v43  ;;  %v1661_v33 = vadd.f32 1.0, %v5010_v40  ;;  %vm5019_vm4 = vcmp.lt.f32.partialorder %v1640_v28, 0.0004427343  ;;  %v407_v46 = vsub.f32 %v151_v37, %v279_v31  ;;  %v155_v43 = vld [vmem:[#allocation2 + $0x398] sm:$0xff] }
 0x1d9   :  { %v2836_v13 = vpop.eup %2835  ;;  %v2596_v60 = vadd.f32 7.917595, %v4948_v32  ;;  %v5024_v42 = vand.u32 2147483647, %v406_v39  ;;  %vm2194_vm5 = vcmp.lt.f32.partialorder %v4948_v32, 10.0  ;;  %v1648_v45 = vmul.f32 %v1647_v29, %v4972_v55  ;;  %v283_v29 = vld [vmem:[#allocation5 + $0x398] sm:$0xff] }
 0x1da   :  { %v2321_v47 = vsel %vm2193_vm3, %v1937_v54, %v2595_v22  ;;  %v1636_v6 = vmul.f32 0.6931472, %v2836_v13  ;;  %2841 = vlog2.f32 %v1661_v33  ;;  %vm5030_vm6 = vcmp.lt.f32.partialorder %v1649_v11, 0.0004427343 }
 0x1db   :  { %2449 = vst [vmem:[#allocation7 + $0x348] sm:$0xff] %v2321_v47  ;;  %v1664_v12 = vmul.f32 -0.5, %v5010_v40  ;;  %v5036_v63 = vmul.f32 0.5, %v5024_v42  ;;  %v1656_v50 = vadd.f32 1.0, %v1655_v36  ;;  %v1658_v1 = vand.u32 2147483647, %v4998_v24 }
 0x1dc   :  { %v2838_v14 = vpop.eup %2837  ;;  %v1642_v49 = vsel %vm5019_vm4, %v1639_v48, %v1636_v6  ;;  %v5041_v51 = vand.u32 2147483647, %v407_v46  ;;  %v408_v56 = vsub.f32 %v152_v53, %v280_v44  ;;  %v2597_v59 = vadd.f32 7.917595, %v4965_v62 }
 0x1dd   :  { %v1938_v52 = vmul.f32 10.0, %v1642_v49  ;;  %v1645_v5 = vmul.f32 0.6931472, %v2838_v14  ;;  %v1670_v55 = vadd.f32 1.0, %v5036_v63  ;;  %vm2195_vm7 = vcmp.lt.f32.partialorder %v4965_v62, 10.0  ;;  %v284_v49 = vld [vmem:[#allocation5 + $0x3a0] sm:$0xff] }
 0x1de   :  { %v1667_v10 = vand.u32 2147483647, %v5010_v40  ;;  %v5048_v26 = vmul.f32 0.5, %v5041_v51  ;;  %v1665_v2 = vadd.f32 1.0, %v1664_v12  ;;  %v1657_v18 = vmul.f32 %v1656_v50, %v4998_v24  ;;  %v154_v24 = vld [vmem:[#allocation2 + $0x390] sm:$0xff] }
 0x1df   :  { %v2322_v0 = vsel %vm2194_vm5, %v1938_v52, %v2596_v60  ;;  %v1651_v16 = vsel %vm5030_vm6, %v1648_v45, %v1645_v5  ;;  %2843 = vlog2.f32 %v1670_v55  ;;  %v1673_v7 = vmul.f32 -0.5, %v5036_v63 }
 0x1e0   :  { %2450 = vst [vmem:[#allocation7 + $0x350] sm:$0xff] %v2322_v0  ;;  %v1939_v23 = vmul.f32 10.0, %v1651_v16  ;;  %v1679_v61 = vadd.f32 1.0, %v5048_v26  ;;  %vm5057_vm8 = vcmp.lt.f32.partialorder %v1658_v1, 0.0004427343  ;;  %v409_v3 = vsub.f32 %v153_v25, %v281_v58  ;;  %v157_v16 = vld [vmem:[#allocation2 + $0x3a8] sm:$0xff] }
 0x1e1   :  { %v2840_v20 = vpop.eup %2839  ;;  %v2598_v32 = vadd.f32 7.917595, %v4986_v4  ;;  %v5062_v8 = vand.u32 2147483647, %v408_v56  ;;  %vm2196_vm9 = vcmp.lt.f32.partialorder %v4986_v4, 10.0  ;;  %v1666_v17 = vmul.f32 %v1665_v2, %v5010_v40  ;;  %v285_v2 = vld [vmem:[#allocation5 + $0x3a8] sm:$0xff] }
 0x1e2   :  { %v2323_v15 = vsel %vm2195_vm7, %v1939_v23, %v2597_v59  ;;  %v1654_v30 = vmul.f32 0.6931472, %v2840_v20  ;;  %2845 = vlog2.f32 %v1679_v61  ;;  %vm5068_vm10 = vcmp.lt.f32.partialorder %v1667_v10, 0.0004427343 }
 0x1e3   :  { %2451 = vst [vmem:[#allocation7 + $0x358] sm:$0xff] %v2323_v15  ;;  %v1682_v19 = vmul.f32 -0.5, %v5048_v26  ;;  %v5074_v35 = vmul.f32 0.5, %v5062_v8  ;;  %v1674_v39 = vadd.f32 1.0, %v1673_v7  ;;  %v1676_v37 = vand.u32 2147483647, %v5036_v63 }
 0x1e4   :  { %v2842_v62 = vpop.eup %2841  ;;  %v1660_v21 = vsel %vm5057_vm8, %v1657_v18, %v1654_v30  ;;  %v5079_v31 = vand.u32 2147483647, %v409_v3  ;;  %v410_v27 = vsub.f32 %v154_v24, %v282_v38  ;;  %v2599_v54 = vadd.f32 7.917595, %v5003_v9 }
 0x1e5   :  { %v1940_v22 = vmul.f32 10.0, %v1660_v21  ;;  %v1663_v11 = vmul.f32 0.6931472, %v2842_v62  ;;  %v1688_v40 = vadd.f32 1.0, %v5074_v35  ;;  %vm2197_vm11 = vcmp.lt.f32.partialorder %v5003_v9, 10.0  ;;  %v286_v21 = vld [vmem:[#allocation5 + $0x3b0] sm:$0xff] }
 0x1e6   :  { %v1685_v48 = vand.u32 2147483647, %v5048_v26  ;;  %v5086_v36 = vmul.f32 0.5, %v5079_v31  ;;  %v1683_v41 = vadd.f32 1.0, %v1682_v19  ;;  %v1675_v46 = vmul.f32 %v1674_v39, %v5036_v63  ;;  %v156_v63 = vld [vmem:[#allocation2 + $0x3a0] sm:$0xff] }
 0x1e7   :  { %v2324_v33 = vsel %vm2196_vm9, %v1940_v22, %v2598_v32  ;;  %v1669_v13 = vsel %vm5068_vm10, %v1666_v17, %v1663_v11  ;;  %2847 = vlog2.f32 %v1688_v40  ;;  %v1691_v47 = vmul.f32 -0.5, %v5074_v35 }
 0x1e8   :  { %2452 = vst [vmem:[#allocation7 + $0x360] sm:$0xff] %v2324_v33  ;;  %v1941_v60 = vmul.f32 10.0, %v1669_v13  ;;  %v1697_v6 = vadd.f32 1.0, %v5086_v36  ;;  %vm5095_vm12 = vcmp.lt.f32.partialorder %v1676_v37, 0.0004427343  ;;  %v411_v57 = vsub.f32 %v155_v43, %v283_v29  ;;  %v159_v13 = vld [vmem:[#allocation2 + $0x3b8] sm:$0xff] }
 0x1e9   :  { %v2844_v53 = vpop.eup %2843  ;;  %v2600_v4 = vadd.f32 7.917595, %v5024_v42  ;;  %v5100_v45 = vand.u32 2147483647, %v410_v27  ;;  %vm2198_vm13 = vcmp.lt.f32.partialorder %v5024_v42, 10.0  ;;  %v1684_v50 = vmul.f32 %v1683_v41, %v5048_v26  ;;  %v287_v41 = vld [vmem:[#allocation5 + $0x3b8] sm:$0xff] }
 0x1ea   :  { %v2325_v12 = vsel %vm2197_vm11, %v1941_v60, %v2599_v54  ;;  %v1672_v14 = vmul.f32 0.6931472, %v2844_v53  ;;  %2849 = vlog2.f32 %v1697_v6  ;;  %vm5106_vm14 = vcmp.lt.f32.partialorder %v1685_v48, 0.0004427343 }
 0x1eb   :  { %2453 = vst [vmem:[#allocation7 + $0x368] sm:$0xff] %v2325_v12  ;;  %v1700_v52 = vmul.f32 -0.5, %v5086_v36  ;;  %v5112_v5 = vmul.f32 0.5, %v5100_v45  ;;  %v1692_v56 = vadd.f32 1.0, %v1691_v47  ;;  %v1694_v25 = vand.u32 2147483647, %v5074_v35 }
 0x1ec   :  { %v2846_v9 = vpop.eup %2845  ;;  %v1678_v55 = vsel %vm5095_vm12, %v1675_v46, %v1672_v14  ;;  %v5117_v58 = vand.u32 2147483647, %v411_v57  ;;  %v412_v0 = vsub.f32 %v156_v63, %v284_v49  ;;  %v2601_v23 = vadd.f32 7.917595, %v5041_v51 }
 0x1ed   :  { %v1942_v59 = vmul.f32 10.0, %v1678_v55  ;;  %v1681_v10 = vmul.f32 0.6931472, %v2846_v9  ;;  %v1706_v26 = vadd.f32 1.0, %v5112_v5  ;;  %vm2199_vm15 = vcmp.lt.f32.partialorder %v5041_v51, 10.0  ;;  %v288_v55 = vld [vmem:[#allocation5 + $0x3c0] sm:$0xff] }
 0x1ee   :  { %v1703_v18 = vand.u32 2147483647, %v5086_v36  ;;  %v5124_v7 = vmul.f32 0.5, %v5117_v58  ;;  %v1701_v34 = vadd.f32 1.0, %v1700_v52  ;;  %v1693_v3 = vmul.f32 %v1692_v56, %v5074_v35  ;;  %v158_v35 = vld [vmem:[#allocation2 + $0x3b0] sm:$0xff] }
 0x1ef   :  { %v2326_v61 = vsel %vm2198_vm13, %v1942_v59, %v2600_v4  ;;  %v1687_v20 = vsel %vm5106_vm14, %v1684_v50, %v1681_v10  ;;  %2851 = vlog2.f32 %v1706_v26  ;;  %v1709_v15 = vmul.f32 -0.5, %v5112_v5 }
 0x1f0   :  { %2454 = vst [vmem:[#allocation7 + $0x370] sm:$0xff] %v2326_v61  ;;  %v1943_v32 = vmul.f32 10.0, %v1687_v20  ;;  %v1715_v30 = vadd.f32 1.0, %v5124_v7  ;;  %vm5133_vm0 = vcmp.lt.f32.partialorder %v1694_v25, 0.0004427343  ;;  %v413_v28 = vsub.f32 %v157_v16, %v285_v2  ;;  %v161_v20 = vld [vmem:[#allocation2 + $0x3c8] sm:$0xff] }
 0x1f1   :  { %v2848_v24 = vpop.eup %2847  ;;  %v2602_v42 = vadd.f32 7.917595, %v5062_v8  ;;  %v5138_v17 = vand.u32 2147483647, %v412_v0  ;;  %vm2200_vm1 = vcmp.lt.f32.partialorder %v5062_v8, 10.0  ;;  %v1702_v39 = vmul.f32 %v1701_v34, %v5086_v36  ;;  %v289_v34 = vld [vmem:[#allocation5 + $0x3c8] sm:$0xff] }
 0x1f2   :  { %v2327_v19 = vsel %vm2199_vm15, %v1943_v32, %v2601_v23  ;;  %v1690_v62 = vmul.f32 0.6931472, %v2848_v24  ;;  %2853 = vlog2.f32 %v1715_v30  ;;  %vm5144_vm2 = vcmp.lt.f32.partialorder %v1703_v18, 0.0004427343 }
 0x1f3   :  { %2455 = vst [vmem:[#allocation7 + $0x378] sm:$0xff] %v2327_v19  ;;  %v1718_v22 = vmul.f32 -0.5, %v5124_v7  ;;  %v5150_v11 = vmul.f32 0.5, %v5138_v17  ;;  %v1710_v27 = vadd.f32 1.0, %v1709_v15  ;;  %v1712_v43 = vand.u32 2147483647, %v5112_v5 }
 0x1f4   :  { %v2850_v51 = vpop.eup %2849  ;;  %v1696_v40 = vsel %vm5133_vm0, %v1693_v3, %v1690_v62  ;;  %v5155_v29 = vand.u32 2147483647, %v413_v28  ;;  %v414_v33 = vsub.f32 %v158_v35, %v286_v21  ;;  %v2603_v60 = vadd.f32 7.917595, %v5079_v31 }
 0x1f5   :  { %v1944_v54 = vmul.f32 10.0, %v1696_v40  ;;  %v1699_v48 = vmul.f32 0.6931472, %v2850_v51  ;;  %v1724_v36 = vadd.f32 1.0, %v5150_v11  ;;  %vm2201_vm3 = vcmp.lt.f32.partialorder %v5079_v31, 10.0  ;;  %v290_v40 = vld [vmem:[#allocation5 + $0x3d0] sm:$0xff] }
 0x1f6   :  { %v1721_v46 = vand.u32 2147483647, %v5124_v7  ;;  %v5162_v47 = vmul.f32 0.5, %v5155_v29  ;;  %v1719_v44 = vadd.f32 1.0, %v1718_v22  ;;  %v1711_v57 = vmul.f32 %v1710_v27, %v5112_v5  ;;  %v160_v5 = vld [vmem:[#allocation2 + $0x3c0] sm:$0xff] }
 0x1f7   :  { %v2328_v6 = vsel %vm2200_vm1, %v1944_v54, %v2602_v42  ;;  %v1705_v53 = vsel %vm5144_vm2, %v1702_v39, %v1699_v48  ;;  %2855 = vlog2.f32 %v1724_v36  ;;  %v1727_v12 = vmul.f32 -0.5, %v5150_v11 }
 0x1f8   :  { %2456 = vst [vmem:[#allocation7 + $0x380] sm:$0xff] %v2328_v6  ;;  %v1945_v4 = vmul.f32 10.0, %v1705_v53  ;;  %v1733_v14 = vadd.f32 1.0, %v5162_v47  ;;  %vm5171_vm4 = vcmp.lt.f32.partialorder %v1712_v43, 0.0004427343  ;;  %v415_v1 = vsub.f32 %v159_v13, %v287_v41  ;;  %v163_v53 = vld [vmem:[#allocation2 + $0x3d8] sm:$0xff] }
 0x1f9   :  { %v2852_v63 = vpop.eup %2851  ;;  %v2604_v8 = vadd.f32 7.917595, %v5100_v45  ;;  %v5176_v50 = vand.u32 2147483647, %v414_v33  ;;  %vm2202_vm5 = vcmp.lt.f32.partialorder %v5100_v45, 10.0  ;;  %v1720_v56 = vmul.f32 %v1719_v44, %v5124_v7  ;;  %v291_v44 = vld [vmem:[#allocation5 + $0x3d8] sm:$0xff] }
 0x1fa   :  { %v2329_v52 = vsel %vm2201_vm3, %v1945_v4, %v2603_v60  ;;  %v1708_v9 = vmul.f32 0.6931472, %v2852_v63  ;;  %2857 = vlog2.f32 %v1733_v14  ;;  %vm5182_vm6 = vcmp.lt.f32.partialorder %v1721_v46, 0.0004427343 }
 0x1fb   :  { %2457 = vst [vmem:[#allocation7 + $0x388] sm:$0xff] %v2329_v52  ;;  %v1736_v59 = vmul.f32 -0.5, %v5162_v47  ;;  %v5188_v10 = vmul.f32 0.5, %v5176_v50  ;;  %v1728_v0 = vadd.f32 1.0, %v1727_v12  ;;  %v1730_v16 = vand.u32 2147483647, %v5150_v11 }
 0x1fc   :  { %v2854_v31 = vpop.eup %2853  ;;  %v1714_v26 = vsel %vm5171_vm4, %v1711_v57, %v1708_v9  ;;  %v5193_v2 = vand.u32 2147483647, %v415_v1  ;;  %v416_v61 = vsub.f32 %v160_v5, %v288_v55  ;;  %v2605_v32 = vadd.f32 7.917595, %v5117_v58 }
 0x1fd   :  { %v1946_v23 = vmul.f32 10.0, %v1714_v26  ;;  %v1717_v18 = vmul.f32 0.6931472, %v2854_v31  ;;  %v1742_v7 = vadd.f32 1.0, %v5188_v10  ;;  %vm2203_vm7 = vcmp.lt.f32.partialorder %v5117_v58, 10.0  ;;  %v292_v26 = vld [vmem:[#allocation5 + $0x3e0] sm:$0xff] }
 0x1fe   :  { %v1739_v3 = vand.u32 2147483647, %v5162_v47  ;;  %v5200_v15 = vmul.f32 0.5, %v5193_v2  ;;  %v1737_v38 = vadd.f32 1.0, %v1736_v59  ;;  %v1729_v28 = vmul.f32 %v1728_v0, %v5150_v11  ;;  %v162_v11 = vld [vmem:[#allocation2 + $0x3d0] sm:$0xff] }
 0x1ff   :  { %v2330_v30 = vsel %vm2202_vm5, %v1946_v23, %v2604_v8  ;;  %v1723_v24 = vsel %vm5182_vm6, %v1720_v56, %v1717_v18  ;;  %2859 = vlog2.f32 %v1742_v7  ;;  %v1745_v19 = vmul.f32 -0.5, %v5188_v10 }
 0x200   :  { %2458 = vst [vmem:[#allocation7 + $0x390] sm:$0xff] %v2330_v30  ;;  %v1947_v42 = vmul.f32 10.0, %v1723_v24  ;;  %v1751_v62 = vadd.f32 1.0, %v5200_v15  ;;  %vm5209_vm8 = vcmp.lt.f32.partialorder %v1730_v16, 0.0004427343  ;;  %v417_v37 = vsub.f32 %v161_v20, %v289_v34  ;;  %v165_v24 = vld [vmem:[#allocation2 + $0x3e8] sm:$0xff] }
 0x201   :  { %v2856_v35 = vpop.eup %2855  ;;  %v2606_v45 = vadd.f32 7.917595, %v5138_v17  ;;  %v5214_v39 = vand.u32 2147483647, %v416_v61  ;;  %vm2204_vm9 = vcmp.lt.f32.partialorder %v5138_v17, 10.0  ;;  %v1738_v27 = vmul.f32 %v1737_v38, %v5162_v47  ;;  %v293_v38 = vld [vmem:[#allocation5 + $0x3e8] sm:$0xff] }
 0x202   :  { %v2331_v22 = vsel %vm2203_vm7, %v1947_v42, %v2605_v32  ;;  %v1726_v51 = vmul.f32 0.6931472, %v2856_v35  ;;  %2861 = vlog2.f32 %v1751_v62  ;;  %vm5220_vm10 = vcmp.lt.f32.partialorder %v1739_v3, 0.0004427343 }
 0x203   :  { %2459 = vst [vmem:[#allocation7 + $0x398] sm:$0xff] %v2331_v22  ;;  %v1754_v54 = vmul.f32 -0.5, %v5200_v15  ;;  %v5226_v48 = vmul.f32 0.5, %v5214_v39  ;;  %v1746_v33 = vadd.f32 1.0, %v1745_v19  ;;  %v1748_v13 = vand.u32 2147483647, %v5188_v10 }
 0x204   :  { %v2858_v58 = vpop.eup %2857  ;;  %v1732_v36 = vsel %vm5209_vm8, %v1729_v28, %v1726_v51  ;;  %v5231_v41 = vand.u32 2147483647, %v417_v37  ;;  %v418_v6 = vsub.f32 %v162_v11, %v290_v40  ;;  %v2607_v4 = vadd.f32 7.917595, %v5155_v29 }
 0x205   :  { %v1948_v60 = vmul.f32 10.0, %v1732_v36  ;;  %v1735_v46 = vmul.f32 0.6931472, %v2858_v58  ;;  %v1760_v47 = vadd.f32 1.0, %v5226_v48  ;;  %vm2205_vm11 = vcmp.lt.f32.partialorder %v5155_v29, 10.0  ;;  %v294_v36 = vld [vmem:[#allocation5 + $0x3f0] sm:$0xff] }
 0x206   :  { %v1757_v57 = vand.u32 2147483647, %v5200_v15  ;;  %v5238_v12 = vmul.f32 0.5, %v5231_v41  ;;  %v1755_v49 = vadd.f32 1.0, %v1754_v54  ;;  %v1747_v1 = vmul.f32 %v1746_v33, %v5188_v10  ;;  %v164_v10 = vld [vmem:[#allocation2 + $0x3e0] sm:$0xff] }
 0x207   :  { %v2332_v14 = vsel %vm2204_vm9, %v1948_v60, %v2606_v45  ;;  %v1741_v63 = vsel %vm5220_vm10, %v1738_v27, %v1735_v46  ;;  %2863 = vlog2.f32 %v1760_v47  ;;  %v1763_v52 = vmul.f32 -0.5, %v5226_v48 }
 0x208   :  { %2460 = vst [vmem:[#allocation7 + $0x3a0] sm:$0xff] %v2332_v14  ;;  %v1949_v8 = vmul.f32 10.0, %v1741_v63  ;;  %v1769_v9 = vadd.f32 1.0, %v5238_v12  ;;  %vm5247_vm12 = vcmp.lt.f32.partialorder %v1748_v13, 0.0004427343  ;;  %v419_v25 = vsub.f32 %v163_v53, %v291_v44  ;;  %v167_v63 = vld [vmem:[#allocation2 + $0x3f8] sm:$0xff] }
 0x209   :  { %v2860_v5 = vpop.eup %2859  ;;  %v2608_v17 = vadd.f32 7.917595, %v5176_v50  ;;  %v5252_v56 = vand.u32 2147483647, %v418_v6  ;;  %vm2206_vm13 = vcmp.lt.f32.partialorder %v5176_v50, 10.0  ;;  %v1756_v0 = vmul.f32 %v1755_v49, %v5200_v15  ;;  %v295_v49 = vld [vmem:[#allocation5 + $0x3f8] sm:$0xff] }
 0x20a   :  { %v2333_v59 = vsel %vm2205_vm11, %v1949_v8, %v2607_v4  ;;  %v1744_v31 = vmul.f32 0.6931472, %v2860_v5  ;;  %2865 = vlog2.f32 %v1769_v9  ;;  %vm5258_vm14 = vcmp.lt.f32.partialorder %v1757_v57, 0.0004427343 }
 0x20b   :  { %2461 = vst [vmem:[#allocation7 + $0x3a8] sm:$0xff] %v2333_v59  ;;  %v1772_v23 = vmul.f32 -0.5, %v5238_v12  ;;  %v5264_v18 = vmul.f32 0.5, %v5252_v56  ;;  %v1764_v61 = vadd.f32 1.0, %v1763_v52  ;;  %v1766_v20 = vand.u32 2147483647, %v5226_v48 }
 0x20c   :  { %v2862_v29 = vpop.eup %2861  ;;  %v1750_v7 = vsel %vm5247_vm12, %v1747_v1, %v1744_v31  ;;  %v5269_v34 = vand.u32 2147483647, %v419_v25  ;;  %v420_v30 = vsub.f32 %v164_v10, %v292_v26  ;;  %v2609_v42 = vadd.f32 7.917595, %v5193_v2 }
 0x20d   :  { %v1950_v32 = vmul.f32 10.0, %v1750_v7  ;;  %v1753_v3 = vmul.f32 0.6931472, %v2862_v29  ;;  %v1778_v15 = vadd.f32 1.0, %v5264_v18  ;;  %vm2207_vm15 = vcmp.lt.f32.partialorder %v5193_v2, 10.0 }
 0x20e   :  { %v1775_v28 = vand.u32 2147483647, %v5238_v12  ;;  %v5276_v19 = vmul.f32 0.5, %v5269_v34  ;;  %v1773_v21 = vadd.f32 1.0, %v1772_v23  ;;  %v1765_v37 = vmul.f32 %v1764_v61, %v5226_v48  ;;  %v166_v48 = vld [vmem:[#allocation2 + $0x3f0] sm:$0xff] }
 0x20f   :  { %v2334_v62 = vsel %vm2206_vm13, %v1950_v32, %v2608_v17  ;;  %v1759_v35 = vsel %vm5258_vm14, %v1756_v0, %v1753_v3  ;;  %2867 = vlog2.f32 %v1778_v15  ;;  %v1781_v22 = vmul.f32 -0.5, %v5264_v18 }
 0x210   :  { %2462 = vst [vmem:[#allocation7 + $0x3b0] sm:$0xff] %v2334_v62  ;;  %v1951_v45 = vmul.f32 10.0, %v1759_v35  ;;  %v1787_v51 = vadd.f32 1.0, %v5276_v19  ;;  %vm5285_vm0 = vcmp.lt.f32.partialorder %v1766_v20, 0.0004427343  ;;  %v421_v43 = vsub.f32 %v165_v24, %v293_v38 }
 0x211   :  { %v2864_v11 = vpop.eup %2863  ;;  %v2610_v50 = vadd.f32 7.917595, %v5214_v39  ;;  %v5290_v27 = vand.u32 2147483647, %v420_v30  ;;  %vm2208_vm1 = vcmp.lt.f32.partialorder %v5214_v39, 10.0  ;;  %v1774_v33 = vmul.f32 %v1773_v21, %v5238_v12 }
 0x212   :  { %v2335_v54 = vsel %vm2207_vm15, %v1951_v45, %v2609_v42  ;;  %v1762_v58 = vmul.f32 0.6931472, %v2864_v11  ;;  %2869 = vlog2.f32 %v1787_v51  ;;  %vm5296_vm2 = vcmp.lt.f32.partialorder %v1775_v28, 0.0004427343 }
 0x213   :  { %2463 = vst [vmem:[#allocation7 + $0x3b8] sm:$0xff] %v2335_v54  ;;  %v1790_v60 = vmul.f32 -0.5, %v5276_v19  ;;  %v676_v46 = vmul.f32 0.5, %v5290_v27  ;;  %v1782_v6 = vadd.f32 1.0, %v1781_v22  ;;  %v1784_v53 = vand.u32 2147483647, %v5264_v18 }
 0x214   :  { %v2866_v47 = vpop.eup %2865  ;;  %v1768_v2 = vsel %vm5285_vm0, %v1765_v37, %v1762_v58  ;;  %v5305_v44 = vand.u32 2147483647, %v421_v43  ;;  %v422_v14 = vsub.f32 %v166_v48, %v294_v36  ;;  %v2611_v8 = vadd.f32 7.917595, %v5231_v41 }
 0x215   :  { %v1952_v4 = vmul.f32 10.0, %v1768_v2  ;;  %v1771_v57 = vmul.f32 0.6931472, %v2866_v47  ;;  %v1796_v12 = vadd.f32 1.0, %v676_v46  ;;  %vm2209_vm3 = vcmp.lt.f32.partialorder %v5231_v41, 10.0 }
 0x216   :  { %v1793_v1 = vand.u32 2147483647, %v5276_v19  ;;  %v677_v52 = vmul.f32 0.5, %v5305_v44  ;;  %v1791_v55 = vadd.f32 1.0, %v1790_v60  ;;  %v1783_v25 = vmul.f32 %v1782_v6, %v5264_v18 }
 0x217   :  { %v2336_v9 = vsel %vm2208_vm1, %v1952_v4, %v2610_v50  ;;  %v1777_v5 = vsel %vm5296_vm2, %v1774_v33, %v1771_v57  ;;  %2871 = vlog2.f32 %v1796_v12  ;;  %v1799_v59 = vmul.f32 -0.5, %v676_v46 }
 0x218   :  { %2464 = vst [vmem:[#allocation7 + $0x3c0] sm:$0xff] %v2336_v9  ;;  %v1953_v17 = vmul.f32 10.0, %v1777_v5  ;;  %v1805_v31 = vadd.f32 1.0, %v677_v52  ;;  %vm5316_vm4 = vcmp.lt.f32.partialorder %v1784_v53, 0.0004427343  ;;  %v423_v39 = vsub.f32 %v167_v63, %v295_v49 }
 0x219   :  { %v2868_v10 = vpop.eup %2867  ;;  %v5320_v0 = vand.u32 2147483647, %v422_v14  ;;  %v2612_v29 = vadd.f32 7.917595, %v5252_v56  ;;  %vm2210_vm5 = vcmp.lt.f32.partialorder %v5252_v56, 10.0  ;;  %v1792_v18 = vmul.f32 %v1791_v55, %v5276_v19 }
 0x21a   :  { %v2337_v16 = vsel %vm2209_vm3, %v1953_v17, %v2611_v8  ;;  %v1780_v23 = vmul.f32 0.6931472, %v2868_v10  ;;  %2873 = vlog2.f32 %v1805_v31  ;;  %v1808_v7 = vmul.f32 -0.5, %v677_v52 }
 0x21b   :  { %2465 = vst [vmem:[#allocation7 + $0x3c8] sm:$0xff] %v2337_v16  ;;  %v678_v61 = vmul.f32 0.5, %v5320_v0  ;;  %vm5330_vm6 = vcmp.lt.f32.partialorder %v1793_v1, 0.0004427343  ;;  %v1800_v41 = vadd.f32 1.0, %v1799_v59  ;;  %vm2211_vm7 = vcmp.lt.f32.partialorder %v5269_v34, 10.0 }
 0x21c   :  { %v2870_v20 = vpop.eup %2869  ;;  %v1786_v32 = vsel %vm5316_vm4, %v1783_v25, %v1780_v23  ;;  %v5334_v15 = vand.u32 2147483647, %v423_v39  ;;  %v1802_v38 = vand.u32 2147483647, %v676_v46  ;;  %v2613_v28 = vadd.f32 7.917595, %v5269_v34 }
 0x21d   :  { %v1954_v30 = vmul.f32 10.0, %v1786_v32  ;;  %v1789_v24 = vmul.f32 0.6931472, %v2870_v20  ;;  %v1814_v42 = vadd.f32 1.0, %v678_v61  ;;  %v1811_v19 = vand.u32 2147483647, %v677_v52 }
 0x21e   :  { %v679_v62 = vmul.f32 0.5, %v5334_v15  ;;  %v1809_v45 = vadd.f32 1.0, %v1808_v7  ;;  %v1801_v22 = vmul.f32 %v1800_v41, %v676_v46  ;;  %v1817_v51 = vmul.f32 -0.5, %v678_v61 }
 0x21f   :  { %v2338_v35 = vsel %vm2210_vm5, %v1954_v30, %v2612_v29  ;;  %v1795_v21 = vsel %vm5330_vm6, %v1792_v18, %v1789_v24  ;;  %2875 = vlog2.f32 %v1814_v42  ;;  %vm1803_vm8 = vcmp.lt.f32.partialorder %v1802_v38, 0.0004427343 }
 0x220   :  { %2466 = vst [vmem:[#allocation7 + $0x3d0] sm:$0xff] %v2338_v35  ;;  %v1955_v37 = vmul.f32 10.0, %v1795_v21  ;;  %v1823_v11 = vadd.f32 1.0, %v679_v62  ;;  %v2614_v43 = vadd.f32 7.917595, %v5290_v27  ;;  %v1810_v56 = vmul.f32 %v1809_v45, %v677_v52 }
 0x221   :  { %v2872_v40 = vpop.eup %2871  ;;  %v1826_v54 = vmul.f32 -0.5, %v679_v62  ;;  %vm2212_vm9 = vcmp.lt.f32.partialorder %v5290_v27, 10.0  ;;  %vm1812_vm10 = vcmp.lt.f32.partialorder %v1811_v19, 0.0004427343  ;;  %v1818_v36 = vadd.f32 1.0, %v1817_v51 }
 0x222   :  { %v2339_v50 = vsel %vm2211_vm7, %v1955_v37, %v2613_v28  ;;  %v1798_v34 = vmul.f32 0.6931472, %v2872_v40  ;;  %2877 = vlog2.f32 %v1823_v11  ;;  %v1820_v60 = vand.u32 2147483647, %v678_v61 }
 0x223   :  { %2467 = vst [vmem:[#allocation7 + $0x3d8] sm:$0xff] %v2339_v50  ;;  %v2615_v46 = vadd.f32 7.917595, %v5305_v44  ;;  %vm2213_vm11 = vcmp.lt.f32.partialorder %v5305_v44, 10.0  ;;  %v1827_v6 = vadd.f32 1.0, %v1826_v54  ;;  %v1819_v4 = vmul.f32 %v1818_v36, %v678_v61 }
 0x224   :  { %v2874_v58 = vpop.eup %2873  ;;  %v1804_v48 = vsel %vm1803_vm8, %v1801_v22, %v1798_v34  ;;  %v1829_v57 = vand.u32 2147483647, %v679_v62  ;;  %vm1821_vm12 = vcmp.lt.f32.partialorder %v1820_v60, 0.0004427343  ;;  %v2616_v63 = vadd.f32 7.917595, %v5320_v0 }
 0x225   :  { %v1956_v33 = vmul.f32 10.0, %v1804_v48  ;;  %v1807_v13 = vmul.f32 0.6931472, %v2874_v58  ;;  %v1828_v49 = vmul.f32 %v1827_v6, %v679_v62  ;;  %vm2214_vm13 = vcmp.lt.f32.partialorder %v5320_v0, 10.0 }
 0x226   :  { %vm1830_vm14 = vcmp.lt.f32.partialorder %v1829_v57, 0.0004427343  ;;  %v2617_v9 = vadd.f32 7.917595, %v5334_v15  ;;  %vm2215_vm15 = vcmp.lt.f32.partialorder %v5334_v15, 10.0 }
 0x227   :  { %v2340_v47 = vsel %vm2212_vm9, %v1956_v33, %v2614_v43  ;;  %v1813_v2 = vsel %vm1812_vm10, %v1810_v56, %v1807_v13 }
 0x228   :  { %2468 = vst [vmem:[#allocation7 + $0x3e0] sm:$0xff] %v2340_v47  ;;  %v1957_v53 = vmul.f32 10.0, %v1813_v2 }
 0x229   :  { %v2876_v12 = vpop.eup %2875 }
 0x22a   :  { %v2341_v14 = vsel %vm2213_vm11, %v1957_v53, %v2615_v46  ;;  %v1816_v27 = vmul.f32 0.6931472, %v2876_v12 }
 0x22b   :  { %2469 = vst [vmem:[#allocation7 + $0x3e8] sm:$0xff] %v2341_v14 }
 0x22c   :  { %v2878_v8 = vpop.eup %2877  ;;  %v1822_v1 = vsel %vm1821_vm12, %v1819_v4, %v1816_v27 }
 0x22d   :  { %v1958_v52 = vmul.f32 10.0, %v1822_v1  ;;  %v1825_v44 = vmul.f32 0.6931472, %v2878_v8 }
 0x22f   :  { %v2342_v5 = vsel %vm2214_vm13, %v1958_v52, %v2616_v63  ;;  %v1831_v55 = vsel %vm1830_vm14, %v1828_v49, %v1825_v44 }
 0x230   :  { %2470 = vst [vmem:[#allocation7 + $0x3f0] sm:$0xff] %v2342_v5  ;;  %v1959_v17 = vmul.f32 10.0, %v1831_v55 }
 0x232   :  { %v2343_v25 = vsel %vm2215_vm15, %v1959_v17, %v2617_v9 }
 0x233   :  { %2471 = vst [vmem:[#allocation7 + $0x3f8] sm:$0xff] %v2343_v25 }
 0x234   :  { %2934 = shalt.err (!%p2931_p6)
}
 0x235   :  { %s2935_s10 = scalar_lea.hbm %s5368_s2, 16384 }
 0x236   :  { %p2936_p7 = scmp.ne.s32.totalorder %s5368_s2, %s2935_s10  ;;  %p2939_p8 = scmp.lt.u32.totalorder %s2935_s10, %s5368_s2 }
 0x238   :  { %p2941_p9 = pnand %p2939_p8, %p2936_p7 }
 0x23a   :  { %2944 = shalt.err (!%p2941_p9)
}
 0x23b   :  { %2483 = dma.vmem_to_hbm [thread:$0]  %s2478_s6, 16384, %s5368_s2, [#allocation4], %s2952_s19, %s2952_s19, %s2953_s20  }
 0x23c   :  { %2949 = dma.done.wait [#allocation4], 16384  }
 0x23d   :  { %2950 = vsyncadd [#allocation4], 4294950912 }
 0x23e   :  { %2487 = vsyncpa [#allocation3], 1 }
 0x23f   :  { %2488 = vsyncpa [#allocation6], 1 }
 0x240   :  { %2489 = vsyncpa [#allocation4], 1 }

</bundles_post_ra>
